<compile_context>
chip_gen: v6e
topology: v6e:2x2x1
jax: 0.10.0
libtpu: 0.0.40
codegen_flags: <defaults>
</compile_context>

<pallas_src>
import jax
import jax.numpy as jnp
from jax.experimental import pallas as pl
from jax.experimental.pallas import tpu as pltpu

Z_DIM = 100
H1 = 256
H2 = 512
OUT = 64 * 64 * 3   # 12288
TN = 3072           # lane tile of the final layer output -> grid=(4,)


def generator_kernel(z_ref, w1_ref, b1_ref, w2_ref, b2_ref, w3_ref, b3_ref,
                     o_ref):
    # Hidden MLP, recomputed per output tile (~0.3 MFLOP/step, free under the
    # HBM-bound slack). Pure fp32 for precision; operands are VMEM-resident.
    h1 = jnp.dot(z_ref[...], w1_ref[...], preferred_element_type=jnp.float32)
    h1 = jnp.maximum(h1 + b1_ref[...], 0.0)
    h2 = jnp.dot(h1, w2_ref[...], preferred_element_type=jnp.float32)
    h2 = jnp.maximum(h2 + b2_ref[...], 0.0)
    # Output tile: (B, 512) @ (512, TN) on the bf16 MXU path with fp32
    # accumulation (the only HBM-heavy stream), then bias + tanh (EUP).
    y = jnp.dot(h2.astype(jnp.bfloat16), w3_ref[...],
                preferred_element_type=jnp.float32)
    o_ref[...] = jnp.tanh(y + b3_ref[...])


@jax.jit
def generator_forward(z, params):
    w1, b1, w2, b2, w3, b3 = params
    # Static (trace-time) dtype contract: the big weight must already be bf16
    # at rest; casting here would re-stream 24 MiB of fp32 from HBM per call.
    if w3.dtype != jnp.bfloat16:
        raise ValueError("w3 must be bfloat16 at rest; use compress_params().")
    B = z.shape[0]
    n_tiles = OUT // TN

    cost = pl.CostEstimate(
        flops=2 * B * (Z_DIM * H1 + H1 * H2) * n_tiles + 2 * B * H2 * OUT,
        transcendentals=B * OUT,
        bytes_accessed=(w3.size * 2 + b3.size * 4 + B * OUT * 4
                        + w1.size * 4 + w2.size * 4
                        + (b1.size + b2.size + z.size) * 4),
    )

    flat = pl.pallas_call(
        generator_kernel,
        out_shape=jax.ShapeDtypeStruct((B, OUT), jnp.float32),
        grid_spec=pltpu.PrefetchScalarGridSpec(
            num_scalar_prefetch=0,
            grid=(n_tiles,),
            in_specs=[
                pl.BlockSpec((B, Z_DIM), lambda j: (0, 0)),   # z   (resident)
                pl.BlockSpec((Z_DIM, H1), lambda j: (0, 0)),  # w1  (resident)
                pl.BlockSpec((1, H1), lambda j: (0, 0)),      # b1  (resident)
                pl.BlockSpec((H1, H2), lambda j: (0, 0)),     # w2  (resident)
                pl.BlockSpec((1, H2), lambda j: (0, 0)),      # b2  (resident)
                pl.BlockSpec((H2, TN), lambda j: (0, j)),     # w3  (streamed)
                pl.BlockSpec((1, TN), lambda j: (0, j)),      # b3  (streamed)
            ],
            out_specs=pl.BlockSpec((B, TN), lambda j: (0, j)),
        ),
        compiler_params=pltpu.CompilerParams(
            dimension_semantics=("parallel",),
            vmem_limit_bytes=32 * 1024 * 1024,
        ),
        cost_estimate=cost,
    )(z, w1, b1, w2, b2, w3, b3)

    # Same row-major semantics as torch's .view(-1, 3, 64, 64) -> NCHW
    return flat.reshape(B, 3, 64, 64)


def init_params(key):
    """fp32 parameters, PyTorch-style uniform(-1/sqrt(fan_in), +1/sqrt(fan_in))."""
    k1, k2, k3, k4, k5, k6 = jax.random.split(key, 6)
    s1 = 1.0 / jnp.sqrt(Z_DIM)
    s2 = 1.0 / jnp.sqrt(H1)
    s3 = 1.0 / jnp.sqrt(H2)
    w1 = jax.random.uniform(k1, (Z_DIM, H1), jnp.float32, -s1, s1)
    b1 = jax.random.uniform(k2, (1, H1), jnp.float32, -s1, s1)
    w2 = jax.random.uniform(k3, (H1, H2), jnp.float32, -s2, s2)
    b2 = jax.random.uniform(k4, (1, H2), jnp.float32, -s2, s2)
    w3 = jax.random.uniform(k5, (H2, OUT), jnp.float32, -s3, s3)
    b3 = jax.random.uniform(k6, (1, OUT), jnp.float32, -s3, s3)
    return (w1, b1, w2, b2, w3, b3)


def compress_params(params):
    """bf16 for the big output weight only (the dominant HBM stream);
    small hidden weights and all biases stay fp32 for precision."""
    w1, b1, w2, b2, w3, b3 = params
    return (w1, b1, w2, b2, w3.astype(jnp.bfloat16), b3)


def generator_reference(z, params_f32):
    """Exact fp32 math, mirroring the PyTorch module."""
    w1, b1, w2, b2, w3, b3 = params_f32
    h1 = jnp.maximum(z @ w1 + b1, 0.0)
    h2 = jnp.maximum(h1 @ w2 + b2, 0.0)
    y = jnp.tanh(h2 @ w3 + b3)
    return y.reshape(z.shape[0], 3, 64, 64)


if __name__ == "__main__":
    key = jax.random.PRNGKey(0)
    kp, kz = jax.random.split(key)
    params_f32 = init_params(kp)
    params = compress_params(params_f32)

    B = 2
    z = jax.random.normal(kz, (B, Z_DIM), jnp.float32)

    out = generator_forward(z, params)
    out = jax.block_until_ready(out)

    ref = generator_reference(z, params_f32)
    assert out.shape == (B, 3, 64, 64)
    # Tolerance accounts for bf16 compression of w3 (and the bf16 h2 cast on
    # the final matmul) vs the fp32 reference; hidden layers are full fp32.
    assert jnp.allclose(out, ref, atol=2e-2, rtol=2e-2)

    print("KERNEL_OK")
</pallas_src>

<mosaic_0001>
module attributes {stable_mosaic.version = 11 : i64} {
  func.func @generator_kernel(%arg0: i32, %arg1: memref<2x100xf32, #tpu.memory_space<vmem>>, %arg2: memref<100x256xf32, #tpu.memory_space<vmem>>, %arg3: memref<1x256xf32, #tpu.memory_space<vmem>>, %arg4: memref<256x512xf32, #tpu.memory_space<vmem>>, %arg5: memref<1x512xf32, #tpu.memory_space<vmem>>, %arg6: memref<512x3072xbf16, #tpu.memory_space<vmem>>, %arg7: memref<1x3072xf32, #tpu.memory_space<vmem>>, %arg8: memref<2x3072xf32, #tpu.memory_space<vmem>>) attributes {dimension_semantics = [#tpu.dimension_semantics<parallel>], iteration_bounds = array<i64: 4>, scalar_prefetch = 0 : i64, scratch_operands = 0 : i64, tpu.core_type = #tpu.core_type<tc>, window_params = [{pipeline_mode = #tpu.pipeline_mode<synchronous>, transform_indices = @transform_0, window_bounds = array<i64: 2, 100>}, {pipeline_mode = #tpu.pipeline_mode<synchronous>, transform_indices = @transform_1, window_bounds = array<i64: 100, 256>}, {pipeline_mode = #tpu.pipeline_mode<synchronous>, transform_indices = @transform_2, window_bounds = array<i64: 1, 256>}, {pipeline_mode = #tpu.pipeline_mode<synchronous>, transform_indices = @transform_3, window_bounds = array<i64: 256, 512>}, {pipeline_mode = #tpu.pipeline_mode<synchronous>, transform_indices = @transform_4, window_bounds = array<i64: 1, 512>}, {transform_indices = @transform_5, window_bounds = array<i64: 512, 3072>}, {transform_indices = @transform_6, window_bounds = array<i64: 1, 3072>}, {transform_indices = @transform_7, window_bounds = array<i64: 2, 3072>}]} {
    %c0 = arith.constant 0 : index
    %c0_0 = arith.constant 0 : index
    %0 = vector.load %arg1[%c0, %c0_0] : memref<2x100xf32, #tpu.memory_space<vmem>>, vector<2x100xf32>
    %c0_1 = arith.constant 0 : index
    %c0_2 = arith.constant 0 : index
    %1 = vector.load %arg2[%c0_1, %c0_2] : memref<100x256xf32, #tpu.memory_space<vmem>>, vector<100x256xf32>
    %cst = arith.constant dense<0.000000e+00> : vector<2x256xf32>
    %2 = tpu.matmul %0, %1, %cst {dimension_numbers = #tpu.dot_dimension_numbers<[1], [0], [0], [1], [0, 0, 1, 1], [], []>} : vector<2x100xf32>, vector<100x256xf32>, vector<2x256xf32> -> vector<2x256xf32>
    %c0_3 = arith.constant 0 : index
    %c0_4 = arith.constant 0 : index
    %3 = vector.load %arg3[%c0_3, %c0_4] : memref<1x256xf32, #tpu.memory_space<vmem>>, vector<1x256xf32>
    %4 = vector.broadcast %3 : vector<1x256xf32> to vector<2x256xf32>
    %5 = arith.addf %2, %4 : vector<2x256xf32>
    %cst_5 = arith.constant 0.000000e+00 : f32
    %6 = vector.broadcast %cst_5 : f32 to vector<2x256xf32>
    %7 = arith.maximumf %5, %6 : vector<2x256xf32>
    %c0_6 = arith.constant 0 : index
    %c0_7 = arith.constant 0 : index
    %8 = vector.load %arg4[%c0_6, %c0_7] : memref<256x512xf32, #tpu.memory_space<vmem>>, vector<256x512xf32>
    %cst_8 = arith.constant dense<0.000000e+00> : vector<2x512xf32>
    %9 = tpu.matmul %7, %8, %cst_8 {dimension_numbers = #tpu.dot_dimension_numbers<[1], [0], [0], [1], [0, 0, 1, 1], [], []>} : vector<2x256xf32>, vector<256x512xf32>, vector<2x512xf32> -> vector<2x512xf32>
    %c0_9 = arith.constant 0 : index
    %c0_10 = arith.constant 0 : index
    %10 = vector.load %arg5[%c0_9, %c0_10] : memref<1x512xf32, #tpu.memory_space<vmem>>, vector<1x512xf32>
    %11 = vector.broadcast %10 : vector<1x512xf32> to vector<2x512xf32>
    %12 = arith.addf %9, %11 : vector<2x512xf32>
    %cst_11 = arith.constant 0.000000e+00 : f32
    %13 = vector.broadcast %cst_11 : f32 to vector<2x512xf32>
    %14 = arith.maximumf %12, %13 : vector<2x512xf32>
    %15 = arith.truncf %14 : vector<2x512xf32> to vector<2x512xbf16>
    %c0_12 = arith.constant 0 : index
    %c0_13 = arith.constant 0 : index
    %16 = vector.load %arg6[%c0_12, %c0_13] : memref<512x3072xbf16, #tpu.memory_space<vmem>>, vector<512x3072xbf16>
    %cst_14 = arith.constant dense<0.000000e+00> : vector<2x3072xf32>
    %17 = tpu.matmul %15, %16, %cst_14 {dimension_numbers = #tpu.dot_dimension_numbers<[1], [0], [0], [1], [0, 0, 1, 1], [], []>} : vector<2x512xbf16>, vector<512x3072xbf16>, vector<2x3072xf32> -> vector<2x3072xf32>
    %c0_15 = arith.constant 0 : index
    %c0_16 = arith.constant 0 : index
    %18 = vector.load %arg7[%c0_15, %c0_16] : memref<1x3072xf32, #tpu.memory_space<vmem>>, vector<1x3072xf32>
    %19 = vector.broadcast %18 : vector<1x3072xf32> to vector<2x3072xf32>
    %20 = arith.addf %17, %19 : vector<2x3072xf32>
    %21 = math.tanh %20 : vector<2x3072xf32>
    %c0_17 = arith.constant 0 : index
    %c0_18 = arith.constant 0 : index
    %22 = vector.load %arg8[%c0_17, %c0_18] : memref<2x3072xf32, #tpu.memory_space<vmem>>, vector<2x3072xf32>
    tpu.vector_store %arg8[%c0_17, %c0_18], %21 {strides = array<i32>} : memref<2x3072xf32, #tpu.memory_space<vmem>>, vector<2x3072xf32>,
    return
  }
  func.func @transform_0(%arg0: i32) -> (i32, i32) {
    %c0_i32 = arith.constant 0 : i32
    %c0_i32_0 = arith.constant 0 : i32
    %c0_i32_1 = arith.constant 0 : i32
    return %c0_i32, %c0_i32_0 : i32, i32
  }
  func.func @transform_1(%arg0: i32) -> (i32, i32) {
    %c0_i32 = arith.constant 0 : i32
    %c0_i32_0 = arith.constant 0 : i32
    %c0_i32_1 = arith.constant 0 : i32
    return %c0_i32, %c0_i32_0 : i32, i32
  }
  func.func @transform_2(%arg0: i32) -> (i32, i32) {
    %c0_i32 = arith.constant 0 : i32
    %c0_i32_0 = arith.constant 0 : i32
    %c0_i32_1 = arith.constant 0 : i32
    return %c0_i32, %c0_i32_0 : i32, i32
  }
  func.func @transform_3(%arg0: i32) -> (i32, i32) {
    %c0_i32 = arith.constant 0 : i32
    %c0_i32_0 = arith.constant 0 : i32
    %c0_i32_1 = arith.constant 0 : i32
    return %c0_i32, %c0_i32_0 : i32, i32
  }
  func.func @transform_4(%arg0: i32) -> (i32, i32) {
    %c0_i32 = arith.constant 0 : i32
    %c0_i32_0 = arith.constant 0 : i32
    %c0_i32_1 = arith.constant 0 : i32
    return %c0_i32, %c0_i32_0 : i32, i32
  }
  func.func @transform_5(%arg0: i32) -> (i32, i32) {
    %c0_i32 = arith.constant 0 : i32
    %c0_i32_0 = arith.constant 0 : i32
    return %c0_i32, %arg0 : i32, i32
  }
  func.func @transform_6(%arg0: i32) -> (i32, i32) {
    %c0_i32 = arith.constant 0 : i32
    %c0_i32_0 = arith.constant 0 : i32
    return %c0_i32, %arg0 : i32, i32
  }
  func.func @transform_7(%arg0: i32) -> (i32, i32) {
    %c0_i32 = arith.constant 0 : i32
    %c0_i32_0 = arith.constant 0 : i32
    return %c0_i32, %arg0 : i32, i32
  }
}

</mosaic_0001>

<bundles_post_ra>
// kernel: generator_forward.1
= control target key start
LH: loop header
LB: loop body
LE: loop exit
PB: predicated region body
PF: predicated region fallthrough
CT: control target
= control target key end

     0   :  { %s9270_s0 = inlined_call_operand.hbm [shape: f32[2,100], index: 0, kind: input, shape index: {}]   ;;  %s9271_s1 = inlined_call_operand.hbm [shape: f32[100,256], index: 1, kind: input, shape index: {}]   ;;  %s9272_s2 = inlined_call_operand.hbm [shape: f32[1,256], index: 2, kind: input, shape index: {}]   ;;  %s9273_s3 = inlined_call_operand.hbm [shape: f32[256,512], index: 3, kind: input, shape index: {}]   ;;  %s9274_s4 = inlined_call_operand.hbm [shape: f32[1,512], index: 4, kind: input, shape index: {}]   ;;  %s9275_s5 = inlined_call_operand.hbm [shape: bf16[512,12288], index: 5, kind: input, shape index: {}]   ;;  %s9276_s6 = inlined_call_operand.hbm [shape: f32[1,12288], index: 6, kind: input, shape index: {}]   ;;  %s9277_s7 = inlined_call_operand.vmem [shape: f32[2,12288], index: 7, kind: output, shape index: {}]  }
   0x1   :  { %9287 = sst [smem:[#allocation17_spill]] %s9271_s1 }
   0x2   :  { %12 = vsyncpa [#allocation3], 0 }
   0x3   :  { %13 = vsyncpa [#allocation5], 0 }
   0x4   :  { %14 = vsyncpa [#allocation8], 0 }
   0x5   :  { %15 = vsyncpa [#allocation11], 0 }
   0x6   :  { %17 = vsyncpa [#allocation11 + $0x1], 0  ;;  %s8085_s24 = smov 0   ;;  %s8087_s25 = smov 0  }
   0x7   :  { %s8089_s26 = smov 0   ;;  %s8091_s27 = smov 0  }
   0x8 LB: > { %s8104_s28 = sadd.s32 4294967295, %s8027_s27   ;;  %p148_p0 = scmp.ne.s32.totalorder %s8019_s25, %s8015_s24  ;;  %s8027_s27 = sphi %s8091_s27, %s9312_s27   ;;  %s8023_s26 = sphi %s8089_s26, %s9311_s26   ;;  %s8019_s25 = sphi %s8087_s25, %s9310_s25   ;;  %s8015_s24 = sphi %s8085_s24, %s9309_s24  }
   0x9   : > { %p9278_p1 = scmp.eq.s32.totalorder %s8104_s28, 0  ;;  %p6846_p2 = scmp.ge.s32.totalorder %s8027_s27, 1 }
   0xa   : > { %p211_p3 = scmp.lt.s32.totalorder %s8027_s27, 5  ;;  %s8029_s8 = smov [#allocation4]  }
   0xb   : > { %p8112_p4 = por %p9278_p1, %p148_p0  ;;  %s234_s9 = sshll.u32 %s8029_s8, 4  ;;  %s235_s9 = int_to_ptr.vmem [resolvable:$true] %s234_s9 }
   0xc   : > { %p8116_p5 = pnand %p6846_p2, %p211_p3  ;;  %s8030_s11 = smov [#allocation7]  }
   0xd   : > { %s9288_s29 = scalar_select %p8112_p4, 1, 0 }
   0xe   : > { %s9289_s30 = scalar_select %p8116_p5, 1, 0 }
   0xf   : > { %p7665_p6 = pneg %p8116_p5  ;;  %s258_s12 = sshll.u32 %s8030_s11, 4  ;;  %s259_s12 = int_to_ptr.vmem [resolvable:$true] %s258_s12 }
  0x10   : > { %s7806_s14 = scalar_lea.vmem %s235_s9, 3328  ;;  %p7814_p12 = scmp.lt.s32.totalorder %s235_s9, %s235_s9 }
  0x11   : > { %p8124_p7 = pnand %p7665_p6, %p9278_p1  ;;  %p7807_p9 = scmp.ne.s32.totalorder %s235_s9, %s7806_s14 }
  0x12   : > { %p7815_p13 = scmp.lt.s32.totalorder %s7806_s14, %s7806_s14 }
  0x13   : > { %s9290_s10 = scalar_select %p8124_p7, 1, 0 }
  0x14   : > { %p8130_p8 = pneg %p8124_p7  ;;  %p7816_p0 = por %p7815_p13, %p7814_p12 }
  0x16   : > { %p7809_p10 = pnand %p7807_p9, %p8130_p8 }
  0x18   : > { %p7810_p11 = pneg %p7809_p10 }
  0x1a   : > { %p7817_p2 = pnand %p7816_p0, %p7810_p11 }
  0x1c   : > { %7820 = shalt.err (!%p7817_p2)
}
  0x1d   : > { %s8031_s15 = smov 256   ;;  %s8032_s16 = smov 16  }
  0x1e   : > { %s9292_s1 = sld [smem:[#allocation17_spill]]  ;;  %s7832_s19 = scalar_lea.vmem %s259_s12, 16384 }
  0x1f   : > { %p7833_p3 = scmp.ne.s32.totalorder %s259_s12, %s7832_s19  ;;  %p7840_p10 = scmp.lt.s32.totalorder %s259_s12, %s259_s12 }
  0x20   : > { %p7841_p1 = scmp.lt.s32.totalorder %s7832_s19, %s7832_s19 }
  0x21   : > { %p7835_p6 = pnand %p7833_p3, %p8130_p8 }
  0x22   : > { %p7842_p4 = por %p7841_p1, %p7840_p10 }
  0x23   : > { %p7836_p9 = pneg %p7835_p6 }
  0x24   : > { %7671 = dma.hbm_to_vmem [thread:$0]  (!%p8124_p7), %s9292_s1, 3328, %s235_s9, [#allocation5], %s8031_s15, %s8031_s15, %s8032_s16  }
  0x25   : > { %p7843_p12 = pnand %p7842_p4, %p7836_p9 }
  0x27   : > { %7846 = shalt.err (!%p7843_p12)
}
  0x28   : > { %s8033_s20 = smov 512   ;;  %s8034_s21 = smov 32  }
  0x29   : > { %7677 = dma.hbm_to_vmem [thread:$0]  (!%p8124_p7), %s9273_s3, 16384, %s259_s12, [#allocation8], %s8033_s20, %s8033_s20, %s8034_s21  }
  0x2a   : > { %s8149_s24 = sadd.s32 1, %s8027_s27   ;;  %s135_s9 = sadd.s32 1, %s8023_s26 }
  0x2b   : > { %s132_s8 = ssub.s32 %s8027_s27, %s8149_s24  ;;  %p142_p4 = scmp.ne.s32.totalorder %s8023_s26, %s8019_s25 }
  0x2c   : > { %p133_p1 = scmp.eq.s32.totalorder %s132_s8, 0  ;;  %p143_p11 = scmp.eq.s32.totalorder %s8027_s27, 0 }
  0x2d   : > { %p7693_p0 = scmp.lt.s32.totalorder %s8027_s27, 4  ;;  %s283_s14 = sand.u32 1, %s8027_s27  }
  0x2e   : > { %s8158_s11 = scalar_select %p133_p1, %s8023_s26, %s135_s9  }
  0x2f   : > { %p144_p13 = por %p143_p11, %p142_p4  ;;  %s9280_s15 = sand.u32 1, %s8023_s26  }
  0x30   : > { %s7637_s16 = smul.u32 6144, %s9280_s15  ;;  %s8177_s23 = scalar_lea.sflag [#allocation11], %s283_s14 }
  0x31   : > { %s7635_s17 = smul.u32 1536, %s8027_s27  ;;  %p8166_p2 = pnand %p7693_p0, %p144_p13 }
  0x32   : > { %s287_s21 = scalar_lea.vmem [#allocation10], %s7637_s16  ;;  %s7852_s12 = scalar_lea.hbm %s9275_s5, 393216 }
  0x33   : > { %s9293_s18 = scalar_select %p8166_p2, 1, 0 }
  0x34   : > { %s8173_s20 = scalar_lea.hbm %s9275_s5, %s7635_s17  ;;  %s294_s22 = sshll.u32 %s287_s21, 4  ;;  %s8175_s22 = int_to_ptr.vmem [resolvable:$true] %s294_s22 }
  0x35   : > { %s7847_s8 = scalar_lea.hbm %s8173_s20, 98304  ;;  %p9284_p6 = pneg %p8166_p2 }
  0x36   : > { %p7848_p3 = scmp.ne.s32.totalorder %s8173_s20, %s7847_s8  ;;  %p7853_p12 = scmp.lt.s32.totalorder %s8173_s20, %s9275_s5 }
  0x37   : > { %p7854_p1 = scmp.lt.s32.totalorder %s7852_s12, %s7847_s8 }
  0x38   : > { %p7850_p9 = pnand %p9284_p6, %p7848_p3 }
  0x39   : > { %p7855_p4 = por %p7854_p1, %p7853_p12 }
  0x3a   : > { %p7851_p10 = pneg %p7850_p9 }
  0x3c   : > { %p7856_p11 = pnand %p7855_p4, %p7851_p10 }
  0x3e   : > { %7859 = shalt.err (!%p7856_p11)
}
  0x3f   : > { %s7860_s14 = scalar_lea.vmem %s8175_s22, 98304  ;;  %s8035_s16 = smov [#allocation10]  }
  0x40   : > { %p7861_p13 = scmp.ne.s32.totalorder %s8175_s22, %s7860_s14  ;;  %s7865_s21 = sshll.u32 %s8035_s16, 4  ;;  %s7866_s21 = int_to_ptr.vmem [resolvable:$false] %s7865_s21 }
  0x41   : > { %s7867_s9 = scalar_lea.vmem %s7866_s21, 196608  ;;  %p7868_p9 = scmp.lt.s32.totalorder %s8175_s22, %s7866_s21 }
  0x42   : > { %p7863_p0 = pnand %p7861_p13, %p9284_p6  ;;  %p7869_p5 = scmp.lt.s32.totalorder %s7867_s9, %s7860_s14 }
  0x44   : > { %p7864_p3 = pneg %p7863_p0  ;;  %p7870_p7 = por %p7869_p5, %p7868_p9 }
  0x46   : > { %p7871_p12 = pnand %p7870_p7, %p7864_p3 }
  0x48   : > { %7874 = shalt.err (!%p7871_p12)
}
  0x49   : > { %s8036_s15 = smov 6144   ;;  %s8037_s8 = smov 1536  }
  0x4a   : > { %s8038_s17 = smov 96   ;;  %s8039_s12 = smov [#allocation2]  }
  0x4b   : > { %7684 = dma.hbm_to_vmem [thread:$0]  (!%p8166_p2), %s8173_s20, 98304, %s8175_s22, %s8177_s23, %s8036_s15, %s8037_s8, %s8038_s17  }
  0x4c   : > { %s224_s19 = sshll.u32 %s8039_s12, 4  ;;  %s8040_s16 = smov [#allocation6]   ;;  %s225_s19 = int_to_ptr.vmem [resolvable:$true] %s224_s19 }
  0x4d   : > { %s248_s1 = sshll.u32 %s8040_s16, 4  ;;  %s7886_s14 = scalar_lea.vmem %s225_s19, 32  ;;  %s249_s1 = int_to_ptr.vmem [resolvable:$true] %s248_s1 }
  0x4e   : > { %p7887_p5 = scmp.ne.s32.totalorder %s225_s19, %s7886_s14  ;;  %p7894_p1 = scmp.lt.s32.totalorder %s225_s19, %s225_s19 }
  0x4f   : > { %p7895_p4 = scmp.lt.s32.totalorder %s7886_s14, %s7886_s14 }
  0x50   : > { %p7889_p7 = pnand %p7887_p5, %p8130_p8 }
  0x51   : > { %p7896_p11 = por %p7895_p4, %p7894_p1 }
  0x52   : > { %p7890_p10 = pneg %p7889_p7 }
  0x54   : > { %p7897_p13 = pnand %p7896_p11, %p7890_p10 }
  0x56   : > { %7900 = shalt.err (!%p7897_p13)
}
  0x57   : > { %p9294_p0 = scmp.ne.s32.totalorder %s9290_s10, 0  ;;  %s7912_s22 = scalar_lea.vmem %s249_s1, 32 }
  0x58   : > { %p7913_p3 = scmp.ne.s32.totalorder %s249_s1, %s7912_s22  ;;  %p7920_p6 = scmp.lt.s32.totalorder %s249_s1, %s249_s1 }
  0x59   : > { %7668 = dma.hbm_to_vmem [thread:$0]  (!%p9294_p0), %s9270_s0, 32, %s225_s19, [#allocation3]  }
  0x5a   : > { %p7915_p9 = pnand %p7913_p3, %p8130_p8  ;;  %p7921_p5 = scmp.lt.s32.totalorder %s7912_s22, %s7912_s22 }
  0x5c   : > { %p7916_p12 = pneg %p7915_p9  ;;  %p7922_p7 = por %p7921_p5, %p7920_p6 }
  0x5e   : > { %p7923_p2 = pnand %p7922_p7, %p7916_p12 }
  0x60   : > { %7926 = shalt.err (!%p7923_p2)
}
  0x61   : > { %7674 = dma.hbm_to_vmem [thread:$0]  (!%p9294_p0), %s9272_s2, 32, %s249_s1, [#allocation5]  }
  0x62   : > { %s9295_s8 = sand.u32 1, %s8023_s26   ;;  %s8041_s12 = smov [#allocation9]  }
  0x63   : > { %s7638_s17 = smul.u32 24, %s9295_s8  ;;  %s272_s19 = sshll.u32 %s8041_s12, 4  ;;  %s273_s19 = int_to_ptr.vmem [resolvable:$true] %s272_s19 }
  0x64   : > { %s7636_s16 = smul.u32 384, %s8027_s27  ;;  %s7938_s14 = scalar_lea.vmem %s273_s19, 64 }
  0x65   : > { %p7939_p10 = scmp.ne.s32.totalorder %s273_s19, %s7938_s14  ;;  %p7946_p1 = scmp.lt.s32.totalorder %s273_s19, %s273_s19 }
  0x66   : > { %p7947_p4 = scmp.lt.s32.totalorder %s7938_s14, %s7938_s14 }
  0x67   : > { %p7941_p6 = pnand %p7939_p10, %p8130_p8 }
  0x68   : > { %p7948_p11 = por %p7947_p4, %p7946_p1 }
  0x69   : > { %p7942_p2 = pneg %p7941_p6 }
  0x6b   : > { %p7949_p13 = pnand %p7948_p11, %p7942_p2 }
  0x6d   : > { %7952 = shalt.err (!%p7949_p13)
}
  0x6e   : > { %7680 = dma.hbm_to_vmem [thread:$0]  (!%p9294_p0), %s9274_s4, 64, %s273_s19, [#allocation8]  }
  0x6f   : > { %s314_s22 = scalar_lea.hbm %s9276_s6, %s7636_s16  ;;  %s308_s9 = scalar_lea.vmem [#allocation12], %s7638_s17 }
  0x70   : > { %s316_s13 = sshll.u32 %s308_s9, 4  ;;  %s7953_s15 = scalar_lea.hbm %s314_s22, 384  ;;  %s317_s13 = int_to_ptr.vmem [resolvable:$true] %s316_s13 }
  0x71   : > { %p7954_p8 = scmp.ne.s32.totalorder %s314_s22, %s7953_s15  ;;  %p9296_p3 = scmp.ne.s32.totalorder %s9293_s18, 0 }
  0x72   : > { %s7958_s12 = scalar_lea.hbm %s9276_s6, 1536  ;;  %p7959_p0 = scmp.lt.s32.totalorder %s314_s22, %s9276_s6 }
  0x73   : > { %p9297_p9 = pneg %p9296_p3  ;;  %p7960_p7 = scmp.lt.s32.totalorder %s7958_s12, %s7953_s15 }
  0x75   : > { %p7956_p12 = pnand %p7954_p8, %p9297_p9  ;;  %p7961_p10 = por %p7960_p7, %p7959_p0 }
  0x77   : > { %p7957_p5 = pneg %p7956_p12 }
  0x79   : > { %p7962_p6 = pnand %p7961_p10, %p7957_p5 }
  0x7b   : > { %7965 = shalt.err (!%p7962_p6)
}
  0x7c   : > { %s7966_s17 = scalar_lea.vmem %s317_s13, 384  ;;  %p9298_p1 = pmov %p9297_p9 }
  0x7d   : > { %p7967_p2 = scmp.ne.s32.totalorder %s317_s13, %s7966_s17  ;;  %s8042_s19 = smov [#allocation12]  }
  0x7e   : > { %s7971_s16 = sshll.u32 %s8042_s19, 4  ;;  %s7972_s16 = int_to_ptr.vmem [resolvable:$false] %s7971_s16 }
  0x7f   : > { %p7969_p4 = pnand %p7967_p2, %p9298_p1  ;;  %s7973_s1 = scalar_lea.vmem %s7972_s16, 768 }
  0x80   : > { %p7974_p13 = scmp.lt.s32.totalorder %s317_s13, %s7972_s16  ;;  %p7975_p8 = scmp.lt.s32.totalorder %s7973_s1, %s7966_s17 }
  0x81   : > { %p7970_p11 = pneg %p7969_p4 }
  0x82   : > { %p7976_p9 = por %p7975_p8, %p7974_p13 }
  0x84   : > { %p7977_p12 = pnand %p7976_p9, %p7970_p11 }
  0x86   : > { %7980 = shalt.err (!%p7977_p12)
}
  0x87   : > { %7687 = dma.hbm_to_vmem [thread:$0]  (!%p9296_p3), %s314_s22, 384, %s317_s13, %s8177_s23  }
  0x88   : > { %p9299_p5 = scmp.ne.s32.totalorder %s9289_s30, 0 }
  0x89   : > { %p9300_p0 = scmp.eq.s32.totalorder (!%p9299_p5), %s8104_s28, 0 }
  0x8a   : > { %325 = sbr.rel (%p9299_p5) target bundleno = 1508 (0x5e4), region = 48 }
  0x8f   : > { %7998 = dma.done.wait (%p9300_p0), [#allocation3], 32   ;;  %p9301_p7 = pmov %p9300_p0 }
  0x90   : > { %p9302_p10 = pmov %p9300_p0 }
  0x91   : > { %8000 = vsyncadd (%p9301_p7), [#allocation3], 4294967264 }
  0x92   : > { %8002 = dma.done.wait (%p9302_p10), [#allocation5], 3360   ;;  %p9303_p6 = pmov %p9300_p0 }
  0x93   : > { %p9304_p2 = pmov %p9300_p0 }
  0x94   : > { %8004 = vsyncadd (%p9303_p6), [#allocation5], 4294963936 }
  0x95   : > { %8006 = dma.done.wait (%p9304_p2), [#allocation8], 16448   ;;  %p9305_p3 = pmov %p9300_p0 }
  0x96   : > { %s347_s30 = sand.u32 1, %s8104_s28   ;;  %s349_s18 = sand.u32 1, %s8019_s25  }
  0x97   : > { %8008 = vsyncadd (%p9305_p3), [#allocation8], 4294950848  ;;  %s7639_s23 = smul.u32 6144, %s349_s18  ;;  %s348_s20 = scalar_lea.sflag [#allocation11], %s347_s30 }
  0x98   : > { %p9306_p1 = scmp.ne.s32.totalorder %s9288_s29, 0 }
  0x99   : > { %s8264_s27 = scalar_lea.vmem [#allocation10], %s7639_s23 }
  0x9a   : > { %8010 = dma.done.wait (%p9306_p1), %s348_s20, 98688  }
  0x9b   : > { %8012 = vsyncadd (%p9306_p1), %s348_s20, 4294868608  ;;  %v8043_v0 = vmov 0.0   ;;  %vm447_vm0 = vcmask 1043456   ;;  %v430_v1 = vld [vmem:[#allocation4 + $0xc8] sm:$0xf]  ;;  %v428_v3 = vld [vmem:[#allocation4 + $0xb8] sm:$0xff] }
  0x9c   : > { %518 = vmatprep.mubr.f32.mxu0 %v8043_v0  ;;  %v429_v2 = vld [vmem:[#allocation4 + $0xc0] sm:$0xf]  ;;  %6862 = vmatprep.subr.msk.mxu0 %vm447_vm0, %v430_v1  ;;  %v427_v4 = vld [vmem:[#allocation4 + $0xb0] sm:$0xff]  ;;  %v426_v5 = vld [vmem:[#allocation4 + $0xa8] sm:$0xff]  ;;  %vm443_vm1 = vcmask 818176   ;;  %s7640_s29 = smul.u32 24, %s349_s18 }
  0x9d   : > { %6863 = vmatpush1.msk.msra.mxu0 %vm447_vm0, %v429_v2  ;;  %v425_v6 = vld [vmem:[#allocation4 + $0xa0] sm:$0xff]  ;;  %v424_v7 = vld [vmem:[#allocation4 + $0x98] sm:$0xff]  ;;  %v423_v8 = vld [vmem:[#allocation4 + $0x90] sm:$0xff]  ;;  %s398_s9 = smul.u32 24, %s8104_s28 }
  0x9e   : > { %462 = vmatprep.subr.mxu0 %v428_v3  ;;  %v422_v9 = vld [vmem:[#allocation4 + $0x88] sm:$0xff]  ;;  %v421_v10 = vld [vmem:[#allocation4 + $0x80] sm:$0xff]  ;;  %v420_v11 = vld [vmem:[#allocation4 + $0x78] sm:$0xff]  ;;  %s8574_s22 = scalar_lea.vmem [#allocation12], %s7640_s29 }
  0x9f   : > { %463 = vmatpush1.msra.mxu0 %v427_v4  ;;  %v419_v12 = vld [vmem:[#allocation4 + $0x70] sm:$0xff]  ;;  %v588_v13 = vld [vmem:[#allocation7 + $0x1e8] sm:$0xff]  ;;  %v418_v15 = vld [vmem:[#allocation4 + $0x68] sm:$0xff]  ;;  %p8686_p4 = scmp.lt.s32.totalorder %s398_s9, 95 }
  0xa0   : > { %464 = vmatprep.subr.mxu0 %v426_v5  ;;  %v587_v14 = vld [vmem:[#allocation7 + $0x1e0] sm:$0xff]  ;;  %677 = vmatprep.subr.mxu1 %v588_v13  ;;  %v584_v16 = vld [vmem:[#allocation7 + $0x1c8] sm:$0xff]  ;;  %v414_v24 = vld [vmem:[#allocation4 + $0x48] sm:$0xff] }
  0xa1   : > { %465 = vmatpush1.msra.mxu0 %v425_v6  ;;  %v417_v17 = vld [vmem:[#allocation4 + $0x60] sm:$0xff]  ;;  %678 = vmatpush1.msra.mxu1 %v587_v14  ;;  %v583_v18 = vld [vmem:[#allocation7 + $0x1c0] sm:$0xff]  ;;  %v410_v32 = vld [vmem:[#allocation4 + $0x28] sm:$0xff]  ;;  %s9314_s9 = smov (!%p8686_p4, %s398_s9), 95 }
  0xa2   : > { %466 = vmatprep.subr.mxu0 %v424_v7  ;;  %v580_v19 = vld [vmem:[#allocation7 + $0x1a8] sm:$0xff]  ;;  %679 = vmatprep.subr.mxu1 %v584_v16  ;;  %v579_v21 = vld [vmem:[#allocation7 + $0x1a0] sm:$0xff]  ;;  %v406_v40 = vld [vmem:[#allocation4 + $0x8] sm:$0xff]  ;;  %s6861_s13 = sshll.u32 %s9314_s9, 1 }
  0xa3   : > { %467 = vmatpush1.msra.mxu0 %v423_v8  ;;  %v416_v20 = vld [vmem:[#allocation4 + $0x58] sm:$0xff]  ;;  %v415_v22 = vld [vmem:[#allocation4 + $0x50] sm:$0xff]  ;;  %680 = vmatpush1.msra.mxu1 %v583_v18  ;;  %v413_v26 = vld [vmem:[#allocation4 + $0x40] sm:$0xff]  ;;  %s8716_s10 = scalar_lea.vmem %s9277_s7, %s6861_s13 }
  0xa4   : > { %468 = vmatprep.subr.mxu0 %v422_v9  ;;  %v576_v23 = vld [vmem:[#allocation7 + $0x188] sm:$0xff]  ;;  %681 = vmatprep.subr.mxu1 %v580_v19  ;;  %v575_v25 = vld [vmem:[#allocation7 + $0x180] sm:$0xff]  ;;  %v590_v45 = vld [vmem:[#allocation7 + $0x1f8] sm:$0xff] }
  0xa5   : > { %469 = vmatpush1.msra.mxu0 %v421_v10  ;;  %682 = vmatpush1.msra.mxu1 %v579_v21  ;;  %v572_v27 = vld [vmem:[#allocation7 + $0x168] sm:$0xff]  ;;  %v571_v29 = vld [vmem:[#allocation7 + $0x160] sm:$0xff]  ;;  %v589_v46 = vld [vmem:[#allocation7 + $0x1f0] sm:$0xff] }
  0xa6   : > { %470 = vmatprep.subr.mxu0 %v420_v11  ;;  %v412_v28 = vld [vmem:[#allocation4 + $0x38] sm:$0xff]  ;;  %683 = vmatprep.subr.mxu1 %v576_v23  ;;  %v411_v30 = vld [vmem:[#allocation4 + $0x30] sm:$0xff]  ;;  %v409_v34 = vld [vmem:[#allocation4 + $0x20] sm:$0xff] }
  0xa7   : > { %471 = vmatpush1.msra.mxu0 %v419_v12  ;;  %684 = vmatpush1.msra.mxu1 %v575_v25  ;;  %v568_v31 = vld [vmem:[#allocation7 + $0x148] sm:$0xff]  ;;  %v567_v33 = vld [vmem:[#allocation7 + $0x140] sm:$0xff]  ;;  %v586_v48 = vld [vmem:[#allocation7 + $0x1d8] sm:$0xff] }
  0xa8   : > { %472 = vmatprep.subr.mxu0 %v418_v15  ;;  %685 = vmatprep.subr.mxu1 %v572_v27  ;;  %v564_v35 = vld [vmem:[#allocation7 + $0x128] sm:$0xff]  ;;  %v563_v37 = vld [vmem:[#allocation7 + $0x120] sm:$0xff]  ;;  %v585_v50 = vld [vmem:[#allocation7 + $0x1d0] sm:$0xff] }
  0xa9   : > { %473 = vmatpush1.msra.mxu0 %v417_v17  ;;  %686 = vmatpush1.msra.mxu1 %v571_v29  ;;  %v408_v36 = vld [vmem:[#allocation4 + $0x18] sm:$0xff]  ;;  %v407_v38 = vld [vmem:[#allocation4 + $0x10] sm:$0xff]  ;;  %v405_v42 = vld [vmem:[#allocation4] sm:$0xff] }
  0xaa   : > { %474 = vmatprep.subr.mxu0 %v416_v20  ;;  %687 = vmatprep.subr.mxu1 %v568_v31  ;;  %v560_v39 = vld [vmem:[#allocation7 + $0x108] sm:$0xff]  ;;  %v559_v41 = vld [vmem:[#allocation7 + $0x100] sm:$0xff]  ;;  %v582_v52 = vld [vmem:[#allocation7 + $0x1b8] sm:$0xff] }
  0xab   : > { %475 = vmatpush1.msra.mxu0 %v415_v22  ;;  %688 = vmatpush1.msra.mxu1 %v567_v33  ;;  %v556_v43 = vld [vmem:[#allocation7 + $0xe8] sm:$0xff]  ;;  %v555_v47 = vld [vmem:[#allocation7 + $0xe0] sm:$0xff]  ;;  %v581_v54 = vld [vmem:[#allocation7 + $0x1b0] sm:$0xff] }
  0xac   : > { %476 = vmatprep.subr.mxu0 %v414_v24  ;;  %689 = vmatprep.subr.mxu1 %v564_v35  ;;  %v404_v44 = vld [vmem:[#allocation2] sm:$0x3]  ;;  %v551_v51 = vld [vmem:[#allocation7 + $0xc0] sm:$0xff]  ;;  %v578_v56 = vld [vmem:[#allocation7 + $0x198] sm:$0xff] }
  0xad   : > { %477 = vmatpush1.msra.mxu0 %v413_v26  ;;  %690 = vmatpush1.msra.mxu1 %v563_v37  ;;  %v552_v49 = vld [vmem:[#allocation7 + $0xc8] sm:$0xff]  ;;  %v547_v55 = vld [vmem:[#allocation7 + $0xa0] sm:$0xff]  ;;  %v577_v58 = vld [vmem:[#allocation7 + $0x190] sm:$0xff] }
  0xae   : > { %478 = vmatprep.subr.mxu0 %v412_v28  ;;  %691 = vmatprep.subr.mxu1 %v560_v39  ;;  %v548_v53 = vld [vmem:[#allocation7 + $0xa8] sm:$0xff]  ;;  %v543_v59 = vld [vmem:[#allocation7 + $0x80] sm:$0xff]  ;;  %v574_v60 = vld [vmem:[#allocation7 + $0x178] sm:$0xff] }
  0xaf   : > { %479 = vmatpush1.msra.mxu0 %v411_v30  ;;  %692 = vmatpush1.msra.mxu1 %v559_v41  ;;  %v544_v57 = vld [vmem:[#allocation7 + $0x88] sm:$0xff]  ;;  %v573_v62 = vld [vmem:[#allocation7 + $0x170] sm:$0xff]  ;;  %v539_v63 = vld [vmem:[#allocation7 + $0x60] sm:$0xff] }
  0xb0   : > { %480 = vmatprep.subr.mxu0 %v410_v32  ;;  %693 = vmatprep.subr.mxu1 %v556_v43  ;;  %v540_v61 = vld [vmem:[#allocation7 + $0x68] sm:$0xff]  ;;  %v570_v0 = vld [vmem:[#allocation7 + $0x158] sm:$0xff]  ;;  %v569_v2 = vld [vmem:[#allocation7 + $0x150] sm:$0xff] }
  0xb1   : > { %481 = vmatpush1.msra.mxu0 %v409_v34  ;;  %694 = vmatpush1.msra.mxu1 %v555_v47  ;;  %v536_v1 = vld [vmem:[#allocation7 + $0x48] sm:$0xff]  ;;  %v535_v3 = vld [vmem:[#allocation7 + $0x40] sm:$0xff]  ;;  %v566_v4 = vld [vmem:[#allocation7 + $0x138] sm:$0xff] }
  0xb2   : > { %482 = vmatprep.subr.mxu0 %v408_v36  ;;  %695 = vmatprep.subr.mxu1 %v552_v49  ;;  %v532_v5 = vld [vmem:[#allocation7 + $0x28] sm:$0xff]  ;;  %v565_v6 = vld [vmem:[#allocation7 + $0x130] sm:$0xff]  ;;  %v531_v7 = vld [vmem:[#allocation7 + $0x20] sm:$0xff] }
  0xb3   : > { %483 = vmatpush1.msra.mxu0 %v407_v38  ;;  %696 = vmatpush1.msra.mxu1 %v551_v51  ;;  %v562_v8 = vld [vmem:[#allocation7 + $0x118] sm:$0xff]  ;;  %v528_v9 = vld [vmem:[#allocation7 + $0x8] sm:$0xff]  ;;  %v561_v10 = vld [vmem:[#allocation7 + $0x110] sm:$0xff] }
  0xb4   : > { %484 = vmatprep.subr.mxu0 %v406_v40  ;;  %697 = vmatprep.subr.mxu1 %v548_v53  ;;  %v527_v11 = vld [vmem:[#allocation7] sm:$0xff]  ;;  %v558_v12 = vld [vmem:[#allocation7 + $0xf8] sm:$0xff]  ;;  %v652_v13 = vld [vmem:[#allocation7 + $0x3e8] sm:$0xff] }
  0xb5   : > { %485 = vmatpush1.msra.mxu0 %v405_v42  ;;  %698 = vmatpush1.msra.mxu1 %v547_v55  ;;  %v557_v14 = vld [vmem:[#allocation7 + $0xf0] sm:$0xff]  ;;  %v651_v15 = vld [vmem:[#allocation7 + $0x3e0] sm:$0xff]  ;;  %v554_v16 = vld [vmem:[#allocation7 + $0xd8] sm:$0xff] }
  0xb6   : > { %6864 = vmatmul.mubr.msk.f32.vlgmr.msra.gmra.mxu0 %vm443_vm1, %v404_v44  ;;  %748 = vmatprep.subr.mxu0 %v590_v45  ;;  %v648_v17 = vld [vmem:[#allocation7 + $0x3c8] sm:$0xff]  ;;  %v553_v18 = vld [vmem:[#allocation7 + $0xd0] sm:$0xff]  ;;  %v647_v19 = vld [vmem:[#allocation7 + $0x3c0] sm:$0xff] }
  0xb7   : > { %749 = vmatpush1.msra.mxu0 %v589_v46  ;;  %699 = vmatprep.subr.mxu1 %v544_v57  ;;  %v550_v20 = vld [vmem:[#allocation7 + $0xb8] sm:$0xff]  ;;  %v644_v21 = vld [vmem:[#allocation7 + $0x3a8] sm:$0xff]  ;;  %v549_v22 = vld [vmem:[#allocation7 + $0xb0] sm:$0xff] }
  0xb8   : > { %750 = vmatprep.subr.mxu0 %v586_v48  ;;  %700 = vmatpush1.msra.mxu1 %v543_v59  ;;  %v643_v23 = vld [vmem:[#allocation7 + $0x3a0] sm:$0xff]  ;;  %v546_v24 = vld [vmem:[#allocation7 + $0x98] sm:$0xff]  ;;  %v640_v25 = vld [vmem:[#allocation7 + $0x388] sm:$0xff] }
  0xb9   : > { %751 = vmatpush1.msra.mxu0 %v585_v50  ;;  %701 = vmatprep.subr.mxu1 %v540_v61  ;;  %v545_v26 = vld [vmem:[#allocation7 + $0x90] sm:$0xff]  ;;  %v639_v27 = vld [vmem:[#allocation7 + $0x380] sm:$0xff]  ;;  %v542_v28 = vld [vmem:[#allocation7 + $0x78] sm:$0xff] }
  0xba   : > { %752 = vmatprep.subr.mxu0 %v582_v52  ;;  %702 = vmatpush1.msra.mxu1 %v539_v63  ;;  %v636_v29 = vld [vmem:[#allocation7 + $0x368] sm:$0xff]  ;;  %v541_v30 = vld [vmem:[#allocation7 + $0x70] sm:$0xff]  ;;  %v635_v31 = vld [vmem:[#allocation7 + $0x360] sm:$0xff] }
  0xbb   : > { %753 = vmatpush1.msra.mxu0 %v581_v54  ;;  %703 = vmatprep.subr.mxu1 %v536_v1  ;;  %v538_v32 = vld [vmem:[#allocation7 + $0x58] sm:$0xff]  ;;  %v632_v33 = vld [vmem:[#allocation7 + $0x348] sm:$0xff]  ;;  %v537_v34 = vld [vmem:[#allocation7 + $0x50] sm:$0xff] }
  0xbc   : > { %754 = vmatprep.subr.mxu0 %v578_v56  ;;  %704 = vmatpush1.msra.mxu1 %v535_v3  ;;  %v631_v35 = vld [vmem:[#allocation7 + $0x340] sm:$0xff]  ;;  %v534_v36 = vld [vmem:[#allocation7 + $0x38] sm:$0xff]  ;;  %v628_v37 = vld [vmem:[#allocation7 + $0x328] sm:$0xff] }
  0xbd   : > { %755 = vmatpush1.msra.mxu0 %v577_v58  ;;  %705 = vmatprep.subr.mxu1 %v532_v5  ;;  %v533_v38 = vld [vmem:[#allocation7 + $0x30] sm:$0xff]  ;;  %v627_v39 = vld [vmem:[#allocation7 + $0x320] sm:$0xff]  ;;  %v530_v40 = vld [vmem:[#allocation7 + $0x18] sm:$0xff] }
  0xbe   : > { %756 = vmatprep.subr.mxu0 %v574_v60  ;;  %706 = vmatpush1.msra.mxu1 %v531_v7  ;;  %v624_v41 = vld [vmem:[#allocation7 + $0x308] sm:$0xff]  ;;  %v529_v42 = vld [vmem:[#allocation7 + $0x10] sm:$0xff]  ;;  %v623_v43 = vld [vmem:[#allocation7 + $0x300] sm:$0xff] }
  0xbf   : > { %757 = vmatpush1.msra.mxu0 %v573_v62  ;;  %707 = vmatprep.subr.mxu1 %v528_v9  ;;  %v654_v44 = vld [vmem:[#allocation7 + $0x3f8] sm:$0xff]  ;;  %v620_v45 = vld [vmem:[#allocation7 + $0x2e8] sm:$0xff]  ;;  %v653_v46 = vld [vmem:[#allocation7 + $0x3f0] sm:$0xff] }
  0xc0   : > { %758 = vmatprep.subr.mxu0 %v570_v0  ;;  %708 = vmatpush1.msra.mxu1 %v527_v11  ;;  %v619_v47 = vld [vmem:[#allocation7 + $0x2e0] sm:$0xff]  ;;  %v650_v48 = vld [vmem:[#allocation7 + $0x3d8] sm:$0xff]  ;;  %v616_v49 = vld [vmem:[#allocation7 + $0x2c8] sm:$0xff] }
  0xc1   : > { %759 = vmatpush1.msra.mxu0 %v569_v2  ;;  %709 = vmatprep.subr.mxu1 %v652_v13  ;;  %v649_v50 = vld [vmem:[#allocation7 + $0x3d0] sm:$0xff]  ;;  %v615_v51 = vld [vmem:[#allocation7 + $0x2c0] sm:$0xff]  ;;  %v646_v52 = vld [vmem:[#allocation7 + $0x3b8] sm:$0xff] }
  0xc2   : > { %760 = vmatprep.subr.mxu0 %v566_v4  ;;  %710 = vmatpush2.msra.mxu1 %v651_v15  ;;  %v612_v53 = vld [vmem:[#allocation7 + $0x2a8] sm:$0xff]  ;;  %v645_v54 = vld [vmem:[#allocation7 + $0x3b0] sm:$0xff]  ;;  %v611_v55 = vld [vmem:[#allocation7 + $0x2a0] sm:$0xff] }
  0xc3   : > { %761 = vmatpush1.msra.mxu0 %v565_v6  ;;  %711 = vmatprep.subr.mxu1 %v648_v17  ;;  %v642_v56 = vld [vmem:[#allocation7 + $0x398] sm:$0xff]  ;;  %v608_v57 = vld [vmem:[#allocation7 + $0x288] sm:$0xff]  ;;  %v641_v58 = vld [vmem:[#allocation7 + $0x390] sm:$0xff] }
  0xc4   : > { %762 = vmatprep.subr.mxu0 %v562_v8  ;;  %712 = vmatpush2.msra.mxu1 %v647_v19  ;;  %v607_v59 = vld [vmem:[#allocation7 + $0x280] sm:$0xff]  ;;  %v638_v60 = vld [vmem:[#allocation7 + $0x378] sm:$0xff]  ;;  %v637_v61 = vld [vmem:[#allocation7 + $0x370] sm:$0xff] }
  0xc5   : > { %763 = vmatpush1.msra.mxu0 %v561_v10  ;;  %713 = vmatprep.subr.mxu1 %v644_v21  ;;  %v634_v62 = vld [vmem:[#allocation7 + $0x358] sm:$0xff]  ;;  %v633_v63 = vld [vmem:[#allocation7 + $0x350] sm:$0xff] }
  0xc6   : > { %764 = vmatprep.subr.mxu0 %v558_v12  ;;  %714 = vmatpush2.msra.mxu1 %v643_v23  ;;  %v630_v0 = vld [vmem:[#allocation7 + $0x338] sm:$0xff]  ;;  %v629_v1 = vld [vmem:[#allocation7 + $0x330] sm:$0xff]  ;;  %v604_v12 = vld [vmem:[#allocation7 + $0x268] sm:$0xff] }
  0xc7   : > { %765 = vmatpush1.msra.mxu0 %v557_v14  ;;  %715 = vmatprep.subr.mxu1 %v640_v25  ;;  %v626_v2 = vld [vmem:[#allocation7 + $0x318] sm:$0xff]  ;;  %v625_v3 = vld [vmem:[#allocation7 + $0x310] sm:$0xff]  ;;  %v603_v14 = vld [vmem:[#allocation7 + $0x260] sm:$0xff] }
  0xc8   : > { %766 = vmatprep.subr.mxu0 %v554_v16  ;;  %716 = vmatpush2.msra.mxu1 %v639_v27  ;;  %v622_v4 = vld [vmem:[#allocation7 + $0x2f8] sm:$0xff]  ;;  %v621_v5 = vld [vmem:[#allocation7 + $0x2f0] sm:$0xff]  ;;  %v600_v16 = vld [vmem:[#allocation7 + $0x248] sm:$0xff] }
  0xc9   : > { %767 = vmatpush1.msra.mxu0 %v553_v18  ;;  %717 = vmatprep.subr.mxu1 %v636_v29  ;;  %v618_v6 = vld [vmem:[#allocation7 + $0x2d8] sm:$0xff]  ;;  %v617_v7 = vld [vmem:[#allocation7 + $0x2d0] sm:$0xff]  ;;  %v599_v18 = vld [vmem:[#allocation7 + $0x240] sm:$0xff] }
  0xca   : > { %768 = vmatprep.subr.mxu0 %v550_v20  ;;  %718 = vmatpush2.msra.mxu1 %v635_v31  ;;  %v614_v8 = vld [vmem:[#allocation7 + $0x2b8] sm:$0xff]  ;;  %v613_v9 = vld [vmem:[#allocation7 + $0x2b0] sm:$0xff]  ;;  %v596_v20 = vld [vmem:[#allocation7 + $0x228] sm:$0xff] }
  0xcb   : > { %769 = vmatpush1.msra.mxu0 %v549_v22  ;;  %719 = vmatprep.subr.mxu1 %v632_v33  ;;  %v610_v10 = vld [vmem:[#allocation7 + $0x298] sm:$0xff]  ;;  %v609_v11 = vld [vmem:[#allocation7 + $0x290] sm:$0xff]  ;;  %v595_v22 = vld [vmem:[#allocation7 + $0x220] sm:$0xff] }
  0xcc   : > { %770 = vmatprep.subr.mxu0 %v546_v24  ;;  %720 = vmatpush2.msra.mxu1 %v631_v35  ;;  %v606_v13 = vld [vmem:[#allocation7 + $0x278] sm:$0xff]  ;;  %v605_v15 = vld [vmem:[#allocation7 + $0x270] sm:$0xff]  ;;  %v592_v24 = vld [vmem:[#allocation7 + $0x208] sm:$0xff] }
  0xcd   : > { %771 = vmatpush1.msra.mxu0 %v545_v26  ;;  %721 = vmatprep.subr.mxu1 %v628_v37  ;;  %v602_v17 = vld [vmem:[#allocation7 + $0x258] sm:$0xff]  ;;  %v601_v19 = vld [vmem:[#allocation7 + $0x250] sm:$0xff]  ;;  %v591_v26 = vld [vmem:[#allocation7 + $0x200] sm:$0xff] }
  0xce   : > { %772 = vmatprep.subr.mxu0 %v542_v28  ;;  %722 = vmatpush2.msra.mxu1 %v627_v39  ;;  %v598_v21 = vld [vmem:[#allocation7 + $0x238] sm:$0xff]  ;;  %v597_v23 = vld [vmem:[#allocation7 + $0x230] sm:$0xff]  ;;  %v995_v28 = vld [vmem:[%s8264_s27 + $0x540] sm:$0xff] }
  0xcf   : > { %773 = vmatpush1.msra.mxu0 %v541_v30  ;;  %723 = vmatprep.subr.mxu1 %v624_v41  ;;  %v594_v25 = vld [vmem:[#allocation7 + $0x218] sm:$0xff]  ;;  %v593_v27 = vld [vmem:[#allocation7 + $0x210] sm:$0xff]  ;;  %v1007_v29 = vld [vmem:[%s8264_s27 + $0x5a0] sm:$0xff] }
  0xd0   : > { %774 = vmatprep.subr.mxu0 %v538_v32  ;;  %724 = vmatpush2.msra.mxu1 %v623_v43  ;;  %v1379_v30 = vld [vmem:[%s8264_s27 + $0x1140] sm:$0xff]  ;;  %v7033_v31 = vcombine.low %v995_v28, %v1007_v29  ;;  %v7034_v32 = vcombine.high %v995_v28, %v1007_v29  ;;  %v431_v39 = vld [vmem:[#allocation6] sm:$0x3] }
  0xd1   : > { %775 = vmatpush1.msra.mxu0 %v537_v34  ;;  %725 = vmatprep.subr.mxu1 %v620_v45  ;;  %v1391_v33 = vld [vmem:[%s8264_s27 + $0x11a0] sm:$0xff] }
  0xd2   : > { %776 = vmatprep.subr.mxu0 %v534_v36  ;;  %726 = vmatpush2.msra.mxu1 %v619_v47  ;;  %v7417_v34 = vcombine.low %v1379_v30, %v1391_v33  ;;  %v7418_v35 = vcombine.high %v1379_v30, %v1391_v33  ;;  %v433_v36 = vlaneseq  ;;  %v1211_v33 = vld [vmem:[%s8264_s27 + $0xc00] sm:$0xff] }
  0xd3   : > { %777 = vmatpush1.msra.mxu0 %v533_v38  ;;  %727 = vmatprep.subr.mxu1 %v616_v49  ;;  %v1355_v49 = vld [vmem:[%s8264_s27 + $0x1080] sm:$0xff] }
  0xd4   : > { %778 = vmatprep.subr.mxu0 %v530_v40  ;;  %728 = vmatpush2.msra.mxu1 %v615_v51  ;;  %v8274_v37 = vshrl.u32 %v433_v36, 7 }
  0xd5   : > { %779 = vmatpush1.msra.mxu0 %v529_v42  ;;  %729 = vmatprep.subr.mxu1 %v612_v53 }
  0xd6   : > { %780 = vmatprep.subr.mxu0 %v654_v44  ;;  %730 = vmatpush2.msra.mxu1 %v611_v55  ;;  %v8277_v38 = vsub.s32 0, %v8274_v37  ;;  %v8280_v40 = vsub.s32 1, %v8274_v37  ;;  %v947_v55 = vld [vmem:[%s8264_s27 + $0x3c0] sm:$0xff] }
  0xd7   : > { %781 = vmatpush2.msra.mxu0 %v653_v46  ;;  %731 = vmatprep.subr.mxu1 %v608_v57  ;;  %v971_v46 = vld [vmem:[%s8264_s27 + $0x480] sm:$0xff] }
  0xd8   : > { %782 = vmatprep.subr.mxu0 %v650_v48  ;;  %732 = vmatpush2.msra.mxu1 %v607_v59  ;;  %v436_v41 = vrot.slane %v431_v39, %v8277_v38  ;;  %v440_v42 = vrot.slane %v431_v39, %v8280_v40  ;;  %v983_v48 = vld [vmem:[%s8264_s27 + $0x4e0] sm:$0xff] }
  0xd9   : > { %783 = vmatpush2.msra.mxu0 %v649_v50  ;;  %733 = vmatprep.subr.mxu1 %v604_v12  ;;  %v1367_v50 = vld [vmem:[%s8264_s27 + $0x10e0] sm:$0xff]  ;;  %v7010_v53 = vcombine.high %v971_v46, %v983_v48  ;;  %v7009_v59 = vcombine.low %v971_v46, %v983_v48 }
  0xda   : > { %784 = vmatprep.subr.mxu0 %v646_v52  ;;  %734 = vmatpush2.msra.mxu1 %v603_v14  ;;  %v1331_v57 = vld [vmem:[%s8264_s27 + $0xfc0] sm:$0xff] }
  0xdb   : > { %785 = vmatpush2.msra.mxu0 %v645_v54  ;;  %735 = vmatprep.subr.mxu1 %v600_v16  ;;  %v7394_v54 = vcombine.high %v1355_v49, %v1367_v50  ;;  %v887_v16 = vld [vmem:[%s8264_s27 + $0x1e0] sm:$0xff] }
  0xdc   : > { %786 = vmatprep.subr.mxu0 %v642_v56  ;;  %736 = vmatpush2.msra.mxu1 %v599_v18  ;;  %v959_v56 = vld [vmem:[%s8264_s27 + $0x420] sm:$0xff] }
  0xdd   : > { %787 = vmatpush2.msra.mxu0 %v641_v58  ;;  %737 = vmatprep.subr.mxu1 %v596_v20  ;;  %v1343_v58 = vld [vmem:[%s8264_s27 + $0x1020] sm:$0xff] }
  0xde   : > { %788 = vmatprep.subr.mxu0 %v638_v60  ;;  %738 = vmatpush2.msra.mxu1 %v595_v22  ;;  %v7393_v60 = vcombine.low %v1355_v49, %v1367_v50  ;;  %v1271_v18 = vld [vmem:[%s8264_s27 + $0xde0] sm:$0xff] }
  0xdf   : > { %789 = vmatpush2.msra.mxu0 %v637_v61  ;;  %739 = vmatprep.subr.mxu1 %v592_v24  ;;  %v6986_v61 = vcombine.high %v947_v55, %v959_v56  ;;  %v863_v24 = vld [vmem:[%s8264_s27 + $0x120] sm:$0xff] }
  0xe0   : > { %790 = vmatprep.subr.mxu0 %v634_v62  ;;  %740 = vmatpush2.msra.mxu1 %v591_v26  ;;  %v7370_v62 = vcombine.high %v1331_v57, %v1343_v58  ;;  %v1247_v26 = vld [vmem:[%s8264_s27 + $0xd20] sm:$0xff] }
  0xe1   : > { %791 = vmatpush2.msra.mxu0 %v633_v63  ;;  %5561 = vmatprep.subr.bf16.mxu1 %v7034_v32  ;;  %v923_v63 = vld [vmem:[%s8264_s27 + $0x300] sm:$0xff] }
  0xe2   : > { %792 = vmatprep.subr.mxu0 %v630_v0  ;;  %v935_v0 = vld [vmem:[%s8264_s27 + $0x360] sm:$0xff] }
  0xe3   : > { %793 = vmatpush2.msra.mxu0 %v629_v1  ;;  %v1307_v1 = vld [vmem:[%s8264_s27 + $0xf00] sm:$0xff] }
  0xe4   : > { %794 = vmatprep.subr.mxu0 %v626_v2  ;;  %v1319_v2 = vld [vmem:[%s8264_s27 + $0xf60] sm:$0xff] }
  0xe5   : > { %795 = vmatpush2.msra.mxu0 %v625_v3  ;;  %v6985_v3 = vcombine.low %v947_v55, %v959_v56  ;;  %v7345_v12 = vcombine.low %v1307_v1, %v1319_v2  ;;  %v839_v32 = vld [vmem:[%s8264_s27 + $0x60] sm:$0xff] }
  0xe6   : > { %796 = vmatprep.subr.mxu0 %v622_v4  ;;  %v7369_v4 = vcombine.low %v1331_v57, %v1343_v58  ;;  %v1163_v50 = vld [vmem:[%s8264_s27 + $0xa80] sm:$0xff] }
  0xe7   : > { %797 = vmatpush2.msra.mxu0 %v621_v5  ;;  %v6962_v5 = vcombine.high %v923_v63, %v935_v0  ;;  %v1139_v58 = vld [vmem:[%s8264_s27 + $0x9c0] sm:$0xff] }
  0xe8   : > { %798 = vmatprep.subr.mxu0 %v618_v6  ;;  %v7346_v6 = vcombine.high %v1307_v1, %v1319_v2  ;;  %v1115_v2 = vld [vmem:[%s8264_s27 + $0x900] sm:$0xff] }
  0xe9   : > { %799 = vmatpush2.msra.mxu0 %v617_v7  ;;  %v899_v7 = vld [vmem:[%s8264_s27 + $0x240] sm:$0xff] }
  0xea   : > { %800 = vmatprep.subr.mxu0 %v614_v8  ;;  %v911_v8 = vld [vmem:[%s8264_s27 + $0x2a0] sm:$0xff] }
  0xeb   : > { %801 = vmatpush2.msra.mxu0 %v613_v9  ;;  %v1283_v9 = vld [vmem:[%s8264_s27 + $0xe40] sm:$0xff] }
  0xec   : > { %802 = vmatprep.subr.mxu0 %v610_v10  ;;  %v1295_v10 = vld [vmem:[%s8264_s27 + $0xea0] sm:$0xff] }
  0xed   : > { %803 = vmatpush2.msra.mxu0 %v609_v11  ;;  %v6961_v11 = vcombine.low %v923_v63, %v935_v0  ;;  %v7322_v14 = vcombine.high %v1283_v9, %v1295_v10  ;;  %v7321_v20 = vcombine.low %v1283_v9, %v1295_v10  ;;  %v1091_v10 = vld [vmem:[%s8264_s27 + $0x840] sm:$0xff] }
  0xee   : > { %804 = vmatprep.subr.mxu0 %v606_v13  ;;  %v6938_v13 = vcombine.high %v899_v7, %v911_v8 }
  0xef   : > { %805 = vmatpush2.msra.mxu0 %v605_v15  ;;  %v875_v15 = vld [vmem:[%s8264_s27 + $0x180] sm:$0xff] }
  0xf0   : > { %806 = vmatprep.subr.mxu0 %v602_v17  ;;  %v1259_v17 = vld [vmem:[%s8264_s27 + $0xd80] sm:$0xff] }
  0xf1   : > { %807 = vmatpush2.msra.mxu0 %v601_v19  ;;  %v6937_v19 = vcombine.low %v899_v7, %v911_v8  ;;  %v7298_v22 = vcombine.high %v1259_v17, %v1271_v18  ;;  %v7297_v28 = vcombine.low %v1259_v17, %v1271_v18  ;;  %v1067_v18 = vld [vmem:[%s8264_s27 + $0x780] sm:$0xff] }
  0xf2   : > { %808 = vmatprep.subr.mxu0 %v598_v21  ;;  %v6914_v21 = vcombine.high %v875_v15, %v887_v16 }
  0xf3   : > { %809 = vmatpush2.msra.mxu0 %v597_v23  ;;  %v851_v23 = vld [vmem:[%s8264_s27 + $0xc0] sm:$0xff] }
  0xf4   : > { %810 = vmatprep.subr.mxu0 %v594_v25  ;;  %v1235_v25 = vld [vmem:[%s8264_s27 + $0xcc0] sm:$0xff]  ;;  %v6890_v29 = vcombine.high %v851_v23, %v863_v24 }
  0xf5   : > { %811 = vmatpush2.msra.mxu0 %v593_v27  ;;  %v6913_v27 = vcombine.low %v875_v15, %v887_v16  ;;  %v7274_v30 = vcombine.high %v1235_v25, %v1247_v26  ;;  %v7273_v36 = vcombine.low %v1235_v25, %v1247_v26 }
  0xf6   : > { %5602 = vmatprep.subr.bf16.mxu0 %v7418_v35  ;;  %v6889_v35 = vcombine.low %v851_v23, %v863_v24 }
 0x176   : > { %v520_v43 = vpop.f32.mrf.mxu0 }
 0x177   : > { %v521_v44 = vadd.f32 %v520_v43, %v436_v41  ;;  %v1199_v43 = vld [vmem:[%s8264_s27 + $0xba0] sm:$0xff] }
 0x178   : > { %v522_v45 = vpop.f32.mrf.mxu0 }
 0x179   : > { %v523_v47 = vadd.f32 %v522_v45, %v440_v42  ;;  %v525_v52 = vmax.f32 %v521_v44, 0.0  ;;  %v1187_v42 = vld [vmem:[%s8264_s27 + $0xb40] sm:$0xff] }
 0x17a   : > { %v1571_v44 = vld [vmem:[%s8264_s27 + $0x1740] sm:$0xff]  ;;  %v7226_v48 = vcombine.high %v1187_v42, %v1199_v43 }
 0x17b   : > { %v526_v51 = vmax.f32 %v523_v47, 0.0  ;;  %v1583_v45 = vld [vmem:[%s8264_s27 + $0x17a0] sm:$0xff] }
 0x17c   : > { %v7610_v49 = vcombine.high %v1571_v44, %v1583_v45  ;;  %v7609_v55 = vcombine.low %v1571_v44, %v1583_v45 }
 0x17d   : > { %741 = vmatprep.mubr.f32.mxu1 %v526_v51  ;;  %812 = vmatprep.mubr.f32.mxu0 %v526_v51  ;;  %v1175_v51 = vld [vmem:[%s8264_s27 + $0xae0] sm:$0xff] }
 0x17e   : > { %742 = vmatmul.mubr.f32.vlgmr.msra.gmra.mxu1 %v525_v52  ;;  %813 = vmatmul.mubr.f32.vlgmr.msra.gmra.mxu0 %v525_v52  ;;  %v1547_v52 = vld [vmem:[%s8264_s27 + $0x1680] sm:$0xff]  ;;  %v7202_v56 = vcombine.high %v1163_v50, %v1175_v51 }
 0x17f   : > { %5562 = vmatpush1.bf16.msra.mxu1 %v7033_v31  ;;  %5603 = vmatpush1.bf16.msra.mxu0 %v7417_v34  ;;  %v827_v31 = vld [vmem:[%s8264_s27] sm:$0xff] }
 0x180   : > { %5563 = vmatprep.subr.bf16.mxu1 %v7010_v53  ;;  %5604 = vmatprep.subr.bf16.mxu0 %v7394_v54  ;;  %v1223_v34 = vld [vmem:[%s8264_s27 + $0xc60] sm:$0xff]  ;;  %v6866_v39 = vcombine.high %v827_v31, %v839_v32  ;;  %v6865_v46 = vcombine.low %v827_v31, %v839_v32  ;;  %v7225_v54 = vcombine.low %v1187_v42, %v1199_v43 }
 0x181   : > { %v7250_v41 = vcombine.high %v1211_v33, %v1223_v34  ;;  %v7249_v47 = vcombine.low %v1211_v33, %v1223_v34  ;;  %v1559_v53 = vld [vmem:[%s8264_s27 + $0x16e0] sm:$0xff] }
 0x182   : > { %v7586_v57 = vcombine.high %v1547_v52, %v1559_v53  ;;  %v7585_v63 = vcombine.low %v1547_v52, %v1559_v53  ;;  %v1439_v32 = vld [vmem:[%s8264_s27 + $0x1320] sm:$0xff] }
 0x183   : > { %5564 = vmatpush1.bf16.msra.mxu1 %v7009_v59  ;;  %5605 = vmatpush1.bf16.msra.mxu0 %v7393_v60  ;;  %v1151_v59 = vld [vmem:[%s8264_s27 + $0xa20] sm:$0xff] }
 0x184   : > { %5565 = vmatprep.subr.bf16.mxu1 %v6986_v61  ;;  %5606 = vmatprep.subr.bf16.mxu0 %v7370_v62  ;;  %v1523_v60 = vld [vmem:[%s8264_s27 + $0x15c0] sm:$0xff]  ;;  %v7201_v62 = vcombine.low %v1163_v50, %v1175_v51  ;;  %v7178_v0 = vcombine.high %v1139_v58, %v1151_v59  ;;  %v1392_v51 = vld [vmem:[%s8264_s27 + $0x11a8] sm:$0xff] }
 0x185   : > { %v1535_v61 = vld [vmem:[%s8264_s27 + $0x1620] sm:$0xff] }
 0x186   : > { %v7562_v1 = vcombine.high %v1523_v60, %v1535_v61  ;;  %v7561_v7 = vcombine.low %v1523_v60, %v1535_v61  ;;  %v1415_v43 = vld [vmem:[%s8264_s27 + $0x1260] sm:$0xff] }
 0x187   : > { %5566 = vmatpush1.bf16.msra.mxu1 %v6985_v3  ;;  %5607 = vmatpush1.bf16.msra.mxu0 %v7369_v4  ;;  %v1127_v3 = vld [vmem:[%s8264_s27 + $0x960] sm:$0xff] }
 0x188   : > { %5567 = vmatprep.subr.bf16.mxu1 %v6962_v5  ;;  %5608 = vmatprep.subr.bf16.mxu0 %v7346_v6  ;;  %v1499_v4 = vld [vmem:[%s8264_s27 + $0x1500] sm:$0xff]  ;;  %v7177_v6 = vcombine.low %v1139_v58, %v1151_v59  ;;  %v7154_v8 = vcombine.high %v1115_v2, %v1127_v3 }
 0x189   : > { %v1511_v5 = vld [vmem:[%s8264_s27 + $0x1560] sm:$0xff] }
 0x18a   : > { %v7538_v9 = vcombine.high %v1499_v4, %v1511_v5  ;;  %v7537_v15 = vcombine.low %v1499_v4, %v1511_v5 }
 0x18b   : > { %5568 = vmatpush1.bf16.msra.mxu1 %v6961_v11  ;;  %5609 = vmatpush1.bf16.msra.mxu0 %v7345_v12  ;;  %v1103_v11 = vld [vmem:[%s8264_s27 + $0x8a0] sm:$0xff] }
 0x18c   : > { %5569 = vmatprep.subr.bf16.mxu1 %v6938_v13  ;;  %5610 = vmatprep.subr.bf16.mxu0 %v7322_v14  ;;  %v1475_v12 = vld [vmem:[%s8264_s27 + $0x1440] sm:$0xff]  ;;  %v7153_v14 = vcombine.low %v1115_v2, %v1127_v3  ;;  %v7130_v16 = vcombine.high %v1091_v10, %v1103_v11 }
 0x18d   : > { %v1487_v13 = vld [vmem:[%s8264_s27 + $0x14a0] sm:$0xff] }
 0x18e   : > { %v7514_v17 = vcombine.high %v1475_v12, %v1487_v13  ;;  %v7513_v23 = vcombine.low %v1475_v12, %v1487_v13  ;;  %v1356_v12 = vld [vmem:[%s8264_s27 + $0x1088] sm:$0xff] }
 0x18f   : > { %5570 = vmatpush1.bf16.msra.mxu1 %v6937_v19  ;;  %5611 = vmatpush1.bf16.msra.mxu0 %v7321_v20  ;;  %v1079_v19 = vld [vmem:[%s8264_s27 + $0x7e0] sm:$0xff]  ;;  %v1368_v13 = vld [vmem:[%s8264_s27 + $0x10e8] sm:$0xff] }
 0x190   : > { %5571 = vmatprep.subr.bf16.mxu1 %v6914_v21  ;;  %5612 = vmatprep.subr.bf16.mxu0 %v7298_v22  ;;  %v1451_v20 = vld [vmem:[%s8264_s27 + $0x1380] sm:$0xff]  ;;  %v7129_v22 = vcombine.low %v1091_v10, %v1103_v11  ;;  %v7106_v24 = vcombine.high %v1067_v18, %v1079_v19  ;;  %v7105_v26 = vcombine.low %v1067_v18, %v1079_v19  ;;  %v972_v10 = vld [vmem:[%s8264_s27 + $0x488] sm:$0xff] }
 0x191   : > { %v1463_v21 = vld [vmem:[%s8264_s27 + $0x13e0] sm:$0xff]  ;;  %v984_v11 = vld [vmem:[%s8264_s27 + $0x4e8] sm:$0xff] }
 0x192   : > { %v7490_v25 = vcombine.high %v1451_v20, %v1463_v21  ;;  %v948_v18 = vld [vmem:[%s8264_s27 + $0x3c8] sm:$0xff]  ;;  %v7012_v19 = vcombine.high %v972_v10, %v984_v11 }
 0x193   : > { %5572 = vmatpush1.bf16.msra.mxu1 %v6913_v27  ;;  %5613 = vmatpush1.bf16.msra.mxu0 %v7297_v28  ;;  %v7489_v27 = vcombine.low %v1451_v20, %v1463_v21  ;;  %v1043_v28 = vld [vmem:[%s8264_s27 + $0x6c0] sm:$0xff]  ;;  %v7396_v20 = vcombine.high %v1356_v12, %v1368_v13  ;;  %v960_v21 = vld [vmem:[%s8264_s27 + $0x428] sm:$0xff] }
 0x194   : > { %5573 = vmatprep.subr.bf16.mxu1 %v6890_v29  ;;  %5614 = vmatprep.subr.bf16.mxu0 %v7274_v30  ;;  %v1055_v29 = vld [vmem:[%s8264_s27 + $0x720] sm:$0xff] }
 0x195   : > { %v1427_v30 = vld [vmem:[%s8264_s27 + $0x12c0] sm:$0xff]  ;;  %v7082_v31 = vcombine.high %v1043_v28, %v1055_v29  ;;  %v7081_v33 = vcombine.low %v1043_v28, %v1055_v29  ;;  %v924_v28 = vld [vmem:[%s8264_s27 + $0x308] sm:$0xff] }
 0x196   : > { %v7465_v34 = vcombine.low %v1427_v30, %v1439_v32  ;;  %v936_v29 = vld [vmem:[%s8264_s27 + $0x368] sm:$0xff] }
 0x197   : > { %5574 = vmatpush1.bf16.msra.mxu1 %v6889_v35  ;;  %5615 = vmatpush1.bf16.msra.mxu0 %v7273_v36  ;;  %v7466_v35 = vcombine.high %v1427_v30, %v1439_v32  ;;  %v1019_v36 = vld [vmem:[%s8264_s27 + $0x600] sm:$0xff]  ;;  %v1308_v30 = vld [vmem:[%s8264_s27 + $0xf08] sm:$0xff]  ;;  %v6987_v32 = vcombine.low %v948_v18, %v960_v21 }
 0x198   : > { %5575 = vmatprep.subr.bf16.mxu1 %v6866_v39  ;;  %5616 = vmatprep.subr.bf16.mxu0 %v7250_v41  ;;  %v1031_v39 = vld [vmem:[%s8264_s27 + $0x660] sm:$0xff] }
 0x199   : > { %v1403_v41 = vld [vmem:[%s8264_s27 + $0x1200] sm:$0xff]  ;;  %v7058_v42 = vcombine.high %v1019_v36, %v1031_v39  ;;  %v7057_v44 = vcombine.low %v1019_v36, %v1031_v39  ;;  %v900_v36 = vld [vmem:[%s8264_s27 + $0x248] sm:$0xff] }
 0x19a   : > { %v7441_v45 = vcombine.low %v1403_v41, %v1415_v43  ;;  %v912_v39 = vld [vmem:[%s8264_s27 + $0x2a8] sm:$0xff] }
 0x19b   : > { %5576 = vmatpush1.bf16.msra.mxu1 %v6865_v46  ;;  %5617 = vmatpush1.bf16.msra.mxu0 %v7249_v47  ;;  %v7442_v46 = vcombine.high %v1403_v41, %v1415_v43  ;;  %v996_v47 = vld [vmem:[%s8264_s27 + $0x548] sm:$0xff]  ;;  %v6963_v43 = vcombine.low %v924_v28, %v936_v29 }
 0x19c   : > { %5577 = vmatprep.subr.bf16.mxu1 %v7226_v48  ;;  %5618 = vmatprep.subr.bf16.mxu0 %v7610_v49  ;;  %v1008_v48 = vld [vmem:[%s8264_s27 + $0x5a8] sm:$0xff] }
 0x19d   : > { %v1380_v49 = vld [vmem:[%s8264_s27 + $0x1148] sm:$0xff]  ;;  %v7036_v50 = vcombine.high %v996_v47, %v1008_v48  ;;  %v7035_v52 = vcombine.low %v996_v47, %v1008_v48 }
 0x19e   : > { %v7419_v53 = vcombine.low %v1380_v49, %v1392_v51  ;;  %v1284_v41 = vld [vmem:[%s8264_s27 + $0xe48] sm:$0xff] }
 0x19f   : > { %5578 = vmatpush2.bf16.msra.mxu1 %v7225_v54  ;;  %5619 = vmatpush2.bf16.msra.mxu0 %v7609_v55  ;;  %v7420_v54 = vcombine.high %v1380_v49, %v1392_v51  ;;  %v8349_v55 = vsub.s32 2, %v8274_v37  ;;  %v876_v47 = vld [vmem:[%s8264_s27 + $0x188] sm:$0xff]  ;;  %v6939_v51 = vcombine.low %v900_v36, %v912_v39 }
 0x1a0   : > { %5579 = vmatprep.subr.bf16.mxu1 %v7202_v56  ;;  %5620 = vmatprep.subr.bf16.mxu0 %v7586_v57  ;;  %v655_v56 = vld [vmem:[#allocation9] sm:$0xf]  ;;  %v8352_v57 = vsub.s32 3, %v8274_v37  ;;  %v888_v48 = vld [vmem:[%s8264_s27 + $0x1e8] sm:$0xff] }
 0x1a1   : > { %v660_v58 = vrot.slane %v655_v56, %v8277_v38  ;;  %v668_v59 = vrot.slane %v655_v56, %v8349_v55  ;;  %v664_v60 = vrot.slane %v655_v56, %v8280_v40  ;;  %v1260_v49 = vld [vmem:[%s8264_s27 + $0xd88] sm:$0xff] }
 0x1a2   : > { %v672_v61 = vrot.slane %v655_v56, %v8352_v57  ;;  %v852_v56 = vld [vmem:[%s8264_s27 + $0xc8] sm:$0xff] }
 0x1a3   : > { %5580 = vmatpush2.bf16.msra.mxu1 %v7201_v62  ;;  %5621 = vmatpush2.bf16.msra.mxu0 %v7585_v63 }
 0x1a4   : > { %5581 = vmatprep.subr.bf16.mxu1 %v7178_v0  ;;  %5622 = vmatprep.subr.bf16.mxu0 %v7562_v1 }
 0x1a7   : > { %5582 = vmatpush2.bf16.msra.mxu1 %v7177_v6  ;;  %5623 = vmatpush2.bf16.msra.mxu0 %v7561_v7 }
 0x1a8   : > { %5583 = vmatprep.subr.bf16.mxu1 %v7154_v8  ;;  %5624 = vmatprep.subr.bf16.mxu0 %v7538_v9 }
 0x1ab   : > { %5584 = vmatpush2.bf16.msra.mxu1 %v7153_v14  ;;  %5625 = vmatpush2.bf16.msra.mxu0 %v7537_v15 }
 0x1ac   : > { %5585 = vmatprep.subr.bf16.mxu1 %v7130_v16  ;;  %5626 = vmatprep.subr.bf16.mxu0 %v7514_v17 }
 0x1af   : > { %5586 = vmatpush2.bf16.msra.mxu1 %v7129_v22  ;;  %5627 = vmatpush2.bf16.msra.mxu0 %v7513_v23  ;;  %v1332_v22 = vld [vmem:[%s8264_s27 + $0xfc8] sm:$0xff] }
 0x1b0   : > { %5587 = vmatprep.subr.bf16.mxu1 %v7106_v24  ;;  %5628 = vmatprep.subr.bf16.mxu0 %v7490_v25  ;;  %v1344_v23 = vld [vmem:[%s8264_s27 + $0x1028] sm:$0xff]  ;;  %v7011_v24 = vcombine.low %v972_v10, %v984_v11  ;;  %v7395_v25 = vcombine.low %v1356_v12, %v1368_v13 }
 0x1b1   : > { %v1200_v10 = vld [vmem:[%s8264_s27 + $0xba8] sm:$0xff] }
 0x1b2   : > { %v1572_v11 = vld [vmem:[%s8264_s27 + $0x1748] sm:$0xff] }
 0x1b3   : > { %5588 = vmatpush2.bf16.msra.mxu1 %v7105_v26  ;;  %5629 = vmatpush2.bf16.msra.mxu0 %v7489_v27  ;;  %v6988_v26 = vcombine.high %v948_v18, %v960_v21  ;;  %v7372_v27 = vcombine.high %v1332_v22, %v1344_v23  ;;  %v1584_v12 = vld [vmem:[%s8264_s27 + $0x17a8] sm:$0xff] }
 0x1b4   : > { %5589 = vmatprep.subr.bf16.mxu1 %v7082_v31  ;;  %5630 = vmatprep.subr.bf16.mxu0 %v7466_v35  ;;  %v1320_v31 = vld [vmem:[%s8264_s27 + $0xf68] sm:$0xff] }
 0x1b5   : > { %v7348_v35 = vcombine.high %v1308_v30, %v1320_v31  ;;  %v1164_v21 = vld [vmem:[%s8264_s27 + $0xa88] sm:$0xff] }
 0x1b7   : > { %5590 = vmatpush2.bf16.msra.mxu1 %v7081_v33  ;;  %5631 = vmatpush2.bf16.msra.mxu0 %v7465_v34  ;;  %v7371_v33 = vcombine.low %v1332_v22, %v1344_v23  ;;  %v6964_v34 = vcombine.high %v924_v28, %v936_v29  ;;  %v1176_v22 = vld [vmem:[%s8264_s27 + $0xae8] sm:$0xff] }
 0x1b8   : > { %5591 = vmatprep.subr.bf16.mxu1 %v7058_v42  ;;  %5632 = vmatprep.subr.bf16.mxu0 %v7442_v46  ;;  %v1296_v42 = vld [vmem:[%s8264_s27 + $0xea8] sm:$0xff] }
 0x1b9   : > { %v7324_v46 = vcombine.high %v1284_v41, %v1296_v42  ;;  %v1548_v23 = vld [vmem:[%s8264_s27 + $0x1688] sm:$0xff] }
 0x1ba   : > { %v1140_v29 = vld [vmem:[%s8264_s27 + $0x9c8] sm:$0xff] }
 0x1bb   : > { %5592 = vmatpush2.bf16.msra.mxu1 %v7057_v44  ;;  %5633 = vmatpush2.bf16.msra.mxu0 %v7441_v45  ;;  %v7347_v44 = vcombine.low %v1308_v30, %v1320_v31  ;;  %v6940_v45 = vcombine.high %v900_v36, %v912_v39  ;;  %v1152_v30 = vld [vmem:[%s8264_s27 + $0xa28] sm:$0xff] }
 0x1bc   : > { %5643 = vmatprep.subr.bf16.mxu1 %v7036_v50  ;;  %5684 = vmatprep.subr.bf16.mxu0 %v7420_v54  ;;  %v1272_v50 = vld [vmem:[%s8264_s27 + $0xde8] sm:$0xff] }
 0x1bd   : > { %v7300_v54 = vcombine.high %v1260_v49, %v1272_v50  ;;  %v1524_v31 = vld [vmem:[%s8264_s27 + $0x15c8] sm:$0xff] }
 0x1be   : > { %v1116_v39 = vld [vmem:[%s8264_s27 + $0x908] sm:$0xff] }
 0x23e   : > { %v743_v62 = vpop.f32.mrf.mxu1  ;;  %v814_v63 = vpop.f32.mrf.mxu0 }
 0x23f   : > { %v744_v0 = vadd.f32 %v743_v62, %v660_v58  ;;  %v815_v1 = vadd.f32 %v814_v63, %v668_v59  ;;  %v864_v58 = vld [vmem:[%s8264_s27 + $0x128] sm:$0xff]  ;;  %v7299_v62 = vcombine.low %v1260_v49, %v1272_v50 }
 0x240   : > { %v745_v2 = vpop.f32.mrf.mxu1  ;;  %v816_v3 = vpop.f32.mrf.mxu0  ;;  %v1236_v59 = vld [vmem:[%s8264_s27 + $0xcc8] sm:$0xff]  ;;  %v6892_v63 = vcombine.high %v852_v56, %v864_v58 }
 0x241   : > { %v746_v4 = vadd.f32 %v745_v2, %v664_v60  ;;  %v817_v5 = vadd.f32 %v816_v3, %v672_v61  ;;  %v819_v6 = vmax.f32 %v744_v0, 0.0  ;;  %v821_v7 = vmax.f32 %v815_v1, 0.0  ;;  %v1248_v60 = vld [vmem:[%s8264_s27 + $0xd28] sm:$0xff] }
 0x242   : > { %v6915_v61 = vcombine.low %v876_v47, %v888_v48  ;;  %v7276_v0 = vcombine.high %v1236_v59, %v1248_v60  ;;  %v828_v1 = vld [vmem:[%s8264_s27 + $0x8] sm:$0xff] }
 0x243   : > { %v820_v8 = vmax.f32 %v746_v4, 0.0  ;;  %v822_v9 = vmax.f32 %v817_v5, 0.0  ;;  %v8366_v16 = vpack.c.bf16 %v819_v6, %v819_v6  ;;  %v8368_v17 = vpack.c.bf16 %v821_v7, %v821_v7  ;;  %v840_v2 = vld [vmem:[%s8264_s27 + $0x68] sm:$0xff] }
 0x244   : > { %v1212_v3 = vld [vmem:[%s8264_s27 + $0xc08] sm:$0xff]  ;;  %v6891_v5 = vcombine.low %v852_v56, %v864_v58  ;;  %v7275_v6 = vcombine.low %v1236_v59, %v1248_v60  ;;  %v6868_v7 = vcombine.high %v828_v1, %v840_v2  ;;  %v6867_v13 = vcombine.low %v828_v1, %v840_v2 }
 0x245   : > { %v8362_v14 = vpack.c.bf16 %v820_v8, %v820_v8  ;;  %v8364_v15 = vpack.c.bf16 %v822_v9, %v822_v9  ;;  %v1224_v4 = vld [vmem:[%s8264_s27 + $0xc68] sm:$0xff] }
 0x246   : > { %v7252_v8 = vcombine.high %v1212_v3, %v1224_v4  ;;  %v1188_v9 = vld [vmem:[%s8264_s27 + $0xb48] sm:$0xff]  ;;  %v7251_v18 = vcombine.low %v1212_v3, %v1224_v4 }
 0x247   : > { %5593 = vmatprep.mubr.bf16.mxu1 %v8362_v14  ;;  %5634 = vmatprep.mubr.bf16.mxu0 %v8364_v15  ;;  %v1104_v49 = vld [vmem:[%s8264_s27 + $0x8a8] sm:$0xff] }
 0x248   : > { %5594 = vmatmul.mubr.bf16.vlgmr.msra.gmra.mxu1 %v8366_v16  ;;  %5635 = vmatmul.mubr.bf16.vlgmr.msra.gmra.mxu0 %v8368_v17  ;;  %v1476_v50 = vld [vmem:[%s8264_s27 + $0x1448] sm:$0xff] }
 0x249   : > { %5644 = vmatpush1.bf16.msra.mxu1 %v7035_v52  ;;  %5685 = vmatpush1.bf16.msra.mxu0 %v7419_v53  ;;  %v7323_v52 = vcombine.low %v1284_v41, %v1296_v42  ;;  %v6916_v53 = vcombine.high %v876_v47, %v888_v48  ;;  %v1128_v41 = vld [vmem:[%s8264_s27 + $0x968] sm:$0xff] }
 0x24a   : > { %5675 = vmatprep.mubr.bf16.mxu1 %v8362_v14  ;;  %5716 = vmatprep.mubr.bf16.mxu0 %v8364_v15  ;;  %v1500_v42 = vld [vmem:[%s8264_s27 + $0x1508] sm:$0xff] }
 0x24b   : > { %5645 = vmatprep.subr.bf16.mxu1 %v7012_v19  ;;  %5686 = vmatprep.subr.bf16.mxu0 %v7396_v20  ;;  %v7228_v19 = vcombine.high %v1188_v9, %v1200_v10  ;;  %v7612_v20 = vcombine.high %v1572_v11, %v1584_v12  ;;  %v1092_v48 = vld [vmem:[%s8264_s27 + $0x848] sm:$0xff] }
 0x24c   : > { %v1068_v58 = vld [vmem:[%s8264_s27 + $0x788] sm:$0xff] }
 0x24d   : > { %5646 = vmatpush1.bf16.msra.mxu1 %v7011_v24  ;;  %5687 = vmatpush1.bf16.msra.mxu0 %v7395_v25  ;;  %v1560_v24 = vld [vmem:[%s8264_s27 + $0x16e8] sm:$0xff]  ;;  %v7227_v25 = vcombine.low %v1188_v9, %v1200_v10 }
 0x24e   : > { %5647 = vmatprep.subr.bf16.mxu1 %v6988_v26  ;;  %5688 = vmatprep.subr.bf16.mxu0 %v7372_v27  ;;  %v7611_v26 = vcombine.low %v1572_v11, %v1584_v12  ;;  %v7204_v27 = vcombine.high %v1164_v21, %v1176_v22  ;;  %v7588_v28 = vcombine.high %v1548_v23, %v1560_v24  ;;  %v1080_v59 = vld [vmem:[%s8264_s27 + $0x7e8] sm:$0xff] }
 0x24f   : > { %v1452_v60 = vld [vmem:[%s8264_s27 + $0x1388] sm:$0xff] }
 0x250   : > { %v1044_v2 = vld [vmem:[%s8264_s27 + $0x6c8] sm:$0xff] }
 0x251   : > { %5648 = vmatpush1.bf16.msra.mxu1 %v6987_v32  ;;  %5689 = vmatpush1.bf16.msra.mxu0 %v7371_v33  ;;  %v1536_v32 = vld [vmem:[%s8264_s27 + $0x1628] sm:$0xff]  ;;  %v7203_v33 = vcombine.low %v1164_v21, %v1176_v22  ;;  %v997_v22 = vld [vmem:[%s8264_s27 + $0x550] sm:$0xff] }
 0x252   : > { %5649 = vmatprep.subr.bf16.mxu1 %v6964_v34  ;;  %5690 = vmatprep.subr.bf16.mxu0 %v7348_v35  ;;  %v7587_v34 = vcombine.low %v1548_v23, %v1560_v24  ;;  %v7180_v35 = vcombine.high %v1140_v29, %v1152_v30  ;;  %v7564_v36 = vcombine.high %v1524_v31, %v1536_v32  ;;  %v1056_v3 = vld [vmem:[%s8264_s27 + $0x728] sm:$0xff]  ;;  %v1009_v23 = vld [vmem:[%s8264_s27 + $0x5b0] sm:$0xff] }
 0x253   : > { %v1428_v4 = vld [vmem:[%s8264_s27 + $0x12c8] sm:$0xff]  ;;  %v1381_v24 = vld [vmem:[%s8264_s27 + $0x1150] sm:$0xff] }
 0x254   : > { %v1020_v10 = vld [vmem:[%s8264_s27 + $0x608] sm:$0xff] }
 0x255   : > { %5650 = vmatpush1.bf16.msra.mxu1 %v6963_v43  ;;  %5691 = vmatpush1.bf16.msra.mxu0 %v7347_v44  ;;  %v1512_v43 = vld [vmem:[%s8264_s27 + $0x1568] sm:$0xff]  ;;  %v7179_v44 = vcombine.low %v1140_v29, %v1152_v30  ;;  %v973_v30 = vld [vmem:[%s8264_s27 + $0x490] sm:$0xff] }
 0x256   : > { %5651 = vmatprep.subr.bf16.mxu1 %v6940_v45  ;;  %5692 = vmatprep.subr.bf16.mxu0 %v7324_v46  ;;  %v7563_v45 = vcombine.low %v1524_v31, %v1536_v32  ;;  %v7156_v46 = vcombine.high %v1116_v39, %v1128_v41  ;;  %v7540_v47 = vcombine.high %v1500_v42, %v1512_v43  ;;  %v1032_v11 = vld [vmem:[%s8264_s27 + $0x668] sm:$0xff]  ;;  %v985_v31 = vld [vmem:[%s8264_s27 + $0x4f0] sm:$0xff] }
 0x257   : > { %v1404_v12 = vld [vmem:[%s8264_s27 + $0x1208] sm:$0xff]  ;;  %v1357_v32 = vld [vmem:[%s8264_s27 + $0x1090] sm:$0xff] }
 0x259   : > { %5652 = vmatpush1.bf16.msra.mxu1 %v6939_v51  ;;  %5693 = vmatpush1.bf16.msra.mxu0 %v7323_v52  ;;  %v1488_v51 = vld [vmem:[%s8264_s27 + $0x14a8] sm:$0xff]  ;;  %v7155_v52 = vcombine.low %v1116_v39, %v1128_v41  ;;  %v949_v41 = vld [vmem:[%s8264_s27 + $0x3d0] sm:$0xff] }
 0x25a   : > { %5653 = vmatprep.subr.bf16.mxu1 %v6916_v53  ;;  %5694 = vmatprep.subr.bf16.mxu0 %v7300_v54  ;;  %v7539_v53 = vcombine.low %v1500_v42, %v1512_v43  ;;  %v7132_v54 = vcombine.high %v1092_v48, %v1104_v49  ;;  %v7516_v56 = vcombine.high %v1476_v50, %v1488_v51  ;;  %v961_v42 = vld [vmem:[%s8264_s27 + $0x430] sm:$0xff] }
 0x25b   : > { %v1333_v43 = vld [vmem:[%s8264_s27 + $0xfd0] sm:$0xff] }
 0x25d   : > { %5654 = vmatpush1.bf16.msra.mxu1 %v6915_v61  ;;  %5695 = vmatpush1.bf16.msra.mxu0 %v7299_v62  ;;  %v1464_v61 = vld [vmem:[%s8264_s27 + $0x13e8] sm:$0xff]  ;;  %v7131_v62 = vcombine.low %v1092_v48, %v1104_v49  ;;  %v925_v49 = vld [vmem:[%s8264_s27 + $0x310] sm:$0xff] }
 0x25e   : > { %5655 = vmatprep.subr.bf16.mxu1 %v6892_v63  ;;  %5696 = vmatprep.subr.bf16.mxu0 %v7276_v0  ;;  %v7515_v63 = vcombine.low %v1476_v50, %v1488_v51  ;;  %v7108_v0 = vcombine.high %v1068_v58, %v1080_v59  ;;  %v7492_v1 = vcombine.high %v1452_v60, %v1464_v61  ;;  %v937_v50 = vld [vmem:[%s8264_s27 + $0x370] sm:$0xff] }
 0x25f   : > { %v1309_v51 = vld [vmem:[%s8264_s27 + $0xf10] sm:$0xff] }
 0x261   : > { %5656 = vmatpush1.bf16.msra.mxu1 %v6891_v5  ;;  %5697 = vmatpush1.bf16.msra.mxu0 %v7275_v6  ;;  %v1440_v5 = vld [vmem:[%s8264_s27 + $0x1328] sm:$0xff]  ;;  %v7107_v6 = vcombine.low %v1068_v58, %v1080_v59  ;;  %v901_v59 = vld [vmem:[%s8264_s27 + $0x250] sm:$0xff] }
 0x262   : > { %5657 = vmatprep.subr.bf16.mxu1 %v6868_v7  ;;  %5698 = vmatprep.subr.bf16.mxu0 %v7252_v8  ;;  %v7491_v7 = vcombine.low %v1452_v60, %v1464_v61  ;;  %v7084_v8 = vcombine.high %v1044_v2, %v1056_v3  ;;  %v7468_v9 = vcombine.high %v1428_v4, %v1440_v5  ;;  %v913_v60 = vld [vmem:[%s8264_s27 + $0x2b0] sm:$0xff] }
 0x263   : > { %v1285_v61 = vld [vmem:[%s8264_s27 + $0xe50] sm:$0xff] }
 0x265   : > { %5658 = vmatpush1.bf16.msra.mxu1 %v6867_v13  ;;  %5699 = vmatpush1.bf16.msra.mxu0 %v7251_v18  ;;  %v1416_v13 = vld [vmem:[%s8264_s27 + $0x1268] sm:$0xff]  ;;  %v7083_v18 = vcombine.low %v1044_v2, %v1056_v3  ;;  %v877_v3 = vld [vmem:[%s8264_s27 + $0x190] sm:$0xff] }
 0x266   : > { %5659 = vmatprep.subr.bf16.mxu1 %v7228_v19  ;;  %5700 = vmatprep.subr.bf16.mxu0 %v7612_v20  ;;  %v7467_v19 = vcombine.low %v1428_v4, %v1440_v5  ;;  %v7060_v20 = vcombine.high %v1020_v10, %v1032_v11  ;;  %v7444_v21 = vcombine.high %v1404_v12, %v1416_v13  ;;  %v889_v4 = vld [vmem:[%s8264_s27 + $0x1f0] sm:$0xff] }
 0x267   : > { %v1261_v5 = vld [vmem:[%s8264_s27 + $0xd90] sm:$0xff] }
 0x269   : > { %5660 = vmatpush2.bf16.msra.mxu1 %v7227_v25  ;;  %5701 = vmatpush2.bf16.msra.mxu0 %v7611_v26  ;;  %v1393_v25 = vld [vmem:[%s8264_s27 + $0x11b0] sm:$0xff]  ;;  %v7059_v26 = vcombine.low %v1020_v10, %v1032_v11 }
 0x26a   : > { %5661 = vmatprep.subr.bf16.mxu1 %v7204_v27  ;;  %5702 = vmatprep.subr.bf16.mxu0 %v7588_v28  ;;  %v7443_v27 = vcombine.low %v1404_v12, %v1416_v13  ;;  %v7038_v28 = vcombine.high %v997_v22, %v1009_v23  ;;  %v7422_v29 = vcombine.high %v1381_v24, %v1393_v25  ;;  %v853_v11 = vld [vmem:[%s8264_s27 + $0xd0] sm:$0xff] }
 0x26b   : > { %v865_v12 = vld [vmem:[%s8264_s27 + $0x130] sm:$0xff] }
 0x26c   : > { %v1237_v13 = vld [vmem:[%s8264_s27 + $0xcd0] sm:$0xff] }
 0x26d   : > { %5662 = vmatpush2.bf16.msra.mxu1 %v7203_v33  ;;  %5703 = vmatpush2.bf16.msra.mxu0 %v7587_v34  ;;  %v1369_v33 = vld [vmem:[%s8264_s27 + $0x10f0] sm:$0xff]  ;;  %v7037_v34 = vcombine.low %v997_v22, %v1009_v23 }
 0x26e   : > { %5663 = vmatprep.subr.bf16.mxu1 %v7180_v35  ;;  %5704 = vmatprep.subr.bf16.mxu0 %v7564_v36  ;;  %v7421_v35 = vcombine.low %v1381_v24, %v1393_v25  ;;  %v7014_v36 = vcombine.high %v973_v30, %v985_v31  ;;  %v7398_v39 = vcombine.high %v1357_v32, %v1369_v33  ;;  %v829_v23 = vld [vmem:[%s8264_s27 + $0x10] sm:$0xff] }
 0x26f   : > { %v841_v24 = vld [vmem:[%s8264_s27 + $0x70] sm:$0xff] }
 0x270   : > { %v1213_v25 = vld [vmem:[%s8264_s27 + $0xc10] sm:$0xff] }
 0x271   : > { %5664 = vmatpush2.bf16.msra.mxu1 %v7179_v44  ;;  %5705 = vmatpush2.bf16.msra.mxu0 %v7563_v45  ;;  %v1345_v44 = vld [vmem:[%s8264_s27 + $0x1030] sm:$0xff]  ;;  %v7013_v45 = vcombine.low %v973_v30, %v985_v31 }
 0x272   : > { %5665 = vmatprep.subr.bf16.mxu1 %v7156_v46  ;;  %5706 = vmatprep.subr.bf16.mxu0 %v7540_v47  ;;  %v7397_v46 = vcombine.low %v1357_v32, %v1369_v33  ;;  %v6990_v47 = vcombine.high %v949_v41, %v961_v42  ;;  %v7374_v48 = vcombine.high %v1333_v43, %v1345_v44  ;;  %v1189_v31 = vld [vmem:[%s8264_s27 + $0xb50] sm:$0xff] }
 0x273   : > { %v1201_v32 = vld [vmem:[%s8264_s27 + $0xbb0] sm:$0xff] }
 0x274   : > { %v1573_v33 = vld [vmem:[%s8264_s27 + $0x1750] sm:$0xff] }
 0x275   : > { %5666 = vmatpush2.bf16.msra.mxu1 %v7155_v52  ;;  %5707 = vmatpush2.bf16.msra.mxu0 %v7539_v53  ;;  %v1321_v52 = vld [vmem:[%s8264_s27 + $0xf70] sm:$0xff]  ;;  %v6989_v53 = vcombine.low %v949_v41, %v961_v42 }
 0x276   : > { %5667 = vmatprep.subr.bf16.mxu1 %v7132_v54  ;;  %5708 = vmatprep.subr.bf16.mxu0 %v7516_v56  ;;  %v7373_v54 = vcombine.low %v1333_v43, %v1345_v44  ;;  %v6966_v56 = vcombine.high %v925_v49, %v937_v50  ;;  %v7350_v58 = vcombine.high %v1309_v51, %v1321_v52  ;;  %v1165_v42 = vld [vmem:[%s8264_s27 + $0xa90] sm:$0xff] }
 0x277   : > { %v1177_v43 = vld [vmem:[%s8264_s27 + $0xaf0] sm:$0xff] }
 0x278   : > { %v1549_v44 = vld [vmem:[%s8264_s27 + $0x1690] sm:$0xff] }
 0x279   : > { %5668 = vmatpush2.bf16.msra.mxu1 %v7131_v62  ;;  %5709 = vmatpush2.bf16.msra.mxu0 %v7515_v63  ;;  %v1297_v62 = vld [vmem:[%s8264_s27 + $0xeb0] sm:$0xff]  ;;  %v6965_v63 = vcombine.low %v925_v49, %v937_v50 }
 0x27a   : > { %5669 = vmatprep.subr.bf16.mxu1 %v7108_v0  ;;  %5710 = vmatprep.subr.bf16.mxu0 %v7492_v1  ;;  %v7349_v0 = vcombine.low %v1309_v51, %v1321_v52  ;;  %v6942_v1 = vcombine.high %v901_v59, %v913_v60  ;;  %v7326_v2 = vcombine.high %v1285_v61, %v1297_v62  ;;  %v1141_v50 = vld [vmem:[%s8264_s27 + $0x9d0] sm:$0xff] }
 0x27b   : > { %v1153_v51 = vld [vmem:[%s8264_s27 + $0xa30] sm:$0xff] }
 0x27c   : > { %v1525_v52 = vld [vmem:[%s8264_s27 + $0x15d0] sm:$0xff] }
 0x27d   : > { %5670 = vmatpush2.bf16.msra.mxu1 %v7107_v6  ;;  %5711 = vmatpush2.bf16.msra.mxu0 %v7491_v7  ;;  %v1273_v6 = vld [vmem:[%s8264_s27 + $0xdf0] sm:$0xff]  ;;  %v6941_v7 = vcombine.low %v901_v59, %v913_v60 }
 0x27e   : > { %5671 = vmatprep.subr.bf16.mxu1 %v7084_v8  ;;  %5712 = vmatprep.subr.bf16.mxu0 %v7468_v9  ;;  %v7325_v8 = vcombine.low %v1285_v61, %v1297_v62  ;;  %v6918_v9 = vcombine.high %v877_v3, %v889_v4  ;;  %v7302_v10 = vcombine.high %v1261_v5, %v1273_v6  ;;  %v1117_v60 = vld [vmem:[%s8264_s27 + $0x910] sm:$0xff] }
 0x27f   : > { %v1129_v61 = vld [vmem:[%s8264_s27 + $0x970] sm:$0xff] }
 0x280   : > { %v1501_v62 = vld [vmem:[%s8264_s27 + $0x1510] sm:$0xff] }
 0x281   : > { %5672 = vmatpush2.bf16.msra.mxu1 %v7083_v18  ;;  %5713 = vmatpush2.bf16.msra.mxu0 %v7467_v19  ;;  %v1249_v18 = vld [vmem:[%s8264_s27 + $0xd30] sm:$0xff]  ;;  %v6917_v19 = vcombine.low %v877_v3, %v889_v4 }
 0x282   : > { %5673 = vmatprep.subr.bf16.mxu1 %v7060_v20  ;;  %5714 = vmatprep.subr.bf16.mxu0 %v7444_v21  ;;  %v7301_v20 = vcombine.low %v1261_v5, %v1273_v6  ;;  %v6894_v21 = vcombine.high %v853_v11, %v865_v12  ;;  %v7278_v22 = vcombine.high %v1237_v13, %v1249_v18  ;;  %v1093_v4 = vld [vmem:[%s8264_s27 + $0x850] sm:$0xff] }
 0x283   : > { %v1105_v5 = vld [vmem:[%s8264_s27 + $0x8b0] sm:$0xff] }
 0x284   : > { %v1477_v6 = vld [vmem:[%s8264_s27 + $0x1450] sm:$0xff] }
 0x285   : > { %5674 = vmatpush2.bf16.msra.mxu1 %v7059_v26  ;;  %5715 = vmatpush2.bf16.msra.mxu0 %v7443_v27  ;;  %v1225_v26 = vld [vmem:[%s8264_s27 + $0xc70] sm:$0xff]  ;;  %v6893_v27 = vcombine.low %v853_v11, %v865_v12 }
 0x286   : > { %5725 = vmatprep.subr.bf16.mxu1 %v7038_v28  ;;  %5766 = vmatprep.subr.bf16.mxu0 %v7422_v29  ;;  %v7277_v28 = vcombine.low %v1237_v13, %v1249_v18  ;;  %v6870_v29 = vcombine.high %v829_v23, %v841_v24  ;;  %v7254_v30 = vcombine.high %v1213_v25, %v1225_v26  ;;  %v1069_v12 = vld [vmem:[%s8264_s27 + $0x790] sm:$0xff] }
 0x287   : > { %v1081_v13 = vld [vmem:[%s8264_s27 + $0x7f0] sm:$0xff] }
 0x288   : > { %5676 = vmatmul.mubr.bf16.vlgmr.msra.gmra.mxu1 %v8366_v16  ;;  %5717 = vmatmul.mubr.bf16.vlgmr.msra.gmra.mxu0 %v8368_v17  ;;  %v1453_v18 = vld [vmem:[%s8264_s27 + $0x1390] sm:$0xff] }
 0x289   : > { %5726 = vmatpush1.bf16.msra.mxu1 %v7037_v34  ;;  %5757 = vmatprep.mubr.bf16.mxu1 %v8362_v14  ;;  %v1585_v34 = vld [vmem:[%s8264_s27 + $0x17b0] sm:$0xff] }
 0x28a   : > { %5767 = vmatpush1.bf16.msra.mxu0 %v7421_v35  ;;  %5798 = vmatprep.mubr.bf16.mxu0 %v8364_v15  ;;  %v6869_v35 = vcombine.low %v829_v23, %v841_v24  ;;  %v7614_v41 = vcombine.high %v1573_v33, %v1585_v34  ;;  %v1045_v24 = vld [vmem:[%s8264_s27 + $0x6d0] sm:$0xff] }
 0x28b   : > { %5727 = vmatprep.subr.bf16.mxu1 %v7014_v36  ;;  %5768 = vmatprep.subr.bf16.mxu0 %v7398_v39  ;;  %v7253_v36 = vcombine.low %v1213_v25, %v1225_v26  ;;  %v7230_v39 = vcombine.high %v1189_v31, %v1201_v32  ;;  %v1057_v25 = vld [vmem:[%s8264_s27 + $0x730] sm:$0xff] }
 0x28c   : > { %v1429_v26 = vld [vmem:[%s8264_s27 + $0x12d0] sm:$0xff] }
 0x28d   : > { %5728 = vmatpush1.bf16.msra.mxu1 %v7013_v45  ;;  %v1561_v45 = vld [vmem:[%s8264_s27 + $0x16f0] sm:$0xff] }
 0x28e   : > { %5769 = vmatpush1.bf16.msra.mxu0 %v7397_v46  ;;  %5729 = vmatprep.subr.bf16.mxu1 %v6990_v47  ;;  %v7229_v46 = vcombine.low %v1189_v31, %v1201_v32  ;;  %v7613_v47 = vcombine.low %v1573_v33, %v1585_v34  ;;  %v7590_v49 = vcombine.high %v1549_v44, %v1561_v45  ;;  %v1021_v32 = vld [vmem:[%s8264_s27 + $0x610] sm:$0xff] }
 0x28f   : > { %5770 = vmatprep.subr.bf16.mxu0 %v7374_v48  ;;  %v7206_v48 = vcombine.high %v1165_v42, %v1177_v43  ;;  %v1033_v33 = vld [vmem:[%s8264_s27 + $0x670] sm:$0xff] }
 0x290   : > { %v1405_v34 = vld [vmem:[%s8264_s27 + $0x1210] sm:$0xff] }
 0x291   : > { %5730 = vmatpush1.bf16.msra.mxu1 %v6989_v53  ;;  %v1537_v53 = vld [vmem:[%s8264_s27 + $0x1630] sm:$0xff] }
 0x292   : > { %5771 = vmatpush1.bf16.msra.mxu0 %v7373_v54  ;;  %5731 = vmatprep.subr.bf16.mxu1 %v6966_v56  ;;  %v7205_v54 = vcombine.low %v1165_v42, %v1177_v43  ;;  %v7589_v56 = vcombine.low %v1549_v44, %v1561_v45  ;;  %v7566_v59 = vcombine.high %v1525_v52, %v1537_v53  ;;  %v998_v43 = vld [vmem:[%s8264_s27 + $0x558] sm:$0xff] }
 0x293   : > { %5772 = vmatprep.subr.bf16.mxu0 %v7350_v58  ;;  %v7182_v58 = vcombine.high %v1141_v50, %v1153_v51  ;;  %v1010_v44 = vld [vmem:[%s8264_s27 + $0x5b8] sm:$0xff] }
 0x294   : > { %v1382_v45 = vld [vmem:[%s8264_s27 + $0x1158] sm:$0xff] }
 0x295   : > { %5732 = vmatpush1.bf16.msra.mxu1 %v6965_v63  ;;  %v1513_v63 = vld [vmem:[%s8264_s27 + $0x1570] sm:$0xff] }
 0x296   : > { %5773 = vmatpush1.bf16.msra.mxu0 %v7349_v0  ;;  %5733 = vmatprep.subr.bf16.mxu1 %v6942_v1  ;;  %v7181_v0 = vcombine.low %v1141_v50, %v1153_v51  ;;  %v7565_v1 = vcombine.low %v1525_v52, %v1537_v53  ;;  %v7542_v3 = vcombine.high %v1501_v62, %v1513_v63  ;;  %v974_v51 = vld [vmem:[%s8264_s27 + $0x498] sm:$0xff] }
 0x297   : > { %5774 = vmatprep.subr.bf16.mxu0 %v7326_v2  ;;  %v7158_v2 = vcombine.high %v1117_v60, %v1129_v61  ;;  %v986_v52 = vld [vmem:[%s8264_s27 + $0x4f8] sm:$0xff]  ;;  %v7039_v53 = vcombine.low %v998_v43, %v1010_v44 }
 0x299   : > { %5734 = vmatpush1.bf16.msra.mxu1 %v6941_v7  ;;  %v1489_v7 = vld [vmem:[%s8264_s27 + $0x14b0] sm:$0xff] }
 0x29a   : > { %5775 = vmatpush1.bf16.msra.mxu0 %v7325_v8  ;;  %5735 = vmatprep.subr.bf16.mxu1 %v6918_v9  ;;  %v7157_v8 = vcombine.low %v1117_v60, %v1129_v61  ;;  %v7541_v9 = vcombine.low %v1501_v62, %v1513_v63  ;;  %v7518_v11 = vcombine.high %v1477_v6, %v1489_v7  ;;  %v950_v60 = vld [vmem:[%s8264_s27 + $0x3d8] sm:$0xff] }
 0x29b   : > { %5776 = vmatprep.subr.bf16.mxu0 %v7302_v10  ;;  %v7134_v10 = vcombine.high %v1093_v4, %v1105_v5  ;;  %v962_v61 = vld [vmem:[%s8264_s27 + $0x438] sm:$0xff] }
 0x29c   : > { %v1334_v63 = vld [vmem:[%s8264_s27 + $0xfd8] sm:$0xff] }
 0x29d   : > { %5736 = vmatpush1.bf16.msra.mxu1 %v6917_v19  ;;  %v1465_v19 = vld [vmem:[%s8264_s27 + $0x13f0] sm:$0xff] }
 0x29e   : > { %5777 = vmatpush1.bf16.msra.mxu0 %v7301_v20  ;;  %5737 = vmatprep.subr.bf16.mxu1 %v6894_v21  ;;  %v7133_v20 = vcombine.low %v1093_v4, %v1105_v5  ;;  %v7517_v21 = vcombine.low %v1477_v6, %v1489_v7  ;;  %v7494_v23 = vcombine.high %v1453_v18, %v1465_v19  ;;  %v926_v5 = vld [vmem:[%s8264_s27 + $0x318] sm:$0xff] }
 0x29f   : > { %5778 = vmatprep.subr.bf16.mxu0 %v7278_v22  ;;  %v7110_v22 = vcombine.high %v1069_v12, %v1081_v13  ;;  %v938_v6 = vld [vmem:[%s8264_s27 + $0x378] sm:$0xff] }
 0x2a0   : > { %v1310_v7 = vld [vmem:[%s8264_s27 + $0xf18] sm:$0xff] }
 0x2a1   : > { %5738 = vmatpush1.bf16.msra.mxu1 %v6893_v27  ;;  %v1441_v27 = vld [vmem:[%s8264_s27 + $0x1330] sm:$0xff] }
 0x2a2   : > { %5779 = vmatpush1.bf16.msra.mxu0 %v7277_v28  ;;  %5739 = vmatprep.subr.bf16.mxu1 %v6870_v29  ;;  %v7109_v28 = vcombine.low %v1069_v12, %v1081_v13  ;;  %v7493_v29 = vcombine.low %v1453_v18, %v1465_v19  ;;  %v7470_v31 = vcombine.high %v1429_v26, %v1441_v27  ;;  %v902_v13 = vld [vmem:[%s8264_s27 + $0x258] sm:$0xff] }
 0x2a3   : > { %5780 = vmatprep.subr.bf16.mxu0 %v7254_v30  ;;  %v7086_v30 = vcombine.high %v1045_v24, %v1057_v25  ;;  %v914_v18 = vld [vmem:[%s8264_s27 + $0x2b8] sm:$0xff] }
 0x2a4   : > { %v1286_v19 = vld [vmem:[%s8264_s27 + $0xe58] sm:$0xff] }
 0x2a5   : > { %5740 = vmatpush1.bf16.msra.mxu1 %v6869_v35  ;;  %v1417_v35 = vld [vmem:[%s8264_s27 + $0x1270] sm:$0xff] }
 0x2a6   : > { %5781 = vmatpush1.bf16.msra.mxu0 %v7253_v36  ;;  %5741 = vmatprep.subr.bf16.mxu1 %v7230_v39  ;;  %v7085_v36 = vcombine.low %v1045_v24, %v1057_v25  ;;  %v7469_v39 = vcombine.low %v1429_v26, %v1441_v27  ;;  %v7446_v42 = vcombine.high %v1405_v34, %v1417_v35  ;;  %v878_v25 = vld [vmem:[%s8264_s27 + $0x198] sm:$0xff] }
 0x2a7   : > { %5782 = vmatprep.subr.bf16.mxu0 %v7614_v41  ;;  %v7062_v41 = vcombine.high %v1021_v32, %v1033_v33  ;;  %v890_v26 = vld [vmem:[%s8264_s27 + $0x1f8] sm:$0xff] }
 0x2a8   : > { %v1262_v27 = vld [vmem:[%s8264_s27 + $0xd98] sm:$0xff] }
 0x2a9   : > { %5742 = vmatpush2.bf16.msra.mxu1 %v7229_v46  ;;  %v1394_v46 = vld [vmem:[%s8264_s27 + $0x11b8] sm:$0xff] }
 0x2aa   : > { %5783 = vmatpush2.bf16.msra.mxu0 %v7613_v47  ;;  %5743 = vmatprep.subr.bf16.mxu1 %v7206_v48  ;;  %v7061_v47 = vcombine.low %v1021_v32, %v1033_v33  ;;  %v7445_v48 = vcombine.low %v1405_v34, %v1417_v35  ;;  %v7424_v50 = vcombine.high %v1382_v45, %v1394_v46  ;;  %v854_v33 = vld [vmem:[%s8264_s27 + $0xd8] sm:$0xff] }
 0x2ab   : > { %5784 = vmatprep.subr.bf16.mxu0 %v7590_v49  ;;  %v7040_v49 = vcombine.high %v998_v43, %v1010_v44  ;;  %v866_v34 = vld [vmem:[%s8264_s27 + $0x138] sm:$0xff] }
 0x2ac   : > { %v1238_v35 = vld [vmem:[%s8264_s27 + $0xcd8] sm:$0xff] }
 0x2ad   : > { %5744 = vmatpush2.bf16.msra.mxu1 %v7205_v54  ;;  %v1358_v54 = vld [vmem:[%s8264_s27 + $0x1098] sm:$0xff] }
 0x2ae   : > { %5785 = vmatpush2.bf16.msra.mxu0 %v7589_v56  ;;  %5745 = vmatprep.subr.bf16.mxu1 %v7182_v58  ;;  %v1370_v56 = vld [vmem:[%s8264_s27 + $0x10f8] sm:$0xff]  ;;  %v7423_v58 = vcombine.low %v1382_v45, %v1394_v46 }
 0x2af   : > { %5786 = vmatprep.subr.bf16.mxu0 %v7566_v59  ;;  %v7016_v59 = vcombine.high %v974_v51, %v986_v52  ;;  %v7400_v62 = vcombine.high %v1358_v54, %v1370_v56  ;;  %v830_v44 = vld [vmem:[%s8264_s27 + $0x18] sm:$0xff] }
 0x2b0   : > { %v842_v45 = vld [vmem:[%s8264_s27 + $0x78] sm:$0xff] }
 0x2b1   : > { %5746 = vmatpush2.bf16.msra.mxu1 %v7181_v0  ;;  %v1346_v0 = vld [vmem:[%s8264_s27 + $0x1038] sm:$0xff] }
 0x2b2   : > { %5787 = vmatpush2.bf16.msra.mxu0 %v7565_v1  ;;  %5747 = vmatprep.subr.bf16.mxu1 %v7158_v2  ;;  %v7015_v1 = vcombine.low %v974_v51, %v986_v52  ;;  %v7399_v2 = vcombine.low %v1358_v54, %v1370_v56  ;;  %v7376_v4 = vcombine.high %v1334_v63, %v1346_v0  ;;  %v1214_v46 = vld [vmem:[%s8264_s27 + $0xc18] sm:$0xff] }
 0x2b3   : > { %5788 = vmatprep.subr.bf16.mxu0 %v7542_v3  ;;  %v6992_v3 = vcombine.high %v950_v60, %v962_v61  ;;  %v1190_v52 = vld [vmem:[%s8264_s27 + $0xb58] sm:$0xff] }
 0x2b4   : > { %v1574_v54 = vld [vmem:[%s8264_s27 + $0x1758] sm:$0xff] }
 0x2b5   : > { %5748 = vmatpush2.bf16.msra.mxu1 %v7157_v8  ;;  %v1322_v8 = vld [vmem:[%s8264_s27 + $0xf78] sm:$0xff] }
 0x2b6   : > { %5789 = vmatpush2.bf16.msra.mxu0 %v7541_v9  ;;  %5749 = vmatprep.subr.bf16.mxu1 %v7134_v10  ;;  %v6991_v9 = vcombine.low %v950_v60, %v962_v61  ;;  %v7375_v10 = vcombine.low %v1334_v63, %v1346_v0  ;;  %v7352_v12 = vcombine.high %v1310_v7, %v1322_v8  ;;  %v1586_v56 = vld [vmem:[%s8264_s27 + $0x17b8] sm:$0xff] }
 0x2b7   : > { %5790 = vmatprep.subr.bf16.mxu0 %v7518_v11  ;;  %v6968_v11 = vcombine.high %v926_v5, %v938_v6  ;;  %v7616_v61 = vcombine.high %v1574_v54, %v1586_v56  ;;  %v1178_v63 = vld [vmem:[%s8264_s27 + $0xaf8] sm:$0xff] }
 0x2b8   : > { %v1550_v0 = vld [vmem:[%s8264_s27 + $0x1698] sm:$0xff] }
 0x2b9   : > { %5750 = vmatpush2.bf16.msra.mxu1 %v7133_v20  ;;  %v1298_v20 = vld [vmem:[%s8264_s27 + $0xeb8] sm:$0xff] }
 0x2ba   : > { %5791 = vmatpush2.bf16.msra.mxu0 %v7517_v21  ;;  %5751 = vmatprep.subr.bf16.mxu1 %v7110_v22  ;;  %v6967_v21 = vcombine.low %v926_v5, %v938_v6  ;;  %v7351_v22 = vcombine.low %v1310_v7, %v1322_v8  ;;  %v7328_v24 = vcombine.high %v1286_v19, %v1298_v20  ;;  %v1142_v6 = vld [vmem:[%s8264_s27 + $0x9d8] sm:$0xff] }
 0x2bb   : > { %5792 = vmatprep.subr.bf16.mxu0 %v7494_v23  ;;  %v6944_v23 = vcombine.high %v902_v13, %v914_v18  ;;  %v1154_v7 = vld [vmem:[%s8264_s27 + $0xa38] sm:$0xff] }
 0x2bc   : > { %v1526_v8 = vld [vmem:[%s8264_s27 + $0x15d8] sm:$0xff] }
 0x2bd   : > { %5752 = vmatpush2.bf16.msra.mxu1 %v7109_v28  ;;  %v1274_v28 = vld [vmem:[%s8264_s27 + $0xdf8] sm:$0xff] }
 0x2be   : > { %5793 = vmatpush2.bf16.msra.mxu0 %v7493_v29  ;;  %5753 = vmatprep.subr.bf16.mxu1 %v7086_v30  ;;  %v6943_v29 = vcombine.low %v902_v13, %v914_v18  ;;  %v7327_v30 = vcombine.low %v1286_v19, %v1298_v20  ;;  %v7304_v32 = vcombine.high %v1262_v27, %v1274_v28  ;;  %v1118_v18 = vld [vmem:[%s8264_s27 + $0x918] sm:$0xff] }
 0x2bf   : > { %5794 = vmatprep.subr.bf16.mxu0 %v7470_v31  ;;  %v6920_v31 = vcombine.high %v878_v25, %v890_v26  ;;  %v1130_v19 = vld [vmem:[%s8264_s27 + $0x978] sm:$0xff] }
 0x2c0   : > { %v1502_v20 = vld [vmem:[%s8264_s27 + $0x1518] sm:$0xff] }
 0x2c1   : > { %5754 = vmatpush2.bf16.msra.mxu1 %v7085_v36  ;;  %v1250_v36 = vld [vmem:[%s8264_s27 + $0xd38] sm:$0xff] }
 0x2c2   : > { %5795 = vmatpush2.bf16.msra.mxu0 %v7469_v39  ;;  %5755 = vmatprep.subr.bf16.mxu1 %v7062_v41  ;;  %v6919_v39 = vcombine.low %v878_v25, %v890_v26  ;;  %v7303_v41 = vcombine.low %v1262_v27, %v1274_v28  ;;  %v7280_v43 = vcombine.high %v1238_v35, %v1250_v36  ;;  %v1094_v26 = vld [vmem:[%s8264_s27 + $0x858] sm:$0xff] }
 0x2c3   : > { %5796 = vmatprep.subr.bf16.mxu0 %v7446_v42  ;;  %v6896_v42 = vcombine.high %v854_v33, %v866_v34  ;;  %v1106_v27 = vld [vmem:[%s8264_s27 + $0x8b8] sm:$0xff] }
 0x2c4   : > { %v1478_v28 = vld [vmem:[%s8264_s27 + $0x1458] sm:$0xff] }
 0x2c5   : > { %5756 = vmatpush2.bf16.msra.mxu1 %v7061_v47  ;;  %v1226_v47 = vld [vmem:[%s8264_s27 + $0xc78] sm:$0xff] }
 0x2c6   : > { %5797 = vmatpush2.bf16.msra.mxu0 %v7445_v48  ;;  %5807 = vmatprep.subr.bf16.mxu1 %v7040_v49  ;;  %v6895_v48 = vcombine.low %v854_v33, %v866_v34  ;;  %v7279_v49 = vcombine.low %v1238_v35, %v1250_v36  ;;  %v7256_v51 = vcombine.high %v1214_v46, %v1226_v47  ;;  %v1070_v34 = vld [vmem:[%s8264_s27 + $0x798] sm:$0xff] }
 0x2c7   : > { %5848 = vmatprep.subr.bf16.mxu0 %v7424_v50  ;;  %v6872_v50 = vcombine.high %v830_v44, %v842_v45  ;;  %v1082_v35 = vld [vmem:[%s8264_s27 + $0x7f8] sm:$0xff] }
 0x2c8   : > { %5758 = vmatmul.mubr.bf16.vlgmr.msra.gmra.mxu1 %v8366_v16  ;;  %v1454_v36 = vld [vmem:[%s8264_s27 + $0x1398] sm:$0xff] }
 0x2c9   : > { %5799 = vmatmul.mubr.bf16.vlgmr.msra.gmra.mxu0 %v8368_v17  ;;  %5808 = vmatpush1.bf16.msra.mxu1 %v7039_v53  ;;  %v1202_v53 = vld [vmem:[%s8264_s27 + $0xbb8] sm:$0xff] }
 0x2ca   : > { %5839 = vmatprep.mubr.bf16.mxu1 %v8362_v14  ;;  %5849 = vmatpush1.bf16.msra.mxu0 %v7423_v58  ;;  %v6871_v58 = vcombine.low %v830_v44, %v842_v45  ;;  %v7232_v60 = vcombine.high %v1190_v52, %v1202_v53  ;;  %v1046_v45 = vld [vmem:[%s8264_s27 + $0x6d8] sm:$0xff] }
 0x2cb   : > { %5880 = vmatprep.mubr.bf16.mxu0 %v8364_v15  ;;  %5809 = vmatprep.subr.bf16.mxu1 %v7016_v59  ;;  %v7255_v59 = vcombine.low %v1214_v46, %v1226_v47  ;;  %v1058_v46 = vld [vmem:[%s8264_s27 + $0x738] sm:$0xff] }
 0x2cc   : > { %5850 = vmatprep.subr.bf16.mxu0 %v7400_v62  ;;  %v1166_v62 = vld [vmem:[%s8264_s27 + $0xa98] sm:$0xff] }
 0x2cd   : > { %5810 = vmatpush1.bf16.msra.mxu1 %v7015_v1  ;;  %v1562_v1 = vld [vmem:[%s8264_s27 + $0x16f8] sm:$0xff] }
 0x2ce   : > { %5851 = vmatpush1.bf16.msra.mxu0 %v7399_v2  ;;  %5811 = vmatprep.subr.bf16.mxu1 %v6992_v3  ;;  %v7231_v2 = vcombine.low %v1190_v52, %v1202_v53  ;;  %v7615_v3 = vcombine.low %v1574_v54, %v1586_v56  ;;  %v7592_v5 = vcombine.high %v1550_v0, %v1562_v1  ;;  %v1430_v47 = vld [vmem:[%s8264_s27 + $0x12d8] sm:$0xff] }
 0x2cf   : > { %5852 = vmatprep.subr.bf16.mxu0 %v7376_v4  ;;  %v7208_v4 = vcombine.high %v1166_v62, %v1178_v63  ;;  %v1022_v53 = vld [vmem:[%s8264_s27 + $0x618] sm:$0xff] }
 0x2d0   : > { %v1034_v54 = vld [vmem:[%s8264_s27 + $0x678] sm:$0xff] }
 0x2d1   : > { %5812 = vmatpush1.bf16.msra.mxu1 %v6991_v9  ;;  %v1538_v9 = vld [vmem:[%s8264_s27 + $0x1638] sm:$0xff] }
 0x2d2   : > { %5853 = vmatpush1.bf16.msra.mxu0 %v7375_v10  ;;  %5813 = vmatprep.subr.bf16.mxu1 %v6968_v11  ;;  %v7207_v10 = vcombine.low %v1166_v62, %v1178_v63  ;;  %v7591_v11 = vcombine.low %v1550_v0, %v1562_v1  ;;  %v7568_v13 = vcombine.high %v1526_v8, %v1538_v9  ;;  %v1406_v56 = vld [vmem:[%s8264_s27 + $0x1218] sm:$0xff]  ;;  %v999_v63 = vld [vmem:[%s8264_s27 + $0x560] sm:$0xff] }
 0x2d3   : > { %5854 = vmatprep.subr.bf16.mxu0 %v7352_v12  ;;  %v7184_v12 = vcombine.high %v1142_v6, %v1154_v7  ;;  %v1011_v0 = vld [vmem:[%s8264_s27 + $0x5c0] sm:$0xff] }
 0x2d4   : > { %v1383_v1 = vld [vmem:[%s8264_s27 + $0x1160] sm:$0xff] }
 0x2d5   : > { %5814 = vmatpush1.bf16.msra.mxu1 %v6967_v21  ;;  %v1514_v21 = vld [vmem:[%s8264_s27 + $0x1578] sm:$0xff] }
 0x2d6   : > { %5855 = vmatpush1.bf16.msra.mxu0 %v7351_v22  ;;  %5815 = vmatprep.subr.bf16.mxu1 %v6944_v23  ;;  %v7183_v22 = vcombine.low %v1142_v6, %v1154_v7  ;;  %v7567_v23 = vcombine.low %v1526_v8, %v1538_v9  ;;  %v7544_v25 = vcombine.high %v1502_v20, %v1514_v21  ;;  %v8577_v6 = vld [vmem:[%s8574_s22] sm:$0xff] }
 0x2d7   : > { %5856 = vmatprep.subr.bf16.mxu0 %v7328_v24  ;;  %v7160_v24 = vcombine.high %v1118_v18, %v1130_v19  ;;  %v975_v8 = vld [vmem:[%s8264_s27 + $0x4a0] sm:$0xff] }
 0x2d8   : > { %v987_v9 = vld [vmem:[%s8264_s27 + $0x500] sm:$0xff] }
 0x2d9   : > { %5816 = vmatpush1.bf16.msra.mxu1 %v6943_v29  ;;  %v1490_v29 = vld [vmem:[%s8264_s27 + $0x14b8] sm:$0xff] }
 0x2da   : > { %5857 = vmatpush1.bf16.msra.mxu0 %v7327_v30  ;;  %5817 = vmatprep.subr.bf16.mxu1 %v6920_v31  ;;  %v7159_v30 = vcombine.low %v1118_v18, %v1130_v19  ;;  %v7543_v31 = vcombine.low %v1502_v20, %v1514_v21  ;;  %v7520_v33 = vcombine.high %v1478_v28, %v1490_v29  ;;  %v951_v21 = vld [vmem:[%s8264_s27 + $0x3e0] sm:$0xff] }
 0x2db   : > { %5858 = vmatprep.subr.bf16.mxu0 %v7304_v32  ;;  %v7136_v32 = vcombine.high %v1094_v26, %v1106_v27  ;;  %v1608_v19 = vrot.slane %v8577_v6, %v8280_v40  ;;  %v7018_v20 = vcombine.high %v975_v8, %v987_v9 }
 0x2dd   : > { %5818 = vmatpush1.bf16.msra.mxu1 %v6919_v39  ;;  %v1466_v39 = vld [vmem:[%s8264_s27 + $0x13f8] sm:$0xff] }
 0x2de   : > { %5859 = vmatpush1.bf16.msra.mxu0 %v7303_v41  ;;  %5819 = vmatprep.subr.bf16.mxu1 %v6896_v42  ;;  %v7135_v41 = vcombine.low %v1094_v26, %v1106_v27  ;;  %v7519_v42 = vcombine.low %v1478_v28, %v1490_v29  ;;  %v7496_v44 = vcombine.high %v1454_v36, %v1466_v39  ;;  %v1335_v26 = vld [vmem:[%s8264_s27 + $0xfe0] sm:$0xff] }
 0x2df   : > { %5860 = vmatprep.subr.bf16.mxu0 %v7280_v43  ;;  %v7112_v43 = vcombine.high %v1070_v34, %v1082_v35  ;;  %v1347_v27 = vld [vmem:[%s8264_s27 + $0x1040] sm:$0xff]  ;;  %v7017_v29 = vcombine.low %v975_v8, %v987_v9 }
 0x2e0   : > { %v855_v8 = vld [vmem:[%s8264_s27 + $0xe0] sm:$0xff] }
 0x2e1   : > { %5820 = vmatpush1.bf16.msra.mxu1 %v6895_v48  ;;  %v1442_v48 = vld [vmem:[%s8264_s27 + $0x1338] sm:$0xff]  ;;  %v867_v9 = vld [vmem:[%s8264_s27 + $0x140] sm:$0xff] }
 0x2e2   : > { %5861 = vmatpush1.bf16.msra.mxu0 %v7279_v49  ;;  %5821 = vmatprep.subr.bf16.mxu1 %v6872_v50  ;;  %v7111_v49 = vcombine.low %v1070_v34, %v1082_v35  ;;  %v7495_v50 = vcombine.low %v1454_v36, %v1466_v39  ;;  %v7472_v52 = vcombine.high %v1430_v47, %v1442_v48  ;;  %v927_v39 = vld [vmem:[%s8264_s27 + $0x320] sm:$0xff] }
 0x2e3   : > { %5862 = vmatprep.subr.bf16.mxu0 %v7256_v51  ;;  %v7088_v51 = vcombine.high %v1046_v45, %v1058_v46  ;;  %v7378_v36 = vcombine.high %v1335_v26, %v1347_v27 }
 0x2e5   : > { %5822 = vmatpush1.bf16.msra.mxu1 %v6871_v58  ;;  %v1418_v58 = vld [vmem:[%s8264_s27 + $0x1278] sm:$0xff] }
 0x2e6   : > { %5863 = vmatpush1.bf16.msra.mxu0 %v7255_v59  ;;  %5823 = vmatprep.subr.bf16.mxu1 %v7232_v60  ;;  %v7087_v59 = vcombine.low %v1046_v45, %v1058_v46  ;;  %v7471_v60 = vcombine.low %v1430_v47, %v1442_v48  ;;  %v7448_v62 = vcombine.high %v1406_v56, %v1418_v58  ;;  %v1323_v45 = vld [vmem:[%s8264_s27 + $0xf80] sm:$0xff] }
 0x2e7   : > { %5864 = vmatprep.subr.bf16.mxu0 %v7616_v61  ;;  %v7064_v61 = vcombine.high %v1022_v53, %v1034_v54 }
 0x2e9   : > { %5824 = vmatpush2.bf16.msra.mxu1 %v7231_v2  ;;  %v1395_v2 = vld [vmem:[%s8264_s27 + $0x11c0] sm:$0xff] }
 0x2ea   : > { %5865 = vmatpush2.bf16.msra.mxu0 %v7615_v3  ;;  %5825 = vmatprep.subr.bf16.mxu1 %v7208_v4  ;;  %v7063_v3 = vcombine.low %v1022_v53, %v1034_v54  ;;  %v7447_v4 = vcombine.low %v1406_v56, %v1418_v58  ;;  %v7426_v7 = vcombine.high %v1383_v1, %v1395_v2  ;;  %v903_v53 = vld [vmem:[%s8264_s27 + $0x260] sm:$0xff] }
 0x2eb   : > { %5866 = vmatprep.subr.bf16.mxu0 %v7592_v5  ;;  %v7042_v5 = vcombine.high %v999_v63, %v1011_v0  ;;  %v7425_v18 = vcombine.low %v1383_v1, %v1395_v2  ;;  %v915_v54 = vld [vmem:[%s8264_s27 + $0x2c0] sm:$0xff] }
 0x2ec   : > { %v1287_v56 = vld [vmem:[%s8264_s27 + $0xe60] sm:$0xff] }
 0x2ed   : > { %5826 = vmatpush2.bf16.msra.mxu1 %v7207_v10  ;;  %v7041_v10 = vcombine.low %v999_v63, %v1011_v0  ;;  %v1299_v58 = vld [vmem:[%s8264_s27 + $0xec0] sm:$0xff] }
 0x2ee   : > { %5867 = vmatpush2.bf16.msra.mxu0 %v7591_v11  ;;  %5827 = vmatprep.subr.bf16.mxu1 %v7184_v12  ;;  %v1604_v11 = vrot.slane %v8577_v6, %v8277_v38  ;;  %v1359_v12 = vld [vmem:[%s8264_s27 + $0x10a0] sm:$0xff] }
 0x2ef   : > { %5868 = vmatprep.subr.bf16.mxu0 %v7568_v13  ;;  %v1371_v13 = vld [vmem:[%s8264_s27 + $0x1100] sm:$0xff] }
 0x2f0   : > { %v879_v63 = vld [vmem:[%s8264_s27 + $0x1a0] sm:$0xff] }
 0x2f1   : > { %5828 = vmatpush2.bf16.msra.mxu1 %v7183_v22  ;;  %v963_v22 = vld [vmem:[%s8264_s27 + $0x440] sm:$0xff] }
 0x2f2   : > { %5869 = vmatpush2.bf16.msra.mxu0 %v7567_v23  ;;  %5829 = vmatprep.subr.bf16.mxu1 %v7160_v24  ;;  %v6993_v47 = vcombine.low %v951_v21, %v963_v22  ;;  %v891_v0 = vld [vmem:[%s8264_s27 + $0x200] sm:$0xff] }
 0x2f3   : > { %5870 = vmatprep.subr.bf16.mxu0 %v7544_v25  ;;  %v7402_v25 = vcombine.high %v1359_v12, %v1371_v13  ;;  %v1263_v1 = vld [vmem:[%s8264_s27 + $0xda0] sm:$0xff] }
 0x2f4   : > { %v1275_v2 = vld [vmem:[%s8264_s27 + $0xe00] sm:$0xff] }
 0x2f5   : > { %5830 = vmatpush2.bf16.msra.mxu1 %v7159_v30 }
 0x2f6   : > { %5871 = vmatpush2.bf16.msra.mxu0 %v7543_v31  ;;  %5831 = vmatprep.subr.bf16.mxu1 %v7136_v32  ;;  %v7401_v32 = vcombine.low %v1359_v12, %v1371_v13  ;;  %v6921_v12 = vcombine.low %v879_v63, %v891_v0  ;;  %v7305_v13 = vcombine.low %v1263_v1, %v1275_v2 }
 0x2f7   : > { %5872 = vmatprep.subr.bf16.mxu0 %v7520_v33  ;;  %v6994_v33 = vcombine.high %v951_v21, %v963_v22  ;;  %v831_v21 = vld [vmem:[%s8264_s27 + $0x20] sm:$0xff] }
 0x2f8   : > { %v843_v22 = vld [vmem:[%s8264_s27 + $0x80] sm:$0xff] }
 0x2f9   : > { %5832 = vmatpush2.bf16.msra.mxu1 %v7135_v41  ;;  %v939_v41 = vld [vmem:[%s8264_s27 + $0x380] sm:$0xff] }
 0x2fa   : > { %5873 = vmatpush2.bf16.msra.mxu0 %v7519_v42  ;;  %5833 = vmatprep.subr.bf16.mxu1 %v7112_v43 }
 0x2fb   : > { %5874 = vmatprep.subr.bf16.mxu0 %v7496_v44  ;;  %v1311_v44 = vld [vmem:[%s8264_s27 + $0xf20] sm:$0xff] }
 0x2fd   : > { %5834 = vmatpush2.bf16.msra.mxu1 %v7111_v49 }
 0x2fe   : > { %5875 = vmatpush2.bf16.msra.mxu0 %v7495_v50  ;;  %5835 = vmatprep.subr.bf16.mxu1 %v7088_v51  ;;  %v7377_v50 = vcombine.low %v1335_v26, %v1347_v27  ;;  %v6970_v51 = vcombine.high %v927_v39, %v939_v41  ;;  %v6897_v27 = vcombine.low %v855_v8, %v867_v9 }
 0x2ff   : > { %5876 = vmatprep.subr.bf16.mxu0 %v7472_v52  ;;  %v7354_v52 = vcombine.high %v1311_v44, %v1323_v45 }
 0x301   : > { %5836 = vmatpush2.bf16.msra.mxu1 %v7087_v59  ;;  %v6969_v59 = vcombine.low %v927_v39, %v939_v41 }
 0x302   : > { %5877 = vmatpush2.bf16.msra.mxu0 %v7471_v60  ;;  %5837 = vmatprep.subr.bf16.mxu1 %v7064_v61  ;;  %v7353_v60 = vcombine.low %v1311_v44, %v1323_v45  ;;  %v6946_v61 = vcombine.high %v903_v53, %v915_v54  ;;  %v1551_v44 = vld [vmem:[%s8264_s27 + $0x16a0] sm:$0xff] }
 0x303   : > { %5878 = vmatprep.subr.bf16.mxu0 %v7448_v62  ;;  %v7330_v62 = vcombine.high %v1287_v56, %v1299_v58  ;;  %v1563_v45 = vld [vmem:[%s8264_s27 + $0x1700] sm:$0xff] }
 0x305   : > { %5838 = vmatpush2.bf16.msra.mxu1 %v7063_v3  ;;  %v6945_v3 = vcombine.low %v903_v53, %v915_v54  ;;  %v1539_v53 = vld [vmem:[%s8264_s27 + $0x1640] sm:$0xff] }
 0x306   : > { %5879 = vmatpush2.bf16.msra.mxu0 %v7447_v4  ;;  %5889 = vmatprep.subr.bf16.mxu1 %v7042_v5  ;;  %v7329_v4 = vcombine.low %v1287_v56, %v1299_v58  ;;  %v6922_v5 = vcombine.high %v879_v63, %v891_v0  ;;  %v7593_v56 = vcombine.low %v1551_v44, %v1563_v45  ;;  %v1515_v63 = vld [vmem:[%s8264_s27 + $0x1580] sm:$0xff] }
 0x307   : > { %5930 = vmatprep.subr.bf16.mxu0 %v7426_v7  ;;  %v7306_v7 = vcombine.high %v1263_v1, %v1275_v2 }
 0x308   : > { %5840 = vmatmul.mubr.bf16.vlgmr.msra.gmra.mxu1 %v8366_v16  ;;  %v5595_v23 = vpop.f32.mrf.mxu1  ;;  %v5636_v24 = vpop.f32.mrf.mxu0 }
 0x309   : > { %5881 = vmatmul.mubr.bf16.vlgmr.msra.gmra.mxu0 %v8368_v17  ;;  %v5596_v28 = vadd.f32 %v5595_v23, %v1604_v11  ;;  %5890 = vmatpush1.bf16.msra.mxu1 %v7041_v10  ;;  %v1239_v10 = vld [vmem:[%s8264_s27 + $0xce0] sm:$0xff] }
 0x30a   : > { %5921 = vmatprep.mubr.bf16.mxu1 %v8362_v14  ;;  %5931 = vmatpush1.bf16.msra.mxu0 %v7425_v18  ;;  %v5597_v30 = vpop.f32.mrf.mxu1  ;;  %v5638_v31 = vpop.f32.mrf.mxu0  ;;  %v1251_v11 = vld [vmem:[%s8264_s27 + $0xd40] sm:$0xff]  ;;  %v6898_v18 = vcombine.high %v855_v8, %v867_v9 }
 0x30b   : > { %v5637_v34 = vadd.f32 %v5636_v24, %v5596_v28  ;;  %5962 = vmatprep.mubr.bf16.mxu0 %v8364_v15  ;;  %v5598_v35 = vadd.f32 %v5597_v30, %v1608_v19  ;;  %5891 = vmatprep.subr.bf16.mxu1 %v7018_v20  ;;  %v7282_v20 = vcombine.high %v1239_v10, %v1251_v11  ;;  %v1215_v24 = vld [vmem:[%s8264_s27 + $0xc20] sm:$0xff] }
 0x30c   : > { %5932 = vmatprep.subr.bf16.mxu0 %v7402_v25  ;;  %v5599_v42 = vpop.f32.mrf.mxu1  ;;  %v5640_v43 = vpop.f32.mrf.mxu0  ;;  %v1227_v25 = vld [vmem:[%s8264_s27 + $0xc80] sm:$0xff]  ;;  %v7281_v28 = vcombine.low %v1239_v10, %v1251_v11 }
 0x30d   : > { %v5639_v46 = vadd.f32 %v5638_v31, %v5598_v35  ;;  %5892 = vmatpush1.bf16.msra.mxu1 %v7017_v29  ;;  %7745 = vtanh.f32 %v5637_v34  ;;  %v6874_v29 = vcombine.high %v831_v21, %v843_v22  ;;  %v7258_v30 = vcombine.high %v1215_v24, %v1227_v25  ;;  %v1191_v31 = vld [vmem:[%s8264_s27 + $0xb60] sm:$0xff] }
 0x30e   : > { %5933 = vmatpush1.bf16.msra.mxu0 %v7401_v32  ;;  %v5600_v48 = vpop.f32.mrf.mxu1  ;;  %v5641_v49 = vpop.f32.mrf.mxu0  ;;  %5893 = vmatprep.subr.bf16.mxu1 %v6994_v33  ;;  %v1203_v32 = vld [vmem:[%s8264_s27 + $0xbc0] sm:$0xff]  ;;  %v6873_v35 = vcombine.low %v831_v21, %v843_v22 }
 0x30f   : > { %7747 = vtanh.f32 %v5639_v46  ;;  %5934 = vmatprep.subr.bf16.mxu0 %v7378_v36  ;;  %v1575_v33 = vld [vmem:[%s8264_s27 + $0x1760] sm:$0xff]  ;;  %v7257_v36 = vcombine.low %v1215_v24, %v1227_v25  ;;  %v7234_v39 = vcombine.high %v1191_v31, %v1203_v32  ;;  %v7233_v46 = vcombine.low %v1191_v31, %v1203_v32 }
 0x310   : > { %v1587_v34 = vld [vmem:[%s8264_s27 + $0x17c0] sm:$0xff]  ;;  %v7594_v49 = vcombine.high %v1551_v44, %v1563_v45 }
 0x311   : > { %5894 = vmatpush1.bf16.msra.mxu1 %v6993_v47  ;;  %v7618_v41 = vcombine.high %v1575_v33, %v1587_v34  ;;  %v1167_v42 = vld [vmem:[%s8264_s27 + $0xaa0] sm:$0xff]  ;;  %v7617_v47 = vcombine.low %v1575_v33, %v1587_v34 }
 0x312   : > { %5935 = vmatpush1.bf16.msra.mxu0 %v7377_v50  ;;  %5895 = vmatprep.subr.bf16.mxu1 %v6970_v51  ;;  %v1179_v43 = vld [vmem:[%s8264_s27 + $0xb00] sm:$0xff] }
 0x313   : > { %5936 = vmatprep.subr.bf16.mxu0 %v7354_v52  ;;  %v7210_v48 = vcombine.high %v1167_v42, %v1179_v43  ;;  %v1143_v50 = vld [vmem:[%s8264_s27 + $0x9e0] sm:$0xff]  ;;  %v7209_v54 = vcombine.low %v1167_v42, %v1179_v43 }
 0x314   : > { %v1155_v51 = vld [vmem:[%s8264_s27 + $0xa40] sm:$0xff] }
 0x315   : > { %5896 = vmatpush1.bf16.msra.mxu1 %v6969_v59  ;;  %v1527_v52 = vld [vmem:[%s8264_s27 + $0x15e0] sm:$0xff]  ;;  %v7186_v58 = vcombine.high %v1143_v50, %v1155_v51  ;;  %v7185_v0 = vcombine.low %v1143_v50, %v1155_v51  ;;  %v1396_v50 = vld [vmem:[%s8264_s27 + $0x11c8] sm:$0xff] }
 0x316   : > { %5937 = vmatpush1.bf16.msra.mxu0 %v7353_v60  ;;  %5897 = vmatprep.subr.bf16.mxu1 %v6946_v61  ;;  %v7570_v59 = vcombine.high %v1527_v52, %v1539_v53  ;;  %v1119_v60 = vld [vmem:[%s8264_s27 + $0x920] sm:$0xff]  ;;  %v7569_v1 = vcombine.low %v1527_v52, %v1539_v53 }
 0x317   : > { %5938 = vmatprep.subr.bf16.mxu0 %v7330_v62  ;;  %v1131_v61 = vld [vmem:[%s8264_s27 + $0x980] sm:$0xff] }
 0x318   : > { %v1503_v62 = vld [vmem:[%s8264_s27 + $0x1520] sm:$0xff]  ;;  %v7162_v2 = vcombine.high %v1119_v60, %v1131_v61  ;;  %v7161_v9 = vcombine.low %v1119_v60, %v1131_v61  ;;  %v1360_v61 = vld [vmem:[%s8264_s27 + $0x10a8] sm:$0xff] }
 0x319   : > { %5898 = vmatpush1.bf16.msra.mxu1 %v6945_v3  ;;  %v7546_v3 = vcombine.high %v1503_v62, %v1515_v63  ;;  %v1491_v8 = vld [vmem:[%s8264_s27 + $0x14c0] sm:$0xff]  ;;  %v7545_v10 = vcombine.low %v1503_v62, %v1515_v63  ;;  %v1372_v62 = vld [vmem:[%s8264_s27 + $0x1108] sm:$0xff] }
 0x31a   : > { %5939 = vmatpush1.bf16.msra.mxu0 %v7329_v4  ;;  %5899 = vmatprep.subr.bf16.mxu1 %v6922_v5  ;;  %v8611_v19 = vpop.eup %7745  ;;  %v1095_v4 = vld [vmem:[%s8264_s27 + $0x860] sm:$0xff] }
 0x31b   : > { %5940 = vmatprep.subr.bf16.mxu0 %v7306_v7  ;;  %v1107_v5 = vld [vmem:[%s8264_s27 + $0x8c0] sm:$0xff] }
 0x31c   : > { %v8615_v23 = vpop.eup %7747  ;;  %v1479_v7 = vld [vmem:[%s8264_s27 + $0x1460] sm:$0xff]  ;;  %v7138_v11 = vcombine.high %v1095_v4, %v1107_v5  ;;  %v7137_v22 = vcombine.low %v1095_v4, %v1107_v5 }
 0x31d   : > { %v6593_v26 = vcombine.low %v8611_v19, %v8615_v23  ;;  %5900 = vmatpush1.bf16.msra.mxu1 %v6921_v12  ;;  %v7522_v12 = vcombine.high %v1479_v7, %v1491_v8  ;;  %v1467_v21 = vld [vmem:[%s8264_s27 + $0x1400] sm:$0xff]  ;;  %v7521_v24 = vcombine.low %v1479_v7, %v1491_v8  ;;  %v7404_v7 = vcombine.high %v1360_v61, %v1372_v62  ;;  %v1336_v8 = vld [vmem:[%s8264_s27 + $0xfe8] sm:$0xff] }
 0x31e   : > { %5941 = vmatpush1.bf16.msra.mxu0 %v7305_v13  ;;  %5901 = vmatprep.subr.bf16.mxu1 %v6898_v18  ;;  %v1071_v13 = vld [vmem:[%s8264_s27 + $0x7a0] sm:$0xff] }
 0x31f   : > { %5942 = vmatprep.subr.bf16.mxu0 %v7282_v20  ;;  %v1083_v18 = vld [vmem:[%s8264_s27 + $0x800] sm:$0xff] }
 0x320   : > { %v1455_v20 = vld [vmem:[%s8264_s27 + $0x13a0] sm:$0xff]  ;;  %v7114_v25 = vcombine.high %v1071_v13, %v1083_v18  ;;  %v7113_v32 = vcombine.low %v1071_v13, %v1083_v18  ;;  %v7403_v18 = vcombine.low %v1360_v61, %v1372_v62 }
 0x321   : > { %5902 = vmatpush1.bf16.msra.mxu1 %v6897_v27  ;;  %v7498_v27 = vcombine.high %v1455_v20, %v1467_v21  ;;  %v1443_v31 = vld [vmem:[%s8264_s27 + $0x1340] sm:$0xff]  ;;  %v7497_v33 = vcombine.low %v1455_v20, %v1467_v21 }
 0x322   : > { %5943 = vmatpush1.bf16.msra.mxu0 %v7281_v28  ;;  %5903 = vmatprep.subr.bf16.mxu1 %v6874_v29  ;;  %v1047_v28 = vld [vmem:[%s8264_s27 + $0x6e0] sm:$0xff] }
 0x323   : > { %5944 = vmatprep.subr.bf16.mxu0 %v7258_v30  ;;  %v1059_v29 = vld [vmem:[%s8264_s27 + $0x740] sm:$0xff] }
 0x324   : > { %v1431_v30 = vld [vmem:[%s8264_s27 + $0x12e0] sm:$0xff]  ;;  %v7090_v34 = vcombine.high %v1047_v28, %v1059_v29  ;;  %v7089_v43 = vcombine.low %v1047_v28, %v1059_v29 }
 0x325   : > { %5904 = vmatpush1.bf16.msra.mxu1 %v6873_v35  ;;  %v7474_v35 = vcombine.high %v1431_v30, %v1443_v31  ;;  %v1419_v42 = vld [vmem:[%s8264_s27 + $0x1280] sm:$0xff]  ;;  %v7473_v44 = vcombine.low %v1431_v30, %v1443_v31  ;;  %v1312_v30 = vld [vmem:[%s8264_s27 + $0xf28] sm:$0xff] }
 0x326   : > { %5945 = vmatpush1.bf16.msra.mxu0 %v7257_v36  ;;  %5905 = vmatprep.subr.bf16.mxu1 %v7234_v39  ;;  %v1023_v36 = vld [vmem:[%s8264_s27 + $0x620] sm:$0xff]  ;;  %v1324_v31 = vld [vmem:[%s8264_s27 + $0xf88] sm:$0xff] }
 0x327   : > { %5946 = vmatprep.subr.bf16.mxu0 %v7618_v41  ;;  %v1035_v39 = vld [vmem:[%s8264_s27 + $0x680] sm:$0xff] }
 0x328   : > { %v1407_v41 = vld [vmem:[%s8264_s27 + $0x1220] sm:$0xff]  ;;  %v7066_v45 = vcombine.high %v1023_v36, %v1035_v39  ;;  %v7065_v51 = vcombine.low %v1023_v36, %v1035_v39 }
 0x329   : > { %5906 = vmatpush2.bf16.msra.mxu1 %v7233_v46  ;;  %v7450_v46 = vcombine.high %v1407_v41, %v1419_v42  ;;  %v7449_v52 = vcombine.low %v1407_v41, %v1419_v42  ;;  %v7356_v41 = vcombine.high %v1312_v30, %v1324_v31  ;;  %v904_v42 = vld [vmem:[%s8264_s27 + $0x268] sm:$0xff] }
 0x32a   : > { %5947 = vmatpush2.bf16.msra.mxu0 %v7617_v47  ;;  %5907 = vmatprep.subr.bf16.mxu1 %v7210_v48  ;;  %v1000_v47 = vld [vmem:[%s8264_s27 + $0x568] sm:$0xff] }
 0x32b   : > { %5948 = vmatprep.subr.bf16.mxu0 %v7594_v49  ;;  %v1012_v48 = vld [vmem:[%s8264_s27 + $0x5c8] sm:$0xff] }
 0x32c   : > { %v1384_v49 = vld [vmem:[%s8264_s27 + $0x1168] sm:$0xff]  ;;  %v7044_v53 = vcombine.high %v1000_v47, %v1012_v48  ;;  %v7043_v60 = vcombine.low %v1000_v47, %v1012_v48  ;;  %v7355_v47 = vcombine.low %v1312_v30, %v1324_v31 }
 0x32d   : > { %5908 = vmatpush2.bf16.msra.mxu1 %v7209_v54  ;;  %v7428_v54 = vcombine.high %v1384_v49, %v1396_v50  ;;  %v7427_v63 = vcombine.low %v1384_v49, %v1396_v50  ;;  %v8044_v49 = vmov 1983009808   ;;  %v1204_v30 = vld [vmem:[%s8264_s27 + $0xbc8] sm:$0xff] }
 0x32e   : > { %5949 = vmatpush2.bf16.msra.mxu0 %v7593_v56  ;;  %5909 = vmatprep.subr.bf16.mxu1 %v7186_v58  ;;  %v976_v56 = vld [vmem:[%s8264_s27 + $0x4a8] sm:$0xff]  ;;  %v6596_v50 = vunpack.c.l.s4 %v8044_v49 }
 0x32f   : > { %5950 = vmatprep.subr.bf16.mxu0 %v7570_v59  ;;  %v988_v58 = vld [vmem:[%s8264_s27 + $0x508] sm:$0xff]  ;;  %v1612_v59 = vrot.slane %v8577_v6, %v8349_v55 }
 0x330   : > { %v6597_v61 = vunpack.c.0.s8 %v6596_v50  ;;  %v1576_v31 = vld [vmem:[%s8264_s27 + $0x1768] sm:$0xff] }
 0x331   : > { %5910 = vmatpush2.bf16.msra.mxu1 %v7185_v0  ;;  %v1616_v0 = vrot.slane %v8577_v6, %v8352_v57  ;;  %v1540_v49 = vld [vmem:[%s8264_s27 + $0x1648] sm:$0xff] }
 0x332   : > { %5951 = vmatpush2.bf16.msra.mxu0 %v7569_v1  ;;  %5911 = vmatprep.subr.bf16.mxu1 %v7162_v2  ;;  %v7020_v1 = vcombine.high %v976_v56, %v988_v58  ;;  %v952_v2 = vld [vmem:[%s8264_s27 + $0x3e8] sm:$0xff] }
 0x333   : > { %5952 = vmatprep.subr.bf16.mxu0 %v7546_v3  ;;  %v964_v3 = vld [vmem:[%s8264_s27 + $0x448] sm:$0xff] }
 0x334   : > { %v6996_v20 = vcombine.high %v952_v2, %v964_v3 }
 0x335   : > { %5912 = vmatpush2.bf16.msra.mxu1 %v7161_v9  ;;  %v1348_v9 = vld [vmem:[%s8264_s27 + $0x1048] sm:$0xff] }
 0x336   : > { %5953 = vmatpush2.bf16.msra.mxu0 %v7545_v10  ;;  %5913 = vmatprep.subr.bf16.mxu1 %v7138_v11  ;;  %v7019_v11 = vcombine.low %v976_v56, %v988_v58  ;;  %v7379_v36 = vcombine.low %v1336_v8, %v1348_v9  ;;  %v1276_v56 = vld [vmem:[%s8264_s27 + $0xe08] sm:$0xff] }
 0x337   : > { %5954 = vmatprep.subr.bf16.mxu0 %v7522_v12 }
 0x339   : > { %5914 = vmatpush2.bf16.msra.mxu1 %v7137_v22 }
 0x33a   : > { %5955 = vmatpush2.bf16.msra.mxu0 %v7521_v24  ;;  %5915 = vmatprep.subr.bf16.mxu1 %v7114_v25  ;;  %v7380_v24 = vcombine.high %v1336_v8, %v1348_v9  ;;  %v928_v25 = vld [vmem:[%s8264_s27 + $0x328] sm:$0xff]  ;;  %v8699_v8 = vsub.s32 %v6597_v61, %v8274_v37 }
 0x33b   : > { %5956 = vmatprep.subr.bf16.mxu0 %v7498_v27  ;;  %v940_v27 = vld [vmem:[%s8264_s27 + $0x388] sm:$0xff] }
 0x33c   : > { %v6972_v39 = vcombine.high %v928_v25, %v940_v27 }
 0x33d   : > { %5916 = vmatpush2.bf16.msra.mxu1 %v7113_v32 }
 0x33e   : > { %5957 = vmatpush2.bf16.msra.mxu0 %v7497_v33  ;;  %5917 = vmatprep.subr.bf16.mxu1 %v7090_v34  ;;  %v6995_v33 = vcombine.low %v952_v2, %v964_v3  ;;  %v1252_v2 = vld [vmem:[%s8264_s27 + $0xd48] sm:$0xff] }
 0x33f   : > { %5958 = vmatprep.subr.bf16.mxu0 %v7474_v35 }
 0x341   : > { %5918 = vmatpush2.bf16.msra.mxu1 %v7089_v43  ;;  %v916_v43 = vld [vmem:[%s8264_s27 + $0x2c8] sm:$0xff] }
 0x342   : > { %5959 = vmatpush2.bf16.msra.mxu0 %v7473_v44  ;;  %5919 = vmatprep.subr.bf16.mxu1 %v7066_v45  ;;  %v1288_v44 = vld [vmem:[%s8264_s27 + $0xe68] sm:$0xff]  ;;  %v6948_v48 = vcombine.high %v904_v42, %v916_v43  ;;  %v6947_v58 = vcombine.low %v904_v42, %v916_v43 }
 0x343   : > { %5960 = vmatprep.subr.bf16.mxu0 %v7450_v46  ;;  %v1300_v45 = vld [vmem:[%s8264_s27 + $0xec8] sm:$0xff]  ;;  %v6971_v46 = vcombine.low %v928_v25, %v940_v27  ;;  %v6601_v25 = vrot.slane %v6593_v26, %v8699_v8 }
 0x345   : > { %5920 = vmatpush2.bf16.msra.mxu1 %v7065_v51  ;;  %v7332_v51 = vcombine.high %v1288_v44, %v1300_v45 }
 0x346   : > { %5961 = vmatpush2.bf16.msra.mxu0 %v7449_v52  ;;  %5971 = vmatprep.subr.bf16.mxu1 %v7044_v53  ;;  %v880_v52 = vld [vmem:[%s8264_s27 + $0x1a8] sm:$0xff] }
 0x347   : > { %6012 = vmatprep.subr.bf16.mxu0 %v7428_v54  ;;  %v892_v53 = vld [vmem:[%s8264_s27 + $0x208] sm:$0xff] }
 0x348   : > { %v5677_v4 = vpop.f32.mrf.mxu1  ;;  %v5718_v5 = vpop.f32.mrf.mxu0  ;;  %5922 = vmatmul.mubr.bf16.vlgmr.msra.gmra.mxu1 %v8366_v16  ;;  %v1264_v54 = vld [vmem:[%s8264_s27 + $0xda8] sm:$0xff]  ;;  %v6923_v3 = vcombine.low %v880_v52, %v892_v53 }
 0x349   : > { %v5678_v10 = vadd.f32 %v5677_v4, %v1612_v59  ;;  %5963 = vmatmul.mubr.bf16.vlgmr.msra.gmra.mxu0 %v8368_v17  ;;  %5972 = vmatpush1.bf16.msra.mxu1 %v7043_v60  ;;  %v7331_v59 = vcombine.low %v1288_v44, %v1300_v45  ;;  %v6924_v60 = vcombine.high %v880_v52, %v892_v53 }
 0x34a   : > { %6003 = vmatprep.mubr.bf16.mxu1 %v8362_v14  ;;  %6013 = vmatpush1.bf16.msra.mxu0 %v7427_v63  ;;  %v5679_v12 = vpop.f32.mrf.mxu1  ;;  %v5720_v13 = vpop.f32.mrf.mxu0  ;;  %v7308_v62 = vcombine.high %v1264_v54, %v1276_v56  ;;  %v856_v63 = vld [vmem:[%s8264_s27 + $0xe8] sm:$0xff]  ;;  %v7307_v4 = vcombine.low %v1264_v54, %v1276_v56 }
 0x34b   : > { %v5719_v21 = vadd.f32 %v5718_v5, %v5678_v10  ;;  %6044 = vmatprep.mubr.bf16.mxu0 %v8364_v15  ;;  %v5680_v22 = vadd.f32 %v5679_v12, %v1616_v0  ;;  %5973 = vmatprep.subr.bf16.mxu1 %v7020_v1  ;;  %v868_v0 = vld [vmem:[%s8264_s27 + $0x148] sm:$0xff] }
 0x34c   : > { %v5681_v28 = vpop.f32.mrf.mxu1  ;;  %v5722_v29 = vpop.f32.mrf.mxu0  ;;  %6014 = vmatprep.subr.bf16.mxu0 %v7404_v7  ;;  %v1240_v1 = vld [vmem:[%s8264_s27 + $0xce8] sm:$0xff]  ;;  %v6900_v5 = vcombine.high %v856_v63, %v868_v0 }
 0x34d   : > { %v5721_v32 = vadd.f32 %v5720_v13, %v5680_v22  ;;  %5974 = vmatpush1.bf16.msra.mxu1 %v7019_v11  ;;  %7749 = vtanh.f32 %v5719_v21  ;;  %v7284_v9 = vcombine.high %v1240_v1, %v1252_v2  ;;  %v832_v10 = vld [vmem:[%s8264_s27 + $0x28] sm:$0xff]  ;;  %v6899_v21 = vcombine.low %v856_v63, %v868_v0 }
 0x34e   : > { %6015 = vmatpush1.bf16.msra.mxu0 %v7403_v18  ;;  %v5682_v34 = vpop.f32.mrf.mxu1  ;;  %v5723_v35 = vpop.f32.mrf.mxu0  ;;  %5975 = vmatprep.subr.bf16.mxu1 %v6996_v20  ;;  %v844_v11 = vld [vmem:[%s8264_s27 + $0x88] sm:$0xff]  ;;  %v7283_v22 = vcombine.low %v1240_v1, %v1252_v2 }
 0x34f   : > { %7751 = vtanh.f32 %v5721_v32  ;;  %6016 = vmatprep.subr.bf16.mxu0 %v7380_v24  ;;  %v1216_v13 = vld [vmem:[%s8264_s27 + $0xc28] sm:$0xff]  ;;  %v6876_v24 = vcombine.high %v832_v10, %v844_v11  ;;  %v6875_v23 = vcombine.low %v832_v10, %v844_v11 }
 0x350   : > { %v1228_v18 = vld [vmem:[%s8264_s27 + $0xc88] sm:$0xff] }
 0x351   : > { %5976 = vmatpush1.bf16.msra.mxu1 %v6995_v33  ;;  %v7260_v28 = vcombine.high %v1216_v13, %v1228_v18  ;;  %v1192_v29 = vld [vmem:[%s8264_s27 + $0xb68] sm:$0xff]  ;;  %v7259_v26 = vcombine.low %v1216_v13, %v1228_v18 }
 0x352   : > { %6017 = vmatpush1.bf16.msra.mxu0 %v7379_v36  ;;  %5977 = vmatprep.subr.bf16.mxu1 %v6972_v39  ;;  %v1588_v32 = vld [vmem:[%s8264_s27 + $0x17c8] sm:$0xff]  ;;  %v7236_v33 = vcombine.high %v1192_v29, %v1204_v30  ;;  %v7235_v42 = vcombine.low %v1192_v29, %v1204_v30 }
 0x353   : > { %6018 = vmatprep.subr.bf16.mxu0 %v7356_v41  ;;  %v7620_v34 = vcombine.high %v1576_v31, %v1588_v32  ;;  %v1168_v35 = vld [vmem:[%s8264_s27 + $0xaa8] sm:$0xff]  ;;  %v7619_v43 = vcombine.low %v1576_v31, %v1588_v32 }
 0x354   : > { %v1180_v36 = vld [vmem:[%s8264_s27 + $0xb08] sm:$0xff] }
 0x355   : > { %5978 = vmatpush1.bf16.msra.mxu1 %v6971_v46  ;;  %v1552_v39 = vld [vmem:[%s8264_s27 + $0x16a8] sm:$0xff]  ;;  %v7212_v44 = vcombine.high %v1168_v35, %v1180_v36  ;;  %v7211_v50 = vcombine.low %v1168_v35, %v1180_v36 }
 0x356   : > { %6019 = vmatpush1.bf16.msra.mxu0 %v7355_v47  ;;  %5979 = vmatprep.subr.bf16.mxu1 %v6948_v48  ;;  %v1564_v41 = vld [vmem:[%s8264_s27 + $0x1708] sm:$0xff] }
 0x357   : > { %6020 = vmatprep.subr.bf16.mxu0 %v7332_v51  ;;  %v7596_v45 = vcombine.high %v1552_v39, %v1564_v41  ;;  %v1144_v46 = vld [vmem:[%s8264_s27 + $0x9e8] sm:$0xff]  ;;  %v7595_v51 = vcombine.low %v1552_v39, %v1564_v41  ;;  %v1001_v41 = vld [vmem:[%s8264_s27 + $0x570] sm:$0xff] }
 0x358   : > { %v1156_v47 = vld [vmem:[%s8264_s27 + $0xa48] sm:$0xff] }
 0x359   : > { %5980 = vmatpush1.bf16.msra.mxu1 %v6947_v58  ;;  %v1528_v48 = vld [vmem:[%s8264_s27 + $0x15e8] sm:$0xff]  ;;  %v7188_v52 = vcombine.high %v1144_v46, %v1156_v47 }
 0x35a   : > { %6021 = vmatpush1.bf16.msra.mxu0 %v7331_v59  ;;  %5981 = vmatprep.subr.bf16.mxu1 %v6924_v60  ;;  %v7750_v7 = vpop.eup %7749  ;;  %v7572_v53 = vcombine.high %v1528_v48, %v1540_v49  ;;  %v1120_v54 = vld [vmem:[%s8264_s27 + $0x928] sm:$0xff]  ;;  %v7187_v60 = vcombine.low %v1144_v46, %v1156_v47  ;;  %v7571_v61 = vcombine.low %v1528_v48, %v1540_v49  ;;  %v8754_v46 = vsub.s32 4, %v8274_v37 }
 0x35b   : > { %6022 = vmatprep.subr.bf16.mxu0 %v7308_v62  ;;  %v1132_v56 = vld [vmem:[%s8264_s27 + $0x988] sm:$0xff] }
 0x35c   : > { %v7752_v12 = vpop.eup %7751  ;;  %v1504_v58 = vld [vmem:[%s8264_s27 + $0x1528] sm:$0xff]  ;;  %v7164_v62 = vcombine.high %v1120_v54, %v1132_v56 }
 0x35d   : > { %v6594_v20 = vcombine.low %v7750_v7, %v7752_v12  ;;  %5982 = vmatpush1.bf16.msra.mxu1 %v6923_v3  ;;  %v1516_v59 = vld [vmem:[%s8264_s27 + $0x1588] sm:$0xff] }
 0x35e   : > { %6023 = vmatpush1.bf16.msra.mxu0 %v7307_v4  ;;  %5983 = vmatprep.subr.bf16.mxu1 %v6900_v5  ;;  %v7548_v63 = vcombine.high %v1504_v58, %v1516_v59  ;;  %v1096_v0 = vld [vmem:[%s8264_s27 + $0x868] sm:$0xff]  ;;  %v7163_v4 = vcombine.low %v1120_v54, %v1132_v56  ;;  %v7547_v5 = vcombine.low %v1504_v58, %v1516_v59  ;;  %v1361_v56 = vld [vmem:[%s8264_s27 + $0x10b0] sm:$0xff] }
 0x35f   : > { %v6608_v27 = vrot.slane %v6594_v20, %v8699_v8  ;;  %6024 = vmatprep.subr.bf16.mxu0 %v7284_v9  ;;  %v1108_v1 = vld [vmem:[%s8264_s27 + $0x8c8] sm:$0xff]  ;;  %v1373_v58 = vld [vmem:[%s8264_s27 + $0x1110] sm:$0xff] }
 0x360   : > { %v1480_v2 = vld [vmem:[%s8264_s27 + $0x1468] sm:$0xff]  ;;  %v7140_v7 = vcombine.high %v1096_v0, %v1108_v1  ;;  %v7139_v18 = vcombine.low %v1096_v0, %v1108_v1  ;;  %v7406_v1 = vcombine.high %v1361_v56, %v1373_v58 }
 0x361   : > { %v6609_v19 = vcombine.low %v6601_v25, %v6608_v27  ;;  %5984 = vmatpush1.bf16.msra.mxu1 %v6899_v21  ;;  %v1492_v3 = vld [vmem:[%s8264_s27 + $0x14c8] sm:$0xff] }
 0x362   : > { %6025 = vmatpush1.bf16.msra.mxu0 %v7283_v22  ;;  %5985 = vmatprep.subr.bf16.mxu1 %v6876_v24  ;;  %v7524_v9 = vcombine.high %v1480_v2, %v1492_v3  ;;  %v1072_v10 = vld [vmem:[%s8264_s27 + $0x7a8] sm:$0xff]  ;;  %v7523_v20 = vcombine.low %v1480_v2, %v1492_v3  ;;  %v1337_v2 = vld [vmem:[%s8264_s27 + $0xff0] sm:$0xff] }
 0x363   : > { %6701 = vst [vmem:[%s8716_s10] sm:$0xff] %v6609_v19  ;;  %6026 = vmatprep.subr.bf16.mxu0 %v7260_v28  ;;  %v1084_v11 = vld [vmem:[%s8264_s27 + $0x808] sm:$0xff]  ;;  %v1349_v3 = vld [vmem:[%s8264_s27 + $0x1050] sm:$0xff] }
 0x364   : > { %v1456_v12 = vld [vmem:[%s8264_s27 + $0x13a8] sm:$0xff]  ;;  %v7116_v21 = vcombine.high %v1072_v10, %v1084_v11  ;;  %v7115_v29 = vcombine.low %v1072_v10, %v1084_v11 }
 0x365   : > { %5986 = vmatpush1.bf16.msra.mxu1 %v6875_v23  ;;  %v1468_v13 = vld [vmem:[%s8264_s27 + $0x1408] sm:$0xff] }
 0x366   : > { %6027 = vmatpush1.bf16.msra.mxu0 %v7259_v26  ;;  %5987 = vmatprep.subr.bf16.mxu1 %v7236_v33  ;;  %v7500_v22 = vcombine.high %v1456_v12, %v1468_v13  ;;  %v1048_v24 = vld [vmem:[%s8264_s27 + $0x6e8] sm:$0xff]  ;;  %v7499_v30 = vcombine.low %v1456_v12, %v1468_v13 }
 0x367   : > { %6028 = vmatprep.subr.bf16.mxu0 %v7620_v34  ;;  %v1060_v25 = vld [vmem:[%s8264_s27 + $0x748] sm:$0xff] }
 0x368   : > { %v1432_v27 = vld [vmem:[%s8264_s27 + $0x12e8] sm:$0xff]  ;;  %v7092_v31 = vcombine.high %v1048_v24, %v1060_v25  ;;  %v7091_v34 = vcombine.low %v1048_v24, %v1060_v25  ;;  %v1313_v24 = vld [vmem:[%s8264_s27 + $0xf30] sm:$0xff] }
 0x369   : > { %5988 = vmatpush2.bf16.msra.mxu1 %v7235_v42  ;;  %v1444_v28 = vld [vmem:[%s8264_s27 + $0x1348] sm:$0xff]  ;;  %v1013_v42 = vld [vmem:[%s8264_s27 + $0x5d0] sm:$0xff] }
 0x36a   : > { %6029 = vmatpush2.bf16.msra.mxu0 %v7619_v43  ;;  %5989 = vmatprep.subr.bf16.mxu1 %v7212_v44  ;;  %v7476_v32 = vcombine.high %v1432_v27, %v1444_v28  ;;  %v1024_v19 = vld [vmem:[%s8264_s27 + $0x628] sm:$0xff]  ;;  %v7475_v35 = vcombine.low %v1432_v27, %v1444_v28  ;;  %v1385_v43 = vld [vmem:[%s8264_s27 + $0x1170] sm:$0xff]  ;;  %v7046_v48 = vcombine.high %v1001_v41, %v1013_v42 }
 0x36b   : > { %6030 = vmatprep.subr.bf16.mxu0 %v7596_v45  ;;  %v1036_v23 = vld [vmem:[%s8264_s27 + $0x688] sm:$0xff]  ;;  %v1397_v44 = vld [vmem:[%s8264_s27 + $0x11d0] sm:$0xff]  ;;  %v7045_v54 = vcombine.low %v1001_v41, %v1013_v42 }
 0x36c   : > { %v1408_v26 = vld [vmem:[%s8264_s27 + $0x1228] sm:$0xff]  ;;  %v7068_v36 = vcombine.high %v1024_v19, %v1036_v23  ;;  %v7067_v45 = vcombine.low %v1024_v19, %v1036_v23  ;;  %v7430_v49 = vcombine.high %v1385_v43, %v1397_v44  ;;  %v7429_v59 = vcombine.low %v1385_v43, %v1397_v44  ;;  %v1325_v25 = vld [vmem:[%s8264_s27 + $0xf90] sm:$0xff] }
 0x36d   : > { %5990 = vmatpush2.bf16.msra.mxu1 %v7211_v50  ;;  %v1420_v33 = vld [vmem:[%s8264_s27 + $0x1288] sm:$0xff]  ;;  %v8757_v50 = vsub.s32 5, %v8274_v37  ;;  %v7358_v23 = vcombine.high %v1313_v24, %v1325_v25  ;;  %v881_v43 = vld [vmem:[%s8264_s27 + $0x1b0] sm:$0xff] }
 0x36e   : > { %6031 = vmatpush2.bf16.msra.mxu0 %v7595_v51  ;;  %5991 = vmatprep.subr.bf16.mxu1 %v7188_v52  ;;  %v7452_v39 = vcombine.high %v1408_v26, %v1420_v33  ;;  %v7451_v47 = vcombine.low %v1408_v26, %v1420_v33  ;;  %v977_v51 = vld [vmem:[%s8264_s27 + $0x4b0] sm:$0xff] }
 0x36f   : > { %6032 = vmatprep.subr.bf16.mxu0 %v7572_v53  ;;  %v989_v52 = vld [vmem:[%s8264_s27 + $0x510] sm:$0xff]  ;;  %v1620_v53 = vrot.slane %v8577_v6, %v8754_v46 }
 0x370   : > { %v905_v26 = vld [vmem:[%s8264_s27 + $0x270] sm:$0xff] }
 0x371   : > { %5992 = vmatpush2.bf16.msra.mxu1 %v7187_v60  ;;  %v1624_v60 = vrot.slane %v8577_v6, %v8757_v50  ;;  %v917_v33 = vld [vmem:[%s8264_s27 + $0x2d0] sm:$0xff] }
 0x372   : > { %6033 = vmatpush2.bf16.msra.mxu0 %v7571_v61  ;;  %5993 = vmatprep.subr.bf16.mxu1 %v7164_v62  ;;  %v7022_v61 = vcombine.high %v977_v51, %v989_v52  ;;  %v953_v62 = vld [vmem:[%s8264_s27 + $0x3f0] sm:$0xff]  ;;  %v6950_v41 = vcombine.high %v905_v26, %v917_v33 }
 0x373   : > { %6034 = vmatprep.subr.bf16.mxu0 %v7548_v63  ;;  %v965_v63 = vld [vmem:[%s8264_s27 + $0x450] sm:$0xff] }
 0x374   : > { %v6998_v10 = vcombine.high %v953_v62, %v965_v63  ;;  %v893_v44 = vld [vmem:[%s8264_s27 + $0x210] sm:$0xff] }
 0x375   : > { %5994 = vmatpush2.bf16.msra.mxu1 %v7163_v4 }
 0x376   : > { %6035 = vmatpush2.bf16.msra.mxu0 %v7547_v5  ;;  %5995 = vmatprep.subr.bf16.mxu1 %v7140_v7  ;;  %v7021_v7 = vcombine.low %v977_v51, %v989_v52  ;;  %v6926_v51 = vcombine.high %v881_v43, %v893_v44 }
 0x377   : > { %6036 = vmatprep.subr.bf16.mxu0 %v7524_v9  ;;  %v7405_v9 = vcombine.low %v1361_v56, %v1373_v58  ;;  %v1241_v56 = vld [vmem:[%s8264_s27 + $0xcf0] sm:$0xff] }
 0x378   : > { %v1253_v58 = vld [vmem:[%s8264_s27 + $0xd50] sm:$0xff] }
 0x379   : > { %5996 = vmatpush2.bf16.msra.mxu1 %v7139_v18  ;;  %v7382_v18 = vcombine.high %v1337_v2, %v1349_v3 }
 0x37a   : > { %6037 = vmatpush2.bf16.msra.mxu0 %v7523_v20  ;;  %5997 = vmatprep.subr.bf16.mxu1 %v7116_v21  ;;  %v929_v20 = vld [vmem:[%s8264_s27 + $0x330] sm:$0xff] }
 0x37b   : > { %6038 = vmatprep.subr.bf16.mxu0 %v7500_v22  ;;  %v941_v21 = vld [vmem:[%s8264_s27 + $0x390] sm:$0xff] }
 0x37d   : > { %5998 = vmatpush2.bf16.msra.mxu1 %v7115_v29  ;;  %v6997_v29 = vcombine.low %v953_v62, %v965_v63  ;;  %v7286_v63 = vcombine.high %v1241_v56, %v1253_v58 }
 0x37e   : > { %6039 = vmatpush2.bf16.msra.mxu0 %v7499_v30  ;;  %5999 = vmatprep.subr.bf16.mxu1 %v7092_v31  ;;  %v7381_v31 = vcombine.low %v1337_v2, %v1349_v3  ;;  %v1217_v3 = vld [vmem:[%s8264_s27 + $0xc30] sm:$0xff] }
 0x37f   : > { %6040 = vmatprep.subr.bf16.mxu0 %v7476_v32  ;;  %v6974_v32 = vcombine.high %v929_v20, %v941_v21 }
 0x381   : > { %6000 = vmatpush2.bf16.msra.mxu1 %v7091_v34  ;;  %v1289_v34 = vld [vmem:[%s8264_s27 + $0xe70] sm:$0xff] }
 0x382   : > { %6041 = vmatpush2.bf16.msra.mxu0 %v7475_v35  ;;  %6001 = vmatprep.subr.bf16.mxu1 %v7068_v36  ;;  %v1301_v35 = vld [vmem:[%s8264_s27 + $0xed0] sm:$0xff]  ;;  %v6973_v36 = vcombine.low %v929_v20, %v941_v21 }
 0x383   : > { %6042 = vmatprep.subr.bf16.mxu0 %v7452_v39  ;;  %v7357_v39 = vcombine.low %v1313_v24, %v1325_v25  ;;  %v7334_v42 = vcombine.high %v1289_v34, %v1301_v35  ;;  %v1169_v25 = vld [vmem:[%s8264_s27 + $0xab0] sm:$0xff] }
 0x385   : > { %6002 = vmatpush2.bf16.msra.mxu1 %v7067_v45  ;;  %v1265_v45 = vld [vmem:[%s8264_s27 + $0xdb0] sm:$0xff] }
 0x386   : > { %6043 = vmatpush2.bf16.msra.mxu0 %v7451_v47  ;;  %6053 = vmatprep.subr.bf16.mxu1 %v7046_v48  ;;  %v1277_v47 = vld [vmem:[%s8264_s27 + $0xe10] sm:$0xff]  ;;  %v6949_v48 = vcombine.low %v905_v26, %v917_v33 }
 0x387   : > { %6094 = vmatprep.subr.bf16.mxu0 %v7430_v49  ;;  %v7333_v49 = vcombine.low %v1289_v34, %v1301_v35  ;;  %v7310_v52 = vcombine.high %v1265_v45, %v1277_v47  ;;  %v1157_v26 = vld [vmem:[%s8264_s27 + $0xa50] sm:$0xff] }
 0x388   : > { %v5759_v0 = vpop.f32.mrf.mxu1  ;;  %6004 = vmatmul.mubr.bf16.vlgmr.msra.gmra.mxu1 %v8366_v16  ;;  %v1529_v33 = vld [vmem:[%s8264_s27 + $0x15f0] sm:$0xff] }
 0x389   : > { %v5760_v4 = vadd.f32 %v5759_v0, %v1620_v53  ;;  %v5800_v5 = vpop.f32.mrf.mxu0  ;;  %6045 = vmatmul.mubr.bf16.vlgmr.msra.gmra.mxu0 %v8368_v17  ;;  %6054 = vmatpush1.bf16.msra.mxu1 %v7045_v54  ;;  %v857_v53 = vld [vmem:[%s8264_s27 + $0xf0] sm:$0xff] }
 0x38a   : > { %6085 = vmatprep.mubr.bf16.mxu1 %v8362_v14  ;;  %6095 = vmatpush1.bf16.msra.mxu0 %v7429_v59  ;;  %v5761_v6 = vpop.f32.mrf.mxu1  ;;  %v869_v54 = vld [vmem:[%s8264_s27 + $0x150] sm:$0xff]  ;;  %v6925_v59 = vcombine.low %v881_v43, %v893_v44 }
 0x38b   : > { %v5801_v11 = vadd.f32 %v5800_v5, %v5760_v4  ;;  %6126 = vmatprep.mubr.bf16.mxu0 %v8364_v15  ;;  %v5762_v12 = vadd.f32 %v5761_v6, %v1624_v60  ;;  %v5802_v13 = vpop.f32.mrf.mxu0  ;;  %6055 = vmatprep.subr.bf16.mxu1 %v7022_v61  ;;  %v7309_v60 = vcombine.low %v1265_v45, %v1277_v47  ;;  %v833_v0 = vld [vmem:[%s8264_s27 + $0x30] sm:$0xff] }
 0x38c   : > { %v5763_v22 = vpop.f32.mrf.mxu1  ;;  %6096 = vmatprep.subr.bf16.mxu0 %v7406_v1  ;;  %v6902_v61 = vcombine.high %v857_v53, %v869_v54  ;;  %v845_v1 = vld [vmem:[%s8264_s27 + $0x90] sm:$0xff]  ;;  %v7285_v6 = vcombine.low %v1241_v56, %v1253_v58 }
 0x38d   : > { %v5803_v27 = vadd.f32 %v5802_v13, %v5762_v12  ;;  %v5804_v28 = vpop.f32.mrf.mxu0  ;;  %6056 = vmatpush1.bf16.msra.mxu1 %v7021_v7  ;;  %7753 = vtanh.f32 %v5801_v11  ;;  %v1229_v4 = vld [vmem:[%s8264_s27 + $0xc90] sm:$0xff]  ;;  %v6901_v7 = vcombine.low %v857_v53, %v869_v54  ;;  %v6877_v20 = vcombine.low %v833_v0, %v845_v1 }
 0x38e   : > { %6097 = vmatpush1.bf16.msra.mxu0 %v7405_v9  ;;  %v5764_v30 = vpop.f32.mrf.mxu1  ;;  %6057 = vmatprep.subr.bf16.mxu1 %v6998_v10  ;;  %v6878_v9 = vcombine.high %v833_v0, %v845_v1  ;;  %v7262_v10 = vcombine.high %v1217_v3, %v1229_v4  ;;  %v1193_v11 = vld [vmem:[%s8264_s27 + $0xb70] sm:$0xff]  ;;  %v7261_v21 = vcombine.low %v1217_v3, %v1229_v4 }
 0x38f   : > { %7755 = vtanh.f32 %v5803_v27  ;;  %v5805_v19 = vpop.f32.mrf.mxu0  ;;  %6098 = vmatprep.subr.bf16.mxu0 %v7382_v18  ;;  %v1205_v12 = vld [vmem:[%s8264_s27 + $0xbd0] sm:$0xff] }
 0x390   : > { %v1577_v13 = vld [vmem:[%s8264_s27 + $0x1770] sm:$0xff]  ;;  %v7238_v22 = vcombine.high %v1193_v11, %v1205_v12  ;;  %v7237_v30 = vcombine.low %v1193_v11, %v1205_v12 }
 0x391   : > { %6058 = vmatpush1.bf16.msra.mxu1 %v6997_v29  ;;  %v1589_v18 = vld [vmem:[%s8264_s27 + $0x17d0] sm:$0xff] }
 0x392   : > { %6099 = vmatpush1.bf16.msra.mxu0 %v7381_v31  ;;  %6059 = vmatprep.subr.bf16.mxu1 %v6974_v32  ;;  %v7622_v24 = vcombine.high %v1577_v13, %v1589_v18  ;;  %v1181_v27 = vld [vmem:[%s8264_s27 + $0xb10] sm:$0xff]  ;;  %v7621_v31 = vcombine.low %v1577_v13, %v1589_v18 }
 0x393   : > { %6100 = vmatprep.subr.bf16.mxu0 %v7358_v23  ;;  %v1553_v28 = vld [vmem:[%s8264_s27 + $0x16b0] sm:$0xff]  ;;  %v7214_v32 = vcombine.high %v1169_v25, %v1181_v27  ;;  %v7213_v35 = vcombine.low %v1169_v25, %v1181_v27 }
 0x394   : > { %v1565_v29 = vld [vmem:[%s8264_s27 + $0x1710] sm:$0xff] }
 0x395   : > { %6060 = vmatpush1.bf16.msra.mxu1 %v6973_v36  ;;  %v7598_v19 = vcombine.high %v1553_v28, %v1565_v29  ;;  %v1145_v23 = vld [vmem:[%s8264_s27 + $0x9f0] sm:$0xff]  ;;  %v7597_v36 = vcombine.low %v1553_v28, %v1565_v29 }
 0x396   : > { %6101 = vmatpush1.bf16.msra.mxu0 %v7357_v39  ;;  %6061 = vmatprep.subr.bf16.mxu1 %v6950_v41  ;;  %v1541_v34 = vld [vmem:[%s8264_s27 + $0x1650] sm:$0xff]  ;;  %v7190_v39 = vcombine.high %v1145_v23, %v1157_v26  ;;  %v7189_v47 = vcombine.low %v1145_v23, %v1157_v26  ;;  %v1014_v23 = vld [vmem:[%s8264_s27 + $0x5d8] sm:$0xff] }
 0x397   : > { %6102 = vmatprep.subr.bf16.mxu0 %v7334_v42  ;;  %v7574_v41 = vcombine.high %v1529_v33, %v1541_v34  ;;  %v1121_v42 = vld [vmem:[%s8264_s27 + $0x930] sm:$0xff]  ;;  %v1386_v26 = vld [vmem:[%s8264_s27 + $0x1178] sm:$0xff] }
 0x398   : > { %v1133_v43 = vld [vmem:[%s8264_s27 + $0x990] sm:$0xff] }
 0x399   : > { %6062 = vmatpush1.bf16.msra.mxu1 %v6949_v48  ;;  %v1505_v44 = vld [vmem:[%s8264_s27 + $0x1530] sm:$0xff]  ;;  %v7573_v48 = vcombine.low %v1529_v33, %v1541_v34  ;;  %v7165_v58 = vcombine.low %v1121_v42, %v1133_v43  ;;  %v1398_v33 = vld [vmem:[%s8264_s27 + $0x11d8] sm:$0xff] }
 0x39a   : > { %6103 = vmatpush1.bf16.msra.mxu0 %v7333_v49  ;;  %6063 = vmatprep.subr.bf16.mxu1 %v6926_v51  ;;  %v8791_v62 = vpop.eup %7753  ;;  %v1517_v45 = vld [vmem:[%s8264_s27 + $0x1590] sm:$0xff]  ;;  %v7166_v49 = vcombine.high %v1121_v42, %v1133_v43  ;;  %v8841_v42 = vsub.s32 7, %v8274_v37  ;;  %v978_v43 = vld [vmem:[%s8264_s27 + $0x4b8] sm:$0xff] }
 0x39b   : > { %6104 = vmatprep.subr.bf16.mxu0 %v7310_v52  ;;  %v7550_v51 = vcombine.high %v1505_v44, %v1517_v45  ;;  %v1097_v52 = vld [vmem:[%s8264_s27 + $0x870] sm:$0xff] }
 0x39c   : > { %v8795_v2 = vpop.eup %7755  ;;  %v1109_v53 = vld [vmem:[%s8264_s27 + $0x8d0] sm:$0xff] }
 0x39d   : > { %v6610_v5 = vcombine.low %v8791_v62, %v8795_v2  ;;  %6064 = vmatpush1.bf16.msra.mxu1 %v6925_v59  ;;  %v1481_v54 = vld [vmem:[%s8264_s27 + $0x1470] sm:$0xff]  ;;  %v7549_v59 = vcombine.low %v1505_v44, %v1517_v45  ;;  %v7141_v4 = vcombine.low %v1097_v52, %v1109_v53  ;;  %v990_v44 = vld [vmem:[%s8264_s27 + $0x518] sm:$0xff] }
 0x39e   : > { %6105 = vmatpush1.bf16.msra.mxu0 %v7309_v60  ;;  %6065 = vmatprep.subr.bf16.mxu1 %v6902_v61  ;;  %v1493_v56 = vld [vmem:[%s8264_s27 + $0x14d0] sm:$0xff]  ;;  %v7142_v60 = vcombine.high %v1097_v52, %v1109_v53  ;;  %v7793_v45 = vld [vmem:[%s8574_s22] sm:$0xff]  ;;  %v7431_v52 = vcombine.low %v1386_v26, %v1398_v33 }
 0x39f   : > { %6106 = vmatprep.subr.bf16.mxu0 %v7286_v63  ;;  %v7526_v61 = vcombine.high %v1481_v54, %v1493_v56  ;;  %v1073_v63 = vld [vmem:[%s8264_s27 + $0x7b0] sm:$0xff]  ;;  %v1632_v53 = vrot.slane %v7793_v45, %v8841_v42 }
 0x3a0   : > { %v1085_v0 = vld [vmem:[%s8264_s27 + $0x810] sm:$0xff] }
 0x3a1   : > { %6066 = vmatpush1.bf16.msra.mxu1 %v6901_v7  ;;  %v1457_v1 = vld [vmem:[%s8264_s27 + $0x13b0] sm:$0xff]  ;;  %v7525_v7 = vcombine.low %v1481_v54, %v1493_v56  ;;  %v7117_v18 = vcombine.low %v1073_v63, %v1085_v0  ;;  %v954_v54 = vld [vmem:[%s8264_s27 + $0x3f8] sm:$0xff] }
 0x3a2   : > { %6107 = vmatpush1.bf16.msra.mxu0 %v7285_v6  ;;  %6067 = vmatprep.subr.bf16.mxu1 %v6878_v9  ;;  %v1469_v3 = vld [vmem:[%s8264_s27 + $0x1410] sm:$0xff]  ;;  %v7118_v6 = vcombine.high %v1073_v63, %v1085_v0  ;;  %v966_v56 = vld [vmem:[%s8264_s27 + $0x458] sm:$0xff] }
 0x3a3   : > { %6108 = vmatprep.subr.bf16.mxu0 %v7262_v10  ;;  %v7502_v9 = vcombine.high %v1457_v1, %v1469_v3  ;;  %v1049_v10 = vld [vmem:[%s8264_s27 + $0x6f0] sm:$0xff] }
 0x3a4   : > { %v1061_v11 = vld [vmem:[%s8264_s27 + $0x750] sm:$0xff] }
 0x3a5   : > { %6068 = vmatpush1.bf16.msra.mxu1 %v6877_v20  ;;  %v1433_v12 = vld [vmem:[%s8264_s27 + $0x12f0] sm:$0xff]  ;;  %v7501_v20 = vcombine.low %v1457_v1, %v1469_v3  ;;  %v7093_v29 = vcombine.low %v1049_v10, %v1061_v11  ;;  %v7023_v1 = vcombine.low %v978_v43, %v990_v44 }
 0x3a6   : > { %6109 = vmatpush1.bf16.msra.mxu0 %v7261_v21  ;;  %6069 = vmatprep.subr.bf16.mxu1 %v7238_v22  ;;  %v1445_v13 = vld [vmem:[%s8264_s27 + $0x1350] sm:$0xff]  ;;  %v7094_v21 = vcombine.high %v1049_v10, %v1061_v11 }
 0x3a7   : > { %6110 = vmatprep.subr.bf16.mxu0 %v7622_v24  ;;  %v7478_v22 = vcombine.high %v1433_v12, %v1445_v13  ;;  %v1025_v24 = vld [vmem:[%s8264_s27 + $0x630] sm:$0xff] }
 0x3a8   : > { %v1037_v25 = vld [vmem:[%s8264_s27 + $0x690] sm:$0xff] }
 0x3a9   : > { %6070 = vmatpush2.bf16.msra.mxu1 %v7237_v30  ;;  %v1409_v27 = vld [vmem:[%s8264_s27 + $0x1230] sm:$0xff]  ;;  %v7477_v30 = vcombine.low %v1433_v12, %v1445_v13  ;;  %v7069_v34 = vcombine.low %v1025_v24, %v1037_v25  ;;  %v930_v12 = vld [vmem:[%s8264_s27 + $0x338] sm:$0xff] }
 0x3aa   : > { %6111 = vmatpush2.bf16.msra.mxu0 %v7621_v31  ;;  %6071 = vmatprep.subr.bf16.mxu1 %v7214_v32  ;;  %v1421_v28 = vld [vmem:[%s8264_s27 + $0x1290] sm:$0xff]  ;;  %v7070_v31 = vcombine.high %v1025_v24, %v1037_v25  ;;  %v942_v13 = vld [vmem:[%s8264_s27 + $0x398] sm:$0xff]  ;;  %v6999_v25 = vcombine.low %v954_v54, %v966_v56 }
 0x3ab   : > { %6112 = vmatprep.subr.bf16.mxu0 %v7598_v19  ;;  %v7454_v32 = vcombine.high %v1409_v27, %v1421_v28  ;;  %v1002_v19 = vld [vmem:[%s8264_s27 + $0x578] sm:$0xff] }
 0x3ad   : > { %6072 = vmatpush2.bf16.msra.mxu1 %v7213_v35  ;;  %v8838_v35 = vsub.s32 6, %v8274_v37  ;;  %v7024_v37 = vcombine.high %v978_v43, %v990_v44  ;;  %v894_v43 = vld [vmem:[%s8264_s27 + $0x218] sm:$0xff] }
 0x3ae   : > { %6113 = vmatpush2.bf16.msra.mxu0 %v7597_v36  ;;  %6073 = vmatprep.subr.bf16.mxu1 %v7190_v39  ;;  %v7453_v36 = vcombine.low %v1409_v27, %v1421_v28  ;;  %v7048_v39 = vcombine.high %v1002_v19, %v1014_v23  ;;  %v1266_v44 = vld [vmem:[%s8264_s27 + $0xdb8] sm:$0xff] }
 0x3af   : > { %6114 = vmatprep.subr.bf16.mxu0 %v7574_v41  ;;  %v7432_v41 = vcombine.high %v1386_v26, %v1398_v33  ;;  %v1302_v26 = vld [vmem:[%s8264_s27 + $0xed8] sm:$0xff]  ;;  %v6975_v33 = vcombine.low %v930_v12, %v942_v13 }
 0x3b1   : > { %6074 = vmatpush2.bf16.msra.mxu1 %v7189_v47  ;;  %v1628_v47 = vrot.slane %v7793_v45, %v8838_v35  ;;  %v1278_v45 = vld [vmem:[%s8264_s27 + $0xe18] sm:$0xff] }
 0x3b2   : > { %6115 = vmatpush2.bf16.msra.mxu0 %v7573_v48  ;;  %6075 = vmatprep.subr.bf16.mxu1 %v7166_v49  ;;  %v7047_v48 = vcombine.low %v1002_v19, %v1014_v23  ;;  %v1362_v49 = vld [vmem:[%s8264_s27 + $0x10b8] sm:$0xff] }
 0x3b3   : > { %6116 = vmatprep.subr.bf16.mxu0 %v7550_v51  ;;  %v1374_v51 = vld [vmem:[%s8264_s27 + $0x1118] sm:$0xff] }
 0x3b4   : > { %v918_v19 = vld [vmem:[%s8264_s27 + $0x2d8] sm:$0xff] }
 0x3b5   : > { %6076 = vmatpush2.bf16.msra.mxu1 %v7165_v58  ;;  %v1290_v23 = vld [vmem:[%s8264_s27 + $0xe78] sm:$0xff] }
 0x3b6   : > { %6117 = vmatpush2.bf16.msra.mxu0 %v7549_v59  ;;  %6077 = vmatprep.subr.bf16.mxu1 %v7142_v60  ;;  %v7408_v59 = vcombine.high %v1362_v49, %v1374_v51  ;;  %v1338_v60 = vld [vmem:[%s8264_s27 + $0xff8] sm:$0xff] }
 0x3b7   : > { %6118 = vmatprep.subr.bf16.mxu0 %v7526_v61  ;;  %v1350_v61 = vld [vmem:[%s8264_s27 + $0x1058] sm:$0xff] }
 0x3b8   : > { %v7384_v11 = vcombine.high %v1338_v60, %v1350_v61  ;;  %v7383_v28 = vcombine.low %v1338_v60, %v1350_v61 }
 0x3b9   : > { %6078 = vmatpush2.bf16.msra.mxu1 %v7141_v4  ;;  %v7407_v4 = vcombine.low %v1362_v49, %v1374_v51  ;;  %v7312_v51 = vcombine.high %v1266_v44, %v1278_v45 }
 0x3ba   : > { %6119 = vmatpush2.bf16.msra.mxu0 %v7525_v7  ;;  %6079 = vmatprep.subr.bf16.mxu1 %v7118_v6  ;;  %v7000_v7 = vcombine.high %v954_v54, %v966_v56  ;;  %v1254_v54 = vld [vmem:[%s8264_s27 + $0xd58] sm:$0xff] }
 0x3bb   : > { %6120 = vmatprep.subr.bf16.mxu0 %v7502_v9 }
 0x3bd   : > { %6080 = vmatpush2.bf16.msra.mxu1 %v7117_v18 }
 0x3be   : > { %6121 = vmatpush2.bf16.msra.mxu0 %v7501_v20  ;;  %6081 = vmatprep.subr.bf16.mxu1 %v7094_v21  ;;  %v1314_v20 = vld [vmem:[%s8264_s27 + $0xf38] sm:$0xff] }
 0x3bf   : > { %6122 = vmatprep.subr.bf16.mxu0 %v7478_v22  ;;  %v1326_v21 = vld [vmem:[%s8264_s27 + $0xf98] sm:$0xff] }
 0x3c1   : > { %6082 = vmatpush2.bf16.msra.mxu1 %v7093_v29  ;;  %v6976_v29 = vcombine.high %v930_v12, %v942_v13 }
 0x3c2   : > { %6123 = vmatpush2.bf16.msra.mxu0 %v7477_v30  ;;  %6083 = vmatprep.subr.bf16.mxu1 %v7070_v31  ;;  %v7360_v31 = vcombine.high %v1314_v20, %v1326_v21 }
 0x3c3   : > { %6124 = vmatprep.subr.bf16.mxu0 %v7454_v32  ;;  %v906_v32 = vld [vmem:[%s8264_s27 + $0x278] sm:$0xff] }
 0x3c5   : > { %6084 = vmatpush2.bf16.msra.mxu1 %v7069_v34  ;;  %v7359_v34 = vcombine.low %v1314_v20, %v1326_v21  ;;  %v1206_v20 = vld [vmem:[%s8264_s27 + $0xbd8] sm:$0xff] }
 0x3c6   : > { %6125 = vmatpush2.bf16.msra.mxu0 %v7453_v36  ;;  %6135 = vmatprep.subr.bf16.mxu1 %v7048_v39  ;;  %v6952_v36 = vcombine.high %v906_v32, %v918_v19  ;;  %v7336_v39 = vcombine.high %v1290_v23, %v1302_v26  ;;  %v1578_v21 = vld [vmem:[%s8264_s27 + $0x1778] sm:$0xff] }
 0x3c7   : > { %6176 = vmatprep.subr.bf16.mxu0 %v7432_v41  ;;  %v882_v41 = vld [vmem:[%s8264_s27 + $0x1b8] sm:$0xff] }
 0x3c8   : > { %v5841_v58 = vpop.f32.mrf.mxu1  ;;  %6086 = vmatmul.mubr.bf16.vlgmr.msra.gmra.mxu1 %v8366_v16  ;;  %v6928_v49 = vcombine.high %v882_v41, %v894_v43  ;;  %v6927_v56 = vcombine.low %v882_v41, %v894_v43 }
 0x3c9   : > { %v5842_v63 = vadd.f32 %v5841_v58, %v1628_v47  ;;  %v5882_v0 = vpop.f32.mrf.mxu0  ;;  %6127 = vmatmul.mubr.bf16.vlgmr.msra.gmra.mxu0 %v8368_v17  ;;  %6136 = vmatpush1.bf16.msra.mxu1 %v7047_v48  ;;  %v6951_v47 = vcombine.low %v906_v32, %v918_v19  ;;  %v7335_v48 = vcombine.low %v1290_v23, %v1302_v26  ;;  %v1146_v26 = vld [vmem:[%s8264_s27 + $0x9f8] sm:$0xff] }
 0x3ca   : > { %6167 = vmatprep.mubr.bf16.mxu1 %v8362_v14  ;;  %6177 = vmatpush1.bf16.msra.mxu0 %v7431_v52  ;;  %v5843_v3 = vpop.f32.mrf.mxu1  ;;  %v858_v52 = vld [vmem:[%s8264_s27 + $0xf8] sm:$0xff]  ;;  %v7311_v58 = vcombine.low %v1266_v44, %v1278_v45 }
 0x3cb   : > { %v5883_v6 = vadd.f32 %v5882_v0, %v5842_v63  ;;  %6208 = vmatprep.mubr.bf16.mxu0 %v8364_v15  ;;  %v5844_v9 = vadd.f32 %v5843_v3, %v1632_v53  ;;  %v5884_v10 = vpop.f32.mrf.mxu0  ;;  %6137 = vmatprep.subr.bf16.mxu1 %v7024_v37  ;;  %v870_v53 = vld [vmem:[%s8264_s27 + $0x158] sm:$0xff] }
 0x3cc   : > { %v5845_v18 = vpop.f32.mrf.mxu1  ;;  %6178 = vmatprep.subr.bf16.mxu0 %v7408_v59  ;;  %v1242_v37 = vld [vmem:[%s8264_s27 + $0xcf8] sm:$0xff]  ;;  %v6904_v59 = vcombine.high %v858_v52, %v870_v53 }
 0x3cd   : > { %v5885_v22 = vadd.f32 %v5884_v10, %v5844_v9  ;;  %v5886_v24 = vpop.f32.mrf.mxu0  ;;  %6138 = vmatpush1.bf16.msra.mxu1 %v7023_v1  ;;  %7757 = vtanh.f32 %v5883_v6  ;;  %v7288_v61 = vcombine.high %v1242_v37, %v1254_v54  ;;  %v834_v63 = vld [vmem:[%s8264_s27 + $0x38] sm:$0xff]  ;;  %v6903_v6 = vcombine.low %v858_v52, %v870_v53 }
 0x3ce   : > { %6179 = vmatpush1.bf16.msra.mxu0 %v7407_v4  ;;  %v5846_v27 = vpop.f32.mrf.mxu1  ;;  %6139 = vmatprep.subr.bf16.mxu1 %v7000_v7  ;;  %v846_v0 = vld [vmem:[%s8264_s27 + $0x98] sm:$0xff]  ;;  %v7287_v9 = vcombine.low %v1242_v37, %v1254_v54 }
 0x3cf   : > { %7759 = vtanh.f32 %v5885_v22  ;;  %v5887_v30 = vpop.f32.mrf.mxu0  ;;  %6180 = vmatprep.subr.bf16.mxu0 %v7384_v11  ;;  %v1218_v3 = vld [vmem:[%s8264_s27 + $0xc38] sm:$0xff]  ;;  %v6880_v10 = vcombine.high %v834_v63, %v846_v0  ;;  %v6618_v11 = vrot.slane %v6610_v5, %v8699_v8 }
 0x3d0   : > { %v1230_v4 = vld [vmem:[%s8264_s27 + $0xc98] sm:$0xff] }
 0x3d1   : > { %6140 = vmatpush1.bf16.msra.mxu1 %v6999_v25  ;;  %v7264_v13 = vcombine.high %v1218_v3, %v1230_v4  ;;  %v1194_v18 = vld [vmem:[%s8264_s27 + $0xb78] sm:$0xff]  ;;  %v6879_v25 = vcombine.low %v834_v63, %v846_v0  ;;  %v7263_v62 = vcombine.low %v1218_v3, %v1230_v4 }
 0x3d2   : > { %6181 = vmatpush1.bf16.msra.mxu0 %v7383_v28  ;;  %6141 = vmatprep.subr.bf16.mxu1 %v6976_v29  ;;  %v1590_v22 = vld [vmem:[%s8264_s27 + $0x17d8] sm:$0xff]  ;;  %v7240_v2 = vcombine.high %v1194_v18, %v1206_v20 }
 0x3d3   : > { %6182 = vmatprep.subr.bf16.mxu0 %v7360_v31  ;;  %v7624_v5 = vcombine.high %v1578_v21, %v1590_v22  ;;  %v1170_v27 = vld [vmem:[%s8264_s27 + $0xab8] sm:$0xff]  ;;  %v7239_v31 = vcombine.low %v1194_v18, %v1206_v20  ;;  %v7623_v32 = vcombine.low %v1578_v21, %v1590_v22 }
 0x3d4   : > { %v1182_v28 = vld [vmem:[%s8264_s27 + $0xb18] sm:$0xff] }
 0x3d5   : > { %6142 = vmatpush1.bf16.msra.mxu1 %v6975_v33  ;;  %v1554_v29 = vld [vmem:[%s8264_s27 + $0x16b8] sm:$0xff]  ;;  %v7216_v19 = vcombine.high %v1170_v27, %v1182_v28 }
 0x3d6   : > { %6183 = vmatpush1.bf16.msra.mxu0 %v7359_v34  ;;  %6143 = vmatprep.subr.bf16.mxu1 %v6952_v36  ;;  %v1566_v30 = vld [vmem:[%s8264_s27 + $0x1718] sm:$0xff] }
 0x3d7   : > { %6184 = vmatprep.subr.bf16.mxu0 %v7336_v39  ;;  %v7600_v23 = vcombine.high %v1554_v29, %v1566_v30  ;;  %v1158_v33 = vld [vmem:[%s8264_s27 + $0xa58] sm:$0xff]  ;;  %v7215_v39 = vcombine.low %v1170_v27, %v1182_v28  ;;  %v7599_v41 = vcombine.low %v1554_v29, %v1566_v30 }
 0x3d8   : > { %v1530_v34 = vld [vmem:[%s8264_s27 + $0x15f8] sm:$0xff]  ;;  %v7192_v43 = vcombine.high %v1146_v26, %v1158_v33 }
 0x3d9   : > { %6144 = vmatpush1.bf16.msra.mxu1 %v6951_v47  ;;  %v1542_v36 = vld [vmem:[%s8264_s27 + $0x1658] sm:$0xff] }
 0x3da   : > { %6185 = vmatpush1.bf16.msra.mxu0 %v7335_v48  ;;  %6145 = vmatprep.subr.bf16.mxu1 %v6928_v49  ;;  %v7758_v60 = vpop.eup %7757  ;;  %v7576_v44 = vcombine.high %v1530_v34, %v1542_v36  ;;  %v1122_v45 = vld [vmem:[%s8264_s27 + $0x938] sm:$0xff]  ;;  %v7575_v52 = vcombine.low %v1530_v34, %v1542_v36  ;;  %v8921_v36 = vld [vmem:[%s8574_s22 + $0x8] sm:$0xff] }
 0x3db   : > { %6186 = vmatprep.subr.bf16.mxu0 %v7312_v51  ;;  %v1134_v47 = vld [vmem:[%s8264_s27 + $0x998] sm:$0xff]  ;;  %v7191_v51 = vcombine.low %v1146_v26, %v1158_v33  ;;  %v1399_v26 = vld [vmem:[%s8264_s27 + $0x11e0] sm:$0xff] }
 0x3dc   : > { %v7760_v1 = vpop.eup %7759  ;;  %v1506_v48 = vld [vmem:[%s8264_s27 + $0x1538] sm:$0xff]  ;;  %v7168_v53 = vcombine.high %v1122_v45, %v1134_v47 }
 0x3dd   : > { %v6611_v7 = vcombine.low %v7758_v60, %v7760_v1  ;;  %6146 = vmatpush1.bf16.msra.mxu1 %v6927_v56  ;;  %v1518_v49 = vld [vmem:[%s8264_s27 + $0x1598] sm:$0xff]  ;;  %v7167_v60 = vcombine.low %v1122_v45, %v1134_v47  ;;  %v1636_v45 = vrot.slane %v8921_v36, %v8277_v38 }
 0x3de   : > { %6187 = vmatpush1.bf16.msra.mxu0 %v7311_v58  ;;  %6147 = vmatprep.subr.bf16.mxu1 %v6904_v59  ;;  %v7552_v37 = vcombine.high %v1506_v48, %v1518_v49  ;;  %v1098_v54 = vld [vmem:[%s8264_s27 + $0x878] sm:$0xff] }
 0x3df   : > { %v6625_v12 = vrot.slane %v6611_v7, %v8699_v8  ;;  %6188 = vmatprep.subr.bf16.mxu0 %v7288_v61  ;;  %v1110_v56 = vld [vmem:[%s8264_s27 + $0x8d8] sm:$0xff]  ;;  %v7551_v61 = vcombine.low %v1506_v48, %v1518_v49  ;;  %v1363_v48 = vld [vmem:[%s8264_s27 + $0x10c0] sm:$0xff] }
 0x3e0   : > { %v1482_v58 = vld [vmem:[%s8264_s27 + $0x1478] sm:$0xff]  ;;  %v7144_v63 = vcombine.high %v1098_v54, %v1110_v56  ;;  %v1375_v49 = vld [vmem:[%s8264_s27 + $0x1120] sm:$0xff] }
 0x3e1   : > { %v6626_v24 = vcombine.low %v6618_v11, %v6625_v12  ;;  %6148 = vmatpush1.bf16.msra.mxu1 %v6903_v6  ;;  %v1494_v59 = vld [vmem:[%s8264_s27 + $0x14d8] sm:$0xff]  ;;  %v7143_v6 = vcombine.low %v1098_v54, %v1110_v56  ;;  %v967_v54 = vld [vmem:[%s8264_s27 + $0x460] sm:$0xff] }
 0x3e2   : > { %6189 = vmatpush1.bf16.msra.mxu0 %v7287_v9  ;;  %6149 = vmatprep.subr.bf16.mxu1 %v6880_v10  ;;  %v7528_v0 = vcombine.high %v1482_v58, %v1494_v59  ;;  %v1074_v1 = vld [vmem:[%s8264_s27 + $0x7b8] sm:$0xff]  ;;  %v7527_v9 = vcombine.low %v1482_v58, %v1494_v59  ;;  %v7410_v58 = vcombine.high %v1363_v48, %v1375_v49  ;;  %v1339_v59 = vld [vmem:[%s8264_s27 + $0x1000] sm:$0xff] }
 0x3e3   : > { %6702 = vst [vmem:[%s8716_s10 + $0x8] sm:$0xff] %v6626_v24  ;;  %6190 = vmatprep.subr.bf16.mxu0 %v7264_v13  ;;  %v1086_v3 = vld [vmem:[%s8264_s27 + $0x818] sm:$0xff] }
 0x3e4   : > { %v1458_v4 = vld [vmem:[%s8264_s27 + $0x13b8] sm:$0xff]  ;;  %v7120_v10 = vcombine.high %v1074_v1, %v1086_v3  ;;  %v7119_v21 = vcombine.low %v1074_v1, %v1086_v3  ;;  %v7409_v3 = vcombine.low %v1363_v48, %v1375_v49  ;;  %v859_v48 = vld [vmem:[%s8264_s27 + $0x100] sm:$0xff] }
 0x3e5   : > { %6150 = vmatpush1.bf16.msra.mxu1 %v6879_v25  ;;  %v1470_v7 = vld [vmem:[%s8264_s27 + $0x1418] sm:$0xff]  ;;  %v871_v49 = vld [vmem:[%s8264_s27 + $0x160] sm:$0xff] }
 0x3e6   : > { %6191 = vmatpush1.bf16.msra.mxu0 %v7263_v62  ;;  %6151 = vmatprep.subr.bf16.mxu1 %v7240_v2  ;;  %v7504_v11 = vcombine.high %v1458_v4, %v1470_v7  ;;  %v1050_v12 = vld [vmem:[%s8264_s27 + $0x6f8] sm:$0xff]  ;;  %v7503_v22 = vcombine.low %v1458_v4, %v1470_v7 }
 0x3e7   : > { %6192 = vmatprep.subr.bf16.mxu0 %v7624_v5  ;;  %v1062_v13 = vld [vmem:[%s8264_s27 + $0x758] sm:$0xff] }
 0x3e8   : > { %v1434_v18 = vld [vmem:[%s8264_s27 + $0x12f8] sm:$0xff]  ;;  %v7096_v24 = vcombine.high %v1050_v12, %v1062_v13  ;;  %v7095_v28 = vcombine.low %v1050_v12, %v1062_v13  ;;  %v943_v12 = vld [vmem:[%s8264_s27 + $0x3a0] sm:$0xff] }
 0x3e9   : > { %6152 = vmatpush2.bf16.msra.mxu1 %v7239_v31  ;;  %v1446_v20 = vld [vmem:[%s8264_s27 + $0x1358] sm:$0xff] }
 0x3ea   : > { %6193 = vmatpush2.bf16.msra.mxu0 %v7623_v32  ;;  %6153 = vmatprep.subr.bf16.mxu1 %v7216_v19  ;;  %v7480_v25 = vcombine.high %v1434_v18, %v1446_v20  ;;  %v1026_v62 = vld [vmem:[%s8264_s27 + $0x638] sm:$0xff]  ;;  %v7479_v29 = vcombine.low %v1434_v18, %v1446_v20  ;;  %v1003_v32 = vld [vmem:[%s8264_s27 + $0x580] sm:$0xff] }
 0x3eb   : > { %6194 = vmatprep.subr.bf16.mxu0 %v7600_v23  ;;  %v1038_v2 = vld [vmem:[%s8264_s27 + $0x698] sm:$0xff]  ;;  %v1015_v19 = vld [vmem:[%s8264_s27 + $0x5e0] sm:$0xff] }
 0x3ec   : > { %v1410_v5 = vld [vmem:[%s8264_s27 + $0x1238] sm:$0xff]  ;;  %v7072_v30 = vcombine.high %v1026_v62, %v1038_v2  ;;  %v1387_v23 = vld [vmem:[%s8264_s27 + $0x1180] sm:$0xff]  ;;  %v7071_v33 = vcombine.low %v1026_v62, %v1038_v2  ;;  %v7049_v47 = vcombine.low %v1003_v32, %v1015_v19 }
 0x3ed   : > { %6154 = vmatpush2.bf16.msra.mxu1 %v7215_v39  ;;  %v1422_v27 = vld [vmem:[%s8264_s27 + $0x1298] sm:$0xff]  ;;  %v7050_v39 = vcombine.high %v1003_v32, %v1015_v19  ;;  %v1315_v18 = vld [vmem:[%s8264_s27 + $0xf40] sm:$0xff] }
 0x3ee   : > { %6195 = vmatpush2.bf16.msra.mxu0 %v7599_v41  ;;  %6155 = vmatprep.subr.bf16.mxu1 %v7192_v43  ;;  %v7456_v31 = vcombine.high %v1410_v5, %v1422_v27  ;;  %v7455_v34 = vcombine.low %v1410_v5, %v1422_v27  ;;  %v7434_v41 = vcombine.high %v1387_v23, %v1399_v26  ;;  %v979_v43 = vld [vmem:[%s8264_s27 + $0x4c0] sm:$0xff] }
 0x3ef   : > { %6196 = vmatprep.subr.bf16.mxu0 %v7576_v44  ;;  %v991_v44 = vld [vmem:[%s8264_s27 + $0x520] sm:$0xff] }
 0x3f0   : > { %v1327_v20 = vld [vmem:[%s8264_s27 + $0xfa0] sm:$0xff] }
 0x3f1   : > { %6156 = vmatpush2.bf16.msra.mxu1 %v7191_v51  ;;  %v7433_v51 = vcombine.low %v1387_v23, %v1399_v26  ;;  %v7362_v27 = vcombine.high %v1315_v18, %v1327_v20  ;;  %v7361_v19 = vcombine.low %v1315_v18, %v1327_v20 }
 0x3f2   : > { %6197 = vmatpush2.bf16.msra.mxu0 %v7575_v52  ;;  %6157 = vmatprep.subr.bf16.mxu1 %v7168_v53  ;;  %v1640_v52 = vrot.slane %v8921_v36, %v8280_v40  ;;  %v7026_v53 = vcombine.high %v979_v43, %v991_v44 }
 0x3f3   : > { %6198 = vmatprep.subr.bf16.mxu0 %v7552_v37  ;;  %v955_v37 = vld [vmem:[%s8264_s27 + $0x400] sm:$0xff] }
 0x3f4   : > { %v7002_v4 = vcombine.high %v955_v37, %v967_v54 }
 0x3f5   : > { %6158 = vmatpush2.bf16.msra.mxu1 %v7167_v60  ;;  %v1351_v60 = vld [vmem:[%s8264_s27 + $0x1060] sm:$0xff] }
 0x3f6   : > { %6199 = vmatpush2.bf16.msra.mxu0 %v7551_v61  ;;  %6159 = vmatprep.subr.bf16.mxu1 %v7144_v63  ;;  %v7385_v62 = vcombine.low %v1339_v59, %v1351_v60 }
 0x3f7   : > { %6200 = vmatprep.subr.bf16.mxu0 %v7528_v0  ;;  %v7025_v0 = vcombine.low %v979_v43, %v991_v44 }
 0x3f9   : > { %6160 = vmatpush2.bf16.msra.mxu1 %v7143_v6 }
 0x3fa   : > { %6201 = vmatpush2.bf16.msra.mxu0 %v7527_v9  ;;  %6161 = vmatprep.subr.bf16.mxu1 %v7120_v10  ;;  %v7386_v10 = vcombine.high %v1339_v59, %v1351_v60  ;;  %v835_v59 = vld [vmem:[%s8264_s27 + $0x40] sm:$0xff] }
 0x3fb   : > { %6202 = vmatprep.subr.bf16.mxu0 %v7504_v11  ;;  %v931_v11 = vld [vmem:[%s8264_s27 + $0x340] sm:$0xff] }
 0x3fc   : > { %v6978_v2 = vcombine.high %v931_v11, %v943_v12  ;;  %v6977_v32 = vcombine.low %v931_v11, %v943_v12  ;;  %v847_v60 = vld [vmem:[%s8264_s27 + $0xa0] sm:$0xff] }
 0x3fd   : > { %6162 = vmatpush2.bf16.msra.mxu1 %v7119_v21  ;;  %v1579_v11 = vld [vmem:[%s8264_s27 + $0x1780] sm:$0xff] }
 0x3fe   : > { %6203 = vmatpush2.bf16.msra.mxu0 %v7503_v22  ;;  %6163 = vmatprep.subr.bf16.mxu1 %v7096_v24  ;;  %v7001_v24 = vcombine.low %v955_v37, %v967_v54  ;;  %v6906_v54 = vcombine.high %v859_v48, %v871_v49  ;;  %v1591_v12 = vld [vmem:[%s8264_s27 + $0x17e0] sm:$0xff] }
 0x3ff   : > { %6204 = vmatprep.subr.bf16.mxu0 %v7480_v25 }
 0x401   : > { %6164 = vmatpush2.bf16.msra.mxu1 %v7095_v28  ;;  %v907_v28 = vld [vmem:[%s8264_s27 + $0x280] sm:$0xff] }
 0x402   : > { %6205 = vmatpush2.bf16.msra.mxu0 %v7479_v29  ;;  %6165 = vmatprep.subr.bf16.mxu1 %v7072_v30  ;;  %v919_v29 = vld [vmem:[%s8264_s27 + $0x2e0] sm:$0xff] }
 0x403   : > { %6206 = vmatprep.subr.bf16.mxu0 %v7456_v31  ;;  %v1291_v30 = vld [vmem:[%s8264_s27 + $0xe80] sm:$0xff]  ;;  %v6954_v23 = vcombine.high %v907_v28, %v919_v29  ;;  %v6953_v43 = vcombine.low %v907_v28, %v919_v29 }
 0x404   : > { %v1303_v31 = vld [vmem:[%s8264_s27 + $0xee0] sm:$0xff] }
 0x405   : > { %6166 = vmatpush2.bf16.msra.mxu1 %v7071_v33  ;;  %v7338_v26 = vcombine.high %v1291_v30, %v1303_v31  ;;  %v883_v33 = vld [vmem:[%s8264_s27 + $0x1c0] sm:$0xff]  ;;  %v7337_v44 = vcombine.low %v1291_v30, %v1303_v31 }
 0x406   : > { %6207 = vmatpush2.bf16.msra.mxu0 %v7455_v34  ;;  %6217 = vmatprep.subr.bf16.mxu1 %v7050_v39  ;;  %v895_v34 = vld [vmem:[%s8264_s27 + $0x220] sm:$0xff] }
 0x407   : > { %6258 = vmatprep.subr.bf16.mxu0 %v7434_v41  ;;  %v1267_v39 = vld [vmem:[%s8264_s27 + $0xdc0] sm:$0xff] }
 0x408   : > { %v5923_v56 = vpop.f32.mrf.mxu1  ;;  %6168 = vmatmul.mubr.bf16.vlgmr.msra.gmra.mxu1 %v8366_v16  ;;  %v1279_v41 = vld [vmem:[%s8264_s27 + $0xe20] sm:$0xff] }
 0x409   : > { %v5924_v61 = vadd.f32 %v5923_v56, %v1636_v45  ;;  %v5964_v63 = vpop.f32.mrf.mxu0  ;;  %6209 = vmatmul.mubr.bf16.vlgmr.msra.gmra.mxu0 %v8368_v17  ;;  %6218 = vmatpush1.bf16.msra.mxu1 %v7049_v47  ;;  %v6930_v45 = vcombine.high %v883_v33, %v895_v34  ;;  %v7314_v47 = vcombine.high %v1267_v39, %v1279_v41  ;;  %v1147_v29 = vld [vmem:[%s8264_s27 + $0xa00] sm:$0xff] }
 0x40a   : > { %6249 = vmatprep.mubr.bf16.mxu1 %v8362_v14  ;;  %6259 = vmatpush1.bf16.msra.mxu0 %v7433_v51  ;;  %v5925_v1 = vpop.f32.mrf.mxu1  ;;  %v1243_v51 = vld [vmem:[%s8264_s27 + $0xd00] sm:$0xff]  ;;  %v7313_v37 = vcombine.low %v1267_v39, %v1279_v41 }
 0x40b   : > { %v5965_v7 = vadd.f32 %v5964_v63, %v5924_v61  ;;  %6290 = vmatprep.mubr.bf16.mxu0 %v8364_v15  ;;  %v5926_v6 = vadd.f32 %v5925_v1, %v1640_v52  ;;  %v5966_v9 = vpop.f32.mrf.mxu0  ;;  %6219 = vmatprep.subr.bf16.mxu1 %v7026_v53  ;;  %v1255_v52 = vld [vmem:[%s8264_s27 + $0xd60] sm:$0xff]  ;;  %v6929_v53 = vcombine.low %v883_v33, %v895_v34 }
 0x40c   : > { %v5927_v13 = vpop.f32.mrf.mxu1  ;;  %6260 = vmatprep.subr.bf16.mxu0 %v7410_v58  ;;  %v7290_v58 = vcombine.high %v1243_v51, %v1255_v52  ;;  %v1219_v63 = vld [vmem:[%s8264_s27 + $0xc40] sm:$0xff] }
 0x40d   : > { %v5967_v21 = vadd.f32 %v5966_v9, %v5926_v6  ;;  %v5968_v22 = vpop.f32.mrf.mxu0  ;;  %6220 = vmatpush1.bf16.msra.mxu1 %v7025_v0  ;;  %7761 = vtanh.f32 %v5965_v7  ;;  %v1231_v0 = vld [vmem:[%s8264_s27 + $0xca0] sm:$0xff]  ;;  %v6882_v7 = vcombine.high %v835_v59, %v847_v60  ;;  %v6881_v13 = vcombine.low %v835_v59, %v847_v60 }
 0x40e   : > { %6261 = vmatpush1.bf16.msra.mxu0 %v7409_v3  ;;  %v5928_v25 = vpop.f32.mrf.mxu1  ;;  %6221 = vmatprep.subr.bf16.mxu1 %v7002_v4  ;;  %v6905_v3 = vcombine.low %v859_v48, %v871_v49  ;;  %v7289_v4 = vcombine.low %v1243_v51, %v1255_v52  ;;  %v7266_v6 = vcombine.high %v1219_v63, %v1231_v0  ;;  %v1195_v9 = vld [vmem:[%s8264_s27 + $0xb80] sm:$0xff] }
 0x40f   : > { %7763 = vtanh.f32 %v5967_v21  ;;  %v5969_v5 = vpop.f32.mrf.mxu0  ;;  %6262 = vmatprep.subr.bf16.mxu0 %v7386_v10  ;;  %v1207_v10 = vld [vmem:[%s8264_s27 + $0xbe0] sm:$0xff]  ;;  %v7265_v18 = vcombine.low %v1219_v63, %v1231_v0  ;;  %v7626_v21 = vcombine.high %v1579_v11, %v1591_v12 }
 0x410   : > { %v7242_v20 = vcombine.high %v1195_v9, %v1207_v10  ;;  %v1171_v22 = vld [vmem:[%s8264_s27 + $0xac0] sm:$0xff]  ;;  %v7625_v5 = vcombine.low %v1579_v11, %v1591_v12 }
 0x411   : > { %6222 = vmatpush1.bf16.msra.mxu1 %v7001_v24  ;;  %v1183_v24 = vld [vmem:[%s8264_s27 + $0xb20] sm:$0xff] }
 0x412   : > { %6263 = vmatpush1.bf16.msra.mxu0 %v7385_v62  ;;  %6223 = vmatprep.subr.bf16.mxu1 %v6978_v2  ;;  %v1555_v25 = vld [vmem:[%s8264_s27 + $0x16c0] sm:$0xff]  ;;  %v7241_v2 = vcombine.low %v1195_v9, %v1207_v10 }
 0x413   : > { %6264 = vmatprep.subr.bf16.mxu0 %v7362_v27  ;;  %v1567_v62 = vld [vmem:[%s8264_s27 + $0x1720] sm:$0xff]  ;;  %v7218_v27 = vcombine.high %v1171_v22, %v1183_v24 }
 0x414   : > { %v7602_v28 = vcombine.high %v1555_v25, %v1567_v62  ;;  %v1159_v30 = vld [vmem:[%s8264_s27 + $0xa60] sm:$0xff] }
 0x415   : > { %6224 = vmatpush1.bf16.msra.mxu1 %v6977_v32  ;;  %v1531_v31 = vld [vmem:[%s8264_s27 + $0x1600] sm:$0xff] }
 0x416   : > { %6265 = vmatpush1.bf16.msra.mxu0 %v7361_v19  ;;  %6225 = vmatprep.subr.bf16.mxu1 %v6954_v23  ;;  %v1543_v32 = vld [vmem:[%s8264_s27 + $0x1660] sm:$0xff]  ;;  %v7217_v19 = vcombine.low %v1171_v22, %v1183_v24  ;;  %v7601_v23 = vcombine.low %v1555_v25, %v1567_v62 }
 0x417   : > { %6266 = vmatprep.subr.bf16.mxu0 %v7338_v26  ;;  %v7194_v26 = vcombine.high %v1147_v29, %v1159_v30  ;;  %v7578_v33 = vcombine.high %v1531_v31, %v1543_v32  ;;  %v1123_v34 = vld [vmem:[%s8264_s27 + $0x940] sm:$0xff] }
 0x418   : > { %v1135_v39 = vld [vmem:[%s8264_s27 + $0x9a0] sm:$0xff] }
 0x419   : > { %6226 = vmatpush1.bf16.msra.mxu1 %v6953_v43  ;;  %v1507_v41 = vld [vmem:[%s8264_s27 + $0x1540] sm:$0xff] }
 0x41a   : > { %6267 = vmatpush1.bf16.msra.mxu0 %v7337_v44  ;;  %6227 = vmatprep.subr.bf16.mxu1 %v6930_v45  ;;  %v8955_v56 = vpop.eup %7761  ;;  %v1519_v43 = vld [vmem:[%s8264_s27 + $0x15a0] sm:$0xff]  ;;  %v7193_v44 = vcombine.low %v1147_v29, %v1159_v30  ;;  %v7577_v45 = vcombine.low %v1531_v31, %v1543_v32  ;;  %v1004_v30 = vld [vmem:[%s8264_s27 + $0x588] sm:$0xff] }
 0x41b   : > { %6268 = vmatprep.subr.bf16.mxu0 %v7314_v47  ;;  %v7170_v47 = vcombine.high %v1123_v34, %v1135_v39  ;;  %v7554_v48 = vcombine.high %v1507_v41, %v1519_v43  ;;  %v1099_v49 = vld [vmem:[%s8264_s27 + $0x880] sm:$0xff]  ;;  %v1016_v31 = vld [vmem:[%s8264_s27 + $0x5e8] sm:$0xff] }
 0x41c   : > { %v8959_v61 = vpop.eup %7763  ;;  %v1111_v51 = vld [vmem:[%s8264_s27 + $0x8e0] sm:$0xff]  ;;  %v1388_v32 = vld [vmem:[%s8264_s27 + $0x1188] sm:$0xff] }
 0x41d   : > { %v6627_v1 = vcombine.low %v8955_v56, %v8959_v61  ;;  %6228 = vmatpush1.bf16.msra.mxu1 %v6929_v53  ;;  %v1483_v52 = vld [vmem:[%s8264_s27 + $0x1480] sm:$0xff] }
 0x41e   : > { %6269 = vmatpush1.bf16.msra.mxu0 %v7313_v37  ;;  %6229 = vmatprep.subr.bf16.mxu1 %v6906_v54  ;;  %v1495_v53 = vld [vmem:[%s8264_s27 + $0x14e0] sm:$0xff]  ;;  %v7169_v37 = vcombine.low %v1123_v34, %v1135_v39  ;;  %v7553_v54 = vcombine.low %v1507_v41, %v1519_v43  ;;  %v980_v39 = vld [vmem:[%s8264_s27 + $0x4c8] sm:$0xff]  ;;  %v1644_v43 = vrot.slane %v8921_v36, %v8349_v55 }
 0x41f   : > { %6270 = vmatprep.subr.bf16.mxu0 %v7290_v58  ;;  %v7146_v58 = vcombine.high %v1099_v49, %v1111_v51  ;;  %v7530_v59 = vcombine.high %v1483_v52, %v1495_v53  ;;  %v1075_v60 = vld [vmem:[%s8264_s27 + $0x7c0] sm:$0xff]  ;;  %v992_v41 = vld [vmem:[%s8264_s27 + $0x528] sm:$0xff] }
 0x420   : > { %v1087_v63 = vld [vmem:[%s8264_s27 + $0x820] sm:$0xff] }
 0x421   : > { %6230 = vmatpush1.bf16.msra.mxu1 %v6905_v3  ;;  %v1459_v0 = vld [vmem:[%s8264_s27 + $0x13c0] sm:$0xff] }
 0x422   : > { %6271 = vmatpush1.bf16.msra.mxu0 %v7289_v4  ;;  %6231 = vmatprep.subr.bf16.mxu1 %v6882_v7  ;;  %v1471_v3 = vld [vmem:[%s8264_s27 + $0x1420] sm:$0xff]  ;;  %v7145_v4 = vcombine.low %v1099_v49, %v1111_v51  ;;  %v7529_v7 = vcombine.low %v1483_v52, %v1495_v53  ;;  %v1648_v49 = vrot.slane %v8921_v36, %v8352_v57  ;;  %v956_v52 = vld [vmem:[%s8264_s27 + $0x408] sm:$0xff] }
 0x423   : > { %6272 = vmatprep.subr.bf16.mxu0 %v7266_v6  ;;  %v7122_v6 = vcombine.high %v1075_v60, %v1087_v63  ;;  %v7506_v9 = vcombine.high %v1459_v0, %v1471_v3  ;;  %v1051_v10 = vld [vmem:[%s8264_s27 + $0x700] sm:$0xff]  ;;  %v7028_v51 = vcombine.high %v980_v39, %v992_v41  ;;  %v968_v53 = vld [vmem:[%s8264_s27 + $0x468] sm:$0xff] }
 0x424   : > { %v1063_v11 = vld [vmem:[%s8264_s27 + $0x760] sm:$0xff] }
 0x425   : > { %6232 = vmatpush1.bf16.msra.mxu1 %v6881_v13  ;;  %v1435_v12 = vld [vmem:[%s8264_s27 + $0x1300] sm:$0xff] }
 0x426   : > { %6273 = vmatpush1.bf16.msra.mxu0 %v7265_v18  ;;  %6233 = vmatprep.subr.bf16.mxu1 %v7242_v20  ;;  %v1447_v13 = vld [vmem:[%s8264_s27 + $0x1360] sm:$0xff]  ;;  %v7121_v18 = vcombine.low %v1075_v60, %v1087_v63  ;;  %v7505_v20 = vcombine.low %v1459_v0, %v1471_v3  ;;  %v7027_v0 = vcombine.low %v980_v39, %v992_v41  ;;  %v896_v39 = vld [vmem:[%s8264_s27 + $0x228] sm:$0xff] }
 0x427   : > { %6274 = vmatprep.subr.bf16.mxu0 %v7626_v21  ;;  %v7098_v21 = vcombine.high %v1051_v10, %v1063_v11  ;;  %v7482_v22 = vcombine.high %v1435_v12, %v1447_v13  ;;  %v1027_v24 = vld [vmem:[%s8264_s27 + $0x640] sm:$0xff]  ;;  %v1268_v41 = vld [vmem:[%s8264_s27 + $0xdc8] sm:$0xff] }
 0x428   : > { %v1039_v25 = vld [vmem:[%s8264_s27 + $0x6a0] sm:$0xff] }
 0x429   : > { %6234 = vmatpush2.bf16.msra.mxu1 %v7241_v2  ;;  %v1411_v62 = vld [vmem:[%s8264_s27 + $0x1240] sm:$0xff] }
 0x42a   : > { %6275 = vmatpush2.bf16.msra.mxu0 %v7625_v5  ;;  %6235 = vmatprep.subr.bf16.mxu1 %v7218_v27  ;;  %v1423_v2 = vld [vmem:[%s8264_s27 + $0x12a0] sm:$0xff]  ;;  %v7097_v5 = vcombine.low %v1051_v10, %v1063_v11  ;;  %v7481_v27 = vcombine.low %v1435_v12, %v1447_v13  ;;  %v932_v12 = vld [vmem:[%s8264_s27 + $0x348] sm:$0xff] }
 0x42b   : > { %6276 = vmatprep.subr.bf16.mxu0 %v7602_v28  ;;  %v7074_v28 = vcombine.high %v1027_v24, %v1039_v25  ;;  %v7458_v29 = vcombine.high %v1411_v62, %v1423_v2  ;;  %v944_v13 = vld [vmem:[%s8264_s27 + $0x3a8] sm:$0xff] }
 0x42d   : > { %6236 = vmatpush2.bf16.msra.mxu1 %v7217_v19  ;;  %v1400_v19 = vld [vmem:[%s8264_s27 + $0x11e8] sm:$0xff] }
 0x42e   : > { %6277 = vmatpush2.bf16.msra.mxu0 %v7601_v23  ;;  %6237 = vmatprep.subr.bf16.mxu1 %v7194_v26  ;;  %v7073_v23 = vcombine.low %v1027_v24, %v1039_v25  ;;  %v7457_v26 = vcombine.low %v1411_v62, %v1423_v2  ;;  %v7436_v34 = vcombine.high %v1388_v32, %v1400_v19 }
 0x42f   : > { %6278 = vmatprep.subr.bf16.mxu0 %v7578_v33  ;;  %v7052_v33 = vcombine.high %v1004_v30, %v1016_v31  ;;  %v7003_v25 = vcombine.low %v956_v52, %v968_v53 }
 0x431   : > { %6238 = vmatpush2.bf16.msra.mxu1 %v7193_v44  ;;  %v7051_v44 = vcombine.low %v1004_v30, %v1016_v31  ;;  %v920_v30 = vld [vmem:[%s8264_s27 + $0x2e8] sm:$0xff] }
 0x432   : > { %6279 = vmatpush2.bf16.msra.mxu0 %v7577_v45  ;;  %6239 = vmatprep.subr.bf16.mxu1 %v7170_v47  ;;  %v1364_v45 = vld [vmem:[%s8264_s27 + $0x10c8] sm:$0xff] }
 0x433   : > { %6280 = vmatprep.subr.bf16.mxu0 %v7554_v48  ;;  %v1376_v47 = vld [vmem:[%s8264_s27 + $0x1128] sm:$0xff]  ;;  %v7435_v48 = vcombine.low %v1388_v32, %v1400_v19  ;;  %v6979_v19 = vcombine.low %v932_v12, %v944_v13 }
 0x434   : > { %v1292_v31 = vld [vmem:[%s8264_s27 + $0xe88] sm:$0xff] }
 0x435   : > { %6240 = vmatpush2.bf16.msra.mxu1 %v7169_v37  ;;  %v1304_v32 = vld [vmem:[%s8264_s27 + $0xee8] sm:$0xff] }
 0x436   : > { %6281 = vmatpush2.bf16.msra.mxu0 %v7553_v54  ;;  %6241 = vmatprep.subr.bf16.mxu1 %v7146_v58  ;;  %v7412_v54 = vcombine.high %v1364_v45, %v1376_v47  ;;  %v1340_v58 = vld [vmem:[%s8264_s27 + $0x1008] sm:$0xff] }
 0x437   : > { %6282 = vmatprep.subr.bf16.mxu0 %v7530_v59  ;;  %v1352_v59 = vld [vmem:[%s8264_s27 + $0x1068] sm:$0xff] }
 0x438   : > { %v7388_v11 = vcombine.high %v1340_v58, %v1352_v59  ;;  %v7387_v2 = vcombine.low %v1340_v58, %v1352_v59 }
 0x439   : > { %6242 = vmatpush2.bf16.msra.mxu1 %v7145_v4  ;;  %v7411_v4 = vcombine.low %v1364_v45, %v1376_v47  ;;  %v7339_v45 = vcombine.low %v1292_v31, %v1304_v32 }
 0x43a   : > { %6283 = vmatpush2.bf16.msra.mxu0 %v7529_v7  ;;  %6243 = vmatprep.subr.bf16.mxu1 %v7122_v6  ;;  %v7004_v7 = vcombine.high %v956_v52, %v968_v53  ;;  %v1244_v52 = vld [vmem:[%s8264_s27 + $0xd08] sm:$0xff] }
 0x43b   : > { %6284 = vmatprep.subr.bf16.mxu0 %v7506_v9  ;;  %v1256_v53 = vld [vmem:[%s8264_s27 + $0xd68] sm:$0xff] }
 0x43d   : > { %6244 = vmatpush2.bf16.msra.mxu1 %v7121_v18 }
 0x43e   : > { %6285 = vmatpush2.bf16.msra.mxu0 %v7505_v20  ;;  %6245 = vmatprep.subr.bf16.mxu1 %v7098_v21  ;;  %v1316_v20 = vld [vmem:[%s8264_s27 + $0xf48] sm:$0xff] }
 0x43f   : > { %6286 = vmatprep.subr.bf16.mxu0 %v7482_v22  ;;  %v1328_v21 = vld [vmem:[%s8264_s27 + $0xfa8] sm:$0xff] }
 0x441   : > { %6246 = vmatpush2.bf16.msra.mxu1 %v7097_v5  ;;  %v6980_v5 = vcombine.high %v932_v12, %v944_v13  ;;  %v6635_v12 = vrot.slane %v6627_v1, %v8699_v8 }
 0x442   : > { %6287 = vmatpush2.bf16.msra.mxu0 %v7481_v27  ;;  %6247 = vmatprep.subr.bf16.mxu1 %v7074_v28  ;;  %v7364_v28 = vcombine.high %v1316_v20, %v1328_v21 }
 0x443   : > { %6288 = vmatprep.subr.bf16.mxu0 %v7458_v29  ;;  %v908_v29 = vld [vmem:[%s8264_s27 + $0x288] sm:$0xff] }
 0x445   : > { %6248 = vmatpush2.bf16.msra.mxu1 %v7073_v23  ;;  %v7363_v23 = vcombine.low %v1316_v20, %v1328_v21  ;;  %v1196_v20 = vld [vmem:[%s8264_s27 + $0xb88] sm:$0xff] }
 0x446   : > { %6289 = vmatpush2.bf16.msra.mxu0 %v7457_v26  ;;  %6299 = vmatprep.subr.bf16.mxu1 %v7052_v33  ;;  %v6956_v26 = vcombine.high %v908_v29, %v920_v30  ;;  %v7340_v33 = vcombine.high %v1292_v31, %v1304_v32  ;;  %v1208_v21 = vld [vmem:[%s8264_s27 + $0xbe8] sm:$0xff] }
 0x447   : > { %6340 = vmatprep.subr.bf16.mxu0 %v7436_v34  ;;  %v884_v34 = vld [vmem:[%s8264_s27 + $0x1c8] sm:$0xff]  ;;  %v7244_v61 = vcombine.high %v1196_v20, %v1208_v21 }
 0x448   : > { %v6005_v37 = vpop.f32.mrf.mxu1  ;;  %6250 = vmatmul.mubr.bf16.vlgmr.msra.gmra.mxu1 %v8366_v16  ;;  %v6932_v47 = vcombine.high %v884_v34, %v896_v39 }
 0x449   : > { %v6006_v60 = vadd.f32 %v6005_v37, %v1644_v43  ;;  %v6046_v63 = vpop.f32.mrf.mxu0  ;;  %6291 = vmatmul.mubr.bf16.vlgmr.msra.gmra.mxu0 %v8368_v17  ;;  %6300 = vmatpush1.bf16.msra.mxu1 %v7051_v44  ;;  %v1280_v43 = vld [vmem:[%s8264_s27 + $0xe28] sm:$0xff]  ;;  %v6955_v44 = vcombine.low %v908_v29, %v920_v30  ;;  %v6931_v37 = vcombine.low %v884_v34, %v896_v39 }
 0x44a   : > { %6331 = vmatprep.mubr.bf16.mxu1 %v8362_v14  ;;  %6341 = vmatpush1.bf16.msra.mxu0 %v7435_v48  ;;  %v6007_v3 = vpop.f32.mrf.mxu1  ;;  %v7316_v48 = vcombine.high %v1268_v41, %v1280_v43  ;;  %v7243_v29 = vcombine.low %v1196_v20, %v1208_v21  ;;  %v1064_v20 = vld [vmem:[%s8264_s27 + $0x768] sm:$0xff] }
 0x44b   : > { %v6047_v6 = vadd.f32 %v6046_v63, %v6006_v60  ;;  %6372 = vmatprep.mubr.bf16.mxu0 %v8364_v15  ;;  %v6008_v9 = vadd.f32 %v6007_v3, %v1648_v49  ;;  %v6048_v10 = vpop.f32.mrf.mxu0  ;;  %6301 = vmatprep.subr.bf16.mxu1 %v7028_v51  ;;  %v860_v49 = vld [vmem:[%s8264_s27 + $0x108] sm:$0xff]  ;;  %v7292_v60 = vcombine.high %v1244_v52, %v1256_v53 }
 0x44c   : > { %v6009_v18 = vpop.f32.mrf.mxu1  ;;  %6342 = vmatprep.subr.bf16.mxu0 %v7412_v54  ;;  %v872_v51 = vld [vmem:[%s8264_s27 + $0x168] sm:$0xff]  ;;  %v7315_v54 = vcombine.low %v1268_v41, %v1280_v43 }
 0x44d   : > { %v6049_v22 = vadd.f32 %v6048_v10, %v6008_v9  ;;  %v6050_v24 = vpop.f32.mrf.mxu0  ;;  %6302 = vmatpush1.bf16.msra.mxu1 %v7027_v0  ;;  %7765 = vtanh.f32 %v6047_v6  ;;  %v6908_v58 = vcombine.high %v860_v49, %v872_v51  ;;  %v836_v63 = vld [vmem:[%s8264_s27 + $0x48] sm:$0xff]  ;;  %v6907_v9 = vcombine.low %v860_v49, %v872_v51 }
 0x44e   : > { %6343 = vmatpush1.bf16.msra.mxu0 %v7411_v4  ;;  %v6010_v62 = vpop.f32.mrf.mxu1  ;;  %6303 = vmatprep.subr.bf16.mxu1 %v7004_v7  ;;  %v848_v0 = vld [vmem:[%s8264_s27 + $0xa8] sm:$0xff]  ;;  %v7291_v10 = vcombine.low %v1244_v52, %v1256_v53 }
 0x44f   : > { %7767 = vtanh.f32 %v6049_v22  ;;  %v6051_v27 = vpop.f32.mrf.mxu0  ;;  %6344 = vmatprep.subr.bf16.mxu0 %v7388_v11  ;;  %v1220_v4 = vld [vmem:[%s8264_s27 + $0xc48] sm:$0xff]  ;;  %v6884_v11 = vcombine.high %v836_v63, %v848_v0  ;;  %v6883_v62 = vcombine.low %v836_v63, %v848_v0 }
 0x450   : > { %v1232_v7 = vld [vmem:[%s8264_s27 + $0xca8] sm:$0xff] }
 0x451   : > { %6304 = vmatpush1.bf16.msra.mxu1 %v7003_v25  ;;  %v7268_v18 = vcombine.high %v1220_v4, %v1232_v7  ;;  %v1580_v22 = vld [vmem:[%s8264_s27 + $0x1788] sm:$0xff]  ;;  %v7267_v56 = vcombine.low %v1220_v4, %v1232_v7 }
 0x452   : > { %6345 = vmatpush1.bf16.msra.mxu0 %v7387_v2  ;;  %6305 = vmatprep.subr.bf16.mxu1 %v6980_v5  ;;  %v1592_v24 = vld [vmem:[%s8264_s27 + $0x17e8] sm:$0xff] }
 0x453   : > { %6346 = vmatprep.subr.bf16.mxu0 %v7364_v28  ;;  %v7628_v1 = vcombine.high %v1580_v22, %v1592_v24  ;;  %v1172_v2 = vld [vmem:[%s8264_s27 + $0xac8] sm:$0xff]  ;;  %v7627_v30 = vcombine.low %v1580_v22, %v1592_v24 }
 0x454   : > { %v1184_v5 = vld [vmem:[%s8264_s27 + $0xb28] sm:$0xff] }
 0x455   : > { %6306 = vmatpush1.bf16.msra.mxu1 %v6979_v19  ;;  %v1556_v27 = vld [vmem:[%s8264_s27 + $0x16c8] sm:$0xff]  ;;  %v7220_v31 = vcombine.high %v1172_v2, %v1184_v5  ;;  %v7219_v34 = vcombine.low %v1172_v2, %v1184_v5 }
 0x456   : > { %6347 = vmatpush1.bf16.msra.mxu0 %v7363_v23  ;;  %6307 = vmatprep.subr.bf16.mxu1 %v6956_v26  ;;  %v1568_v28 = vld [vmem:[%s8264_s27 + $0x1728] sm:$0xff] }
 0x457   : > { %6348 = vmatprep.subr.bf16.mxu0 %v7340_v33  ;;  %v7604_v32 = vcombine.high %v1556_v27, %v1568_v28  ;;  %v1148_v19 = vld [vmem:[%s8264_s27 + $0xa08] sm:$0xff]  ;;  %v7603_v39 = vcombine.low %v1556_v27, %v1568_v28 }
 0x458   : > { %v1160_v23 = vld [vmem:[%s8264_s27 + $0xa68] sm:$0xff] }
 0x459   : > { %6308 = vmatpush1.bf16.msra.mxu1 %v6955_v44  ;;  %v1532_v26 = vld [vmem:[%s8264_s27 + $0x1608] sm:$0xff]  ;;  %v7196_v41 = vcombine.high %v1148_v19, %v1160_v23  ;;  %v7195_v49 = vcombine.low %v1148_v19, %v1160_v23  ;;  %v1389_v19 = vld [vmem:[%s8264_s27 + $0x1190] sm:$0xff] }
 0x45a   : > { %6349 = vmatpush1.bf16.msra.mxu0 %v7339_v45  ;;  %6309 = vmatprep.subr.bf16.mxu1 %v6932_v47  ;;  %v7766_v59 = vpop.eup %7765  ;;  %v1544_v33 = vld [vmem:[%s8264_s27 + $0x1668] sm:$0xff]  ;;  %v1401_v23 = vld [vmem:[%s8264_s27 + $0x11f0] sm:$0xff] }
 0x45b   : > { %6350 = vmatprep.subr.bf16.mxu0 %v7316_v48  ;;  %v7580_v43 = vcombine.high %v1532_v26, %v1544_v33  ;;  %v1124_v44 = vld [vmem:[%s8264_s27 + $0x948] sm:$0xff]  ;;  %v7579_v51 = vcombine.low %v1532_v26, %v1544_v33 }
 0x45c   : > { %v7768_v3 = vpop.eup %7767  ;;  %v1136_v45 = vld [vmem:[%s8264_s27 + $0x9a8] sm:$0xff] }
 0x45d   : > { %v6628_v6 = vcombine.low %v7766_v59, %v7768_v3  ;;  %6310 = vmatpush1.bf16.msra.mxu1 %v6931_v37  ;;  %v1508_v47 = vld [vmem:[%s8264_s27 + $0x1548] sm:$0xff]  ;;  %v7172_v52 = vcombine.high %v1124_v44, %v1136_v45 }
 0x45e   : > { %6351 = vmatpush1.bf16.msra.mxu0 %v7315_v54  ;;  %6311 = vmatprep.subr.bf16.mxu1 %v6908_v58  ;;  %v1520_v48 = vld [vmem:[%s8264_s27 + $0x15a8] sm:$0xff] }
 0x45f   : > { %v6642_v13 = vrot.slane %v6628_v6, %v8699_v8  ;;  %6352 = vmatprep.subr.bf16.mxu0 %v7292_v60  ;;  %v7556_v53 = vcombine.high %v1508_v47, %v1520_v48  ;;  %v1100_v37 = vld [vmem:[%s8264_s27 + $0x888] sm:$0xff]  ;;  %v7171_v60 = vcombine.low %v1124_v44, %v1136_v45  ;;  %v7555_v63 = vcombine.low %v1508_v47, %v1520_v48  ;;  %v1365_v47 = vld [vmem:[%s8264_s27 + $0x10d0] sm:$0xff] }
 0x460   : > { %v1112_v54 = vld [vmem:[%s8264_s27 + $0x8e8] sm:$0xff]  ;;  %v1652_v44 = vrot.slane %v8921_v36, %v8754_v46  ;;  %v1377_v48 = vld [vmem:[%s8264_s27 + $0x1130] sm:$0xff] }
 0x461   : > { %v6643_v25 = vcombine.low %v6635_v12, %v6642_v13  ;;  %6312 = vmatpush1.bf16.msra.mxu1 %v6907_v9  ;;  %v1484_v58 = vld [vmem:[%s8264_s27 + $0x1488] sm:$0xff]  ;;  %v7148_v0 = vcombine.high %v1100_v37, %v1112_v54 }
 0x462   : > { %6353 = vmatpush1.bf16.msra.mxu0 %v7291_v10  ;;  %6313 = vmatprep.subr.bf16.mxu1 %v6884_v11  ;;  %v1496_v59 = vld [vmem:[%s8264_s27 + $0x14e8] sm:$0xff]  ;;  %v7147_v10 = vcombine.low %v1100_v37, %v1112_v54  ;;  %v969_v37 = vld [vmem:[%s8264_s27 + $0x470] sm:$0xff] }
 0x463   : > { %6703 = vst [vmem:[%s8716_s10 + $0x10] sm:$0xff] %v6643_v25  ;;  %6354 = vmatprep.subr.bf16.mxu0 %v7268_v18  ;;  %v7532_v3 = vcombine.high %v1484_v58, %v1496_v59  ;;  %v1076_v4 = vld [vmem:[%s8264_s27 + $0x7c8] sm:$0xff]  ;;  %v7531_v11 = vcombine.low %v1484_v58, %v1496_v59  ;;  %v7414_v58 = vcombine.high %v1365_v47, %v1377_v48  ;;  %v1341_v59 = vld [vmem:[%s8264_s27 + $0x1010] sm:$0xff] }
 0x464   : > { %v1088_v7 = vld [vmem:[%s8264_s27 + $0x828] sm:$0xff] }
 0x465   : > { %6314 = vmatpush1.bf16.msra.mxu1 %v6883_v62  ;;  %v1460_v6 = vld [vmem:[%s8264_s27 + $0x13c8] sm:$0xff]  ;;  %v7124_v12 = vcombine.high %v1076_v4, %v1088_v7  ;;  %v7123_v24 = vcombine.low %v1076_v4, %v1088_v7  ;;  %v7413_v4 = vcombine.low %v1365_v47, %v1377_v48  ;;  %v873_v47 = vld [vmem:[%s8264_s27 + $0x170] sm:$0xff] }
 0x466   : > { %6355 = vmatpush1.bf16.msra.mxu0 %v7267_v56  ;;  %6315 = vmatprep.subr.bf16.mxu1 %v7244_v61  ;;  %v1472_v9 = vld [vmem:[%s8264_s27 + $0x1428] sm:$0xff]  ;;  %v1245_v48 = vld [vmem:[%s8264_s27 + $0xd10] sm:$0xff] }
 0x467   : > { %6356 = vmatprep.subr.bf16.mxu0 %v7628_v1  ;;  %v7508_v13 = vcombine.high %v1460_v6, %v1472_v9  ;;  %v1052_v18 = vld [vmem:[%s8264_s27 + $0x708] sm:$0xff]  ;;  %v7507_v25 = vcombine.low %v1460_v6, %v1472_v9 }
 0x468   : > { %v1436_v21 = vld [vmem:[%s8264_s27 + $0x1308] sm:$0xff]  ;;  %v7100_v62 = vcombine.high %v1052_v18, %v1064_v20  ;;  %v7099_v27 = vcombine.low %v1052_v18, %v1064_v20  ;;  %v1317_v20 = vld [vmem:[%s8264_s27 + $0xf50] sm:$0xff] }
 0x469   : > { %6316 = vmatpush2.bf16.msra.mxu1 %v7243_v29  ;;  %v1448_v22 = vld [vmem:[%s8264_s27 + $0x1368] sm:$0xff] }
 0x46a   : > { %6357 = vmatpush2.bf16.msra.mxu0 %v7627_v30  ;;  %6317 = vmatprep.subr.bf16.mxu1 %v7220_v31  ;;  %v7484_v56 = vcombine.high %v1436_v21, %v1448_v22  ;;  %v1028_v61 = vld [vmem:[%s8264_s27 + $0x648] sm:$0xff]  ;;  %v7483_v28 = vcombine.low %v1436_v21, %v1448_v22  ;;  %v1005_v31 = vld [vmem:[%s8264_s27 + $0x590] sm:$0xff] }
 0x46b   : > { %6358 = vmatprep.subr.bf16.mxu0 %v7604_v32  ;;  %v1040_v1 = vld [vmem:[%s8264_s27 + $0x6a8] sm:$0xff]  ;;  %v1017_v32 = vld [vmem:[%s8264_s27 + $0x5f0] sm:$0xff] }
 0x46c   : > { %v1412_v2 = vld [vmem:[%s8264_s27 + $0x1248] sm:$0xff]  ;;  %v7076_v29 = vcombine.high %v1028_v61, %v1040_v1  ;;  %v7075_v26 = vcombine.low %v1028_v61, %v1040_v1  ;;  %v7053_v45 = vcombine.low %v1005_v31, %v1017_v32  ;;  %v1329_v21 = vld [vmem:[%s8264_s27 + $0xfb0] sm:$0xff] }
 0x46d   : > { %6318 = vmatpush2.bf16.msra.mxu1 %v7219_v34  ;;  %v1424_v5 = vld [vmem:[%s8264_s27 + $0x12a8] sm:$0xff]  ;;  %v7054_v34 = vcombine.high %v1005_v31, %v1017_v32  ;;  %v7365_v31 = vcombine.low %v1317_v20, %v1329_v21 }
 0x46e   : > { %6359 = vmatpush2.bf16.msra.mxu0 %v7603_v39  ;;  %6319 = vmatprep.subr.bf16.mxu1 %v7196_v41  ;;  %v7460_v30 = vcombine.high %v1412_v2, %v1424_v5  ;;  %v7459_v33 = vcombine.low %v1412_v2, %v1424_v5  ;;  %v7438_v39 = vcombine.high %v1389_v19, %v1401_v23  ;;  %v981_v41 = vld [vmem:[%s8264_s27 + $0x4d0] sm:$0xff] }
 0x46f   : > { %6360 = vmatprep.subr.bf16.mxu0 %v7580_v43  ;;  %v993_v43 = vld [vmem:[%s8264_s27 + $0x530] sm:$0xff]  ;;  %v7366_v2 = vcombine.high %v1317_v20, %v1329_v21 }
 0x470   : > { %v909_v5 = vld [vmem:[%s8264_s27 + $0x290] sm:$0xff] }
 0x471   : > { %6320 = vmatpush2.bf16.msra.mxu1 %v7195_v49  ;;  %v7437_v49 = vcombine.low %v1389_v19, %v1401_v23  ;;  %v885_v23 = vld [vmem:[%s8264_s27 + $0x1d0] sm:$0xff] }
 0x472   : > { %6361 = vmatpush2.bf16.msra.mxu0 %v7579_v51  ;;  %6321 = vmatprep.subr.bf16.mxu1 %v7172_v52  ;;  %v1656_v51 = vrot.slane %v8921_v36, %v8757_v50  ;;  %v7030_v52 = vcombine.high %v981_v41, %v993_v43 }
 0x473   : > { %6362 = vmatprep.subr.bf16.mxu0 %v7556_v53  ;;  %v957_v53 = vld [vmem:[%s8264_s27 + $0x410] sm:$0xff] }
 0x474   : > { %v7006_v7 = vcombine.high %v957_v53, %v969_v37 }
 0x475   : > { %6322 = vmatpush2.bf16.msra.mxu1 %v7171_v60  ;;  %v1353_v60 = vld [vmem:[%s8264_s27 + $0x1070] sm:$0xff] }
 0x476   : > { %6363 = vmatpush2.bf16.msra.mxu0 %v7555_v63  ;;  %6323 = vmatprep.subr.bf16.mxu1 %v7148_v0 }
 0x477   : > { %6364 = vmatprep.subr.bf16.mxu0 %v7532_v3  ;;  %v7029_v3 = vcombine.low %v981_v41, %v993_v43 }
 0x479   : > { %6324 = vmatpush2.bf16.msra.mxu1 %v7147_v10 }
 0x47a   : > { %6365 = vmatpush2.bf16.msra.mxu0 %v7531_v11  ;;  %6325 = vmatprep.subr.bf16.mxu1 %v7124_v12  ;;  %v7390_v11 = vcombine.high %v1341_v59, %v1353_v60  ;;  %v933_v12 = vld [vmem:[%s8264_s27 + $0x350] sm:$0xff] }
 0x47b   : > { %6366 = vmatprep.subr.bf16.mxu0 %v7508_v13  ;;  %v945_v13 = vld [vmem:[%s8264_s27 + $0x3b0] sm:$0xff] }
 0x47c   : > { %v6982_v61 = vcombine.high %v933_v12, %v945_v13 }
 0x47d   : > { %6326 = vmatpush2.bf16.msra.mxu1 %v7123_v24 }
 0x47e   : > { %6367 = vmatpush2.bf16.msra.mxu0 %v7507_v25  ;;  %6327 = vmatprep.subr.bf16.mxu1 %v7100_v62  ;;  %v7005_v25 = vcombine.low %v957_v53, %v969_v37 }
 0x47f   : > { %6368 = vmatprep.subr.bf16.mxu0 %v7484_v56  ;;  %v7389_v56 = vcombine.low %v1341_v59, %v1353_v60  ;;  %v849_v59 = vld [vmem:[%s8264_s27 + $0xb0] sm:$0xff] }
 0x481   : > { %6328 = vmatpush2.bf16.msra.mxu1 %v7099_v27  ;;  %v921_v27 = vld [vmem:[%s8264_s27 + $0x2f0] sm:$0xff] }
 0x482   : > { %6369 = vmatpush2.bf16.msra.mxu0 %v7483_v28  ;;  %6329 = vmatprep.subr.bf16.mxu1 %v7076_v29  ;;  %v1293_v28 = vld [vmem:[%s8264_s27 + $0xe90] sm:$0xff]  ;;  %v6958_v32 = vcombine.high %v909_v5, %v921_v27 }
 0x483   : > { %6370 = vmatprep.subr.bf16.mxu0 %v7460_v30  ;;  %v1305_v29 = vld [vmem:[%s8264_s27 + $0xef0] sm:$0xff]  ;;  %v6981_v30 = vcombine.low %v933_v12, %v945_v13 }
 0x484   : > { %v7342_v19 = vcombine.high %v1293_v28, %v1305_v29  ;;  %v7341_v41 = vcombine.low %v1293_v28, %v1305_v29  ;;  %v1593_v12 = vld [vmem:[%s8264_s27 + $0x17f0] sm:$0xff] }
 0x485   : > { %6330 = vmatpush2.bf16.msra.mxu1 %v7075_v26  ;;  %v897_v26 = vld [vmem:[%s8264_s27 + $0x230] sm:$0xff] }
 0x486   : > { %6371 = vmatpush2.bf16.msra.mxu0 %v7459_v33  ;;  %6381 = vmatprep.subr.bf16.mxu1 %v7054_v34  ;;  %v1269_v33 = vld [vmem:[%s8264_s27 + $0xdd0] sm:$0xff]  ;;  %v6934_v43 = vcombine.high %v885_v23, %v897_v26 }
 0x487   : > { %6422 = vmatprep.subr.bf16.mxu0 %v7438_v39  ;;  %v1281_v34 = vld [vmem:[%s8264_s27 + $0xe30] sm:$0xff]  ;;  %v6957_v39 = vcombine.low %v909_v5, %v921_v27 }
 0x488   : > { %v6087_v54 = vpop.f32.mrf.mxu1  ;;  %6332 = vmatmul.mubr.bf16.vlgmr.msra.gmra.mxu1 %v8366_v16  ;;  %v1149_v5 = vld [vmem:[%s8264_s27 + $0xa10] sm:$0xff] }
 0x489   : > { %v6088_v63 = vadd.f32 %v6087_v54, %v1652_v44  ;;  %v6128_v0 = vpop.f32.mrf.mxu0  ;;  %6373 = vmatmul.mubr.bf16.vlgmr.msra.gmra.mxu0 %v8368_v17  ;;  %6382 = vmatpush1.bf16.msra.mxu1 %v7053_v45  ;;  %v7318_v44 = vcombine.high %v1269_v33, %v1281_v34  ;;  %v861_v45 = vld [vmem:[%s8264_s27 + $0x110] sm:$0xff] }
 0x48a   : > { %6413 = vmatprep.mubr.bf16.mxu1 %v8362_v14  ;;  %6423 = vmatpush1.bf16.msra.mxu0 %v7437_v49  ;;  %v6089_v36 = vpop.f32.mrf.mxu1  ;;  %v1257_v49 = vld [vmem:[%s8264_s27 + $0xd70] sm:$0xff]  ;;  %v6910_v53 = vcombine.high %v861_v45, %v873_v47 }
 0x48b   : > { %v6129_v6 = vadd.f32 %v6128_v0, %v6088_v63  ;;  %6454 = vmatprep.mubr.bf16.mxu0 %v8364_v15  ;;  %v6090_v9 = vadd.f32 %v6089_v36, %v1656_v51  ;;  %v6130_v10 = vpop.f32.mrf.mxu0  ;;  %6383 = vmatprep.subr.bf16.mxu1 %v7030_v52  ;;  %v6933_v51 = vcombine.low %v885_v23, %v897_v26  ;;  %v1221_v63 = vld [vmem:[%s8264_s27 + $0xc50] sm:$0xff] }
 0x48c   : > { %v6091_v18 = vpop.f32.mrf.mxu1  ;;  %6424 = vmatprep.subr.bf16.mxu0 %v7414_v58  ;;  %v7317_v52 = vcombine.low %v1269_v33, %v1281_v34  ;;  %v7294_v54 = vcombine.high %v1245_v48, %v1257_v49  ;;  %v837_v58 = vld [vmem:[%s8264_s27 + $0x50] sm:$0xff]  ;;  %v6909_v36 = vcombine.low %v861_v45, %v873_v47 }
 0x48d   : > { %v6131_v22 = vadd.f32 %v6130_v10, %v6090_v9  ;;  %v6132_v24 = vpop.f32.mrf.mxu0  ;;  %6384 = vmatpush1.bf16.msra.mxu1 %v7029_v3  ;;  %7769 = vtanh.f32 %v6129_v6  ;;  %v1233_v0 = vld [vmem:[%s8264_s27 + $0xcb0] sm:$0xff]  ;;  %v6885_v13 = vcombine.low %v837_v58, %v849_v59 }
 0x48e   : > { %6425 = vmatpush1.bf16.msra.mxu0 %v7413_v4  ;;  %v6092_v62 = vpop.f32.mrf.mxu1  ;;  %6385 = vmatprep.subr.bf16.mxu1 %v7006_v7  ;;  %v7293_v4 = vcombine.low %v1245_v48, %v1257_v49  ;;  %v6886_v7 = vcombine.high %v837_v58, %v849_v59  ;;  %v7270_v6 = vcombine.high %v1221_v63, %v1233_v0  ;;  %v1197_v9 = vld [vmem:[%s8264_s27 + $0xb90] sm:$0xff] }
 0x48f   : > { %7771 = vtanh.f32 %v6131_v22  ;;  %v6133_v1 = vpop.f32.mrf.mxu0  ;;  %6426 = vmatprep.subr.bf16.mxu0 %v7390_v11  ;;  %v1209_v10 = vld [vmem:[%s8264_s27 + $0xbf0] sm:$0xff]  ;;  %v7269_v18 = vcombine.low %v1221_v63, %v1233_v0 }
 0x490   : > { %v1581_v11 = vld [vmem:[%s8264_s27 + $0x1790] sm:$0xff]  ;;  %v7246_v20 = vcombine.high %v1197_v9, %v1209_v10 }
 0x491   : > { %6386 = vmatpush1.bf16.msra.mxu1 %v7005_v25  ;;  %v7630_v21 = vcombine.high %v1581_v11, %v1593_v12  ;;  %v1173_v22 = vld [vmem:[%s8264_s27 + $0xad0] sm:$0xff] }
 0x492   : > { %6427 = vmatpush1.bf16.msra.mxu0 %v7389_v56  ;;  %6387 = vmatprep.subr.bf16.mxu1 %v6982_v61  ;;  %v1185_v24 = vld [vmem:[%s8264_s27 + $0xb30] sm:$0xff]  ;;  %v7245_v56 = vcombine.low %v1197_v9, %v1209_v10  ;;  %v7629_v61 = vcombine.low %v1581_v11, %v1593_v12 }
 0x493   : > { %6428 = vmatprep.subr.bf16.mxu0 %v7366_v2  ;;  %v1557_v25 = vld [vmem:[%s8264_s27 + $0x16d0] sm:$0xff]  ;;  %v7222_v1 = vcombine.high %v1173_v22, %v1185_v24 }
 0x494   : > { %v1569_v62 = vld [vmem:[%s8264_s27 + $0x1730] sm:$0xff] }
 0x495   : > { %6388 = vmatpush1.bf16.msra.mxu1 %v6981_v30  ;;  %v7606_v2 = vcombine.high %v1557_v25, %v1569_v62  ;;  %v1161_v27 = vld [vmem:[%s8264_s27 + $0xa70] sm:$0xff]  ;;  %v7221_v30 = vcombine.low %v1173_v22, %v1185_v24 }
 0x496   : > { %6429 = vmatpush1.bf16.msra.mxu0 %v7365_v31  ;;  %6389 = vmatprep.subr.bf16.mxu1 %v6958_v32  ;;  %v1533_v28 = vld [vmem:[%s8264_s27 + $0x1610] sm:$0xff]  ;;  %v7605_v31 = vcombine.low %v1557_v25, %v1569_v62  ;;  %v7198_v32 = vcombine.high %v1149_v5, %v1161_v27 }
 0x497   : > { %6430 = vmatprep.subr.bf16.mxu0 %v7342_v19  ;;  %v1545_v29 = vld [vmem:[%s8264_s27 + $0x1670] sm:$0xff] }
 0x498   : > { %v7582_v19 = vcombine.high %v1533_v28, %v1545_v29  ;;  %v1125_v23 = vld [vmem:[%s8264_s27 + $0x950] sm:$0xff] }
 0x499   : > { %6390 = vmatpush1.bf16.msra.mxu1 %v6957_v39  ;;  %v1137_v26 = vld [vmem:[%s8264_s27 + $0x9b0] sm:$0xff]  ;;  %v7197_v39 = vcombine.low %v1149_v5, %v1161_v27  ;;  %v1006_v5 = vld [vmem:[%s8264_s27 + $0x598] sm:$0xff] }
 0x49a   : > { %6431 = vmatpush1.bf16.msra.mxu0 %v7341_v41  ;;  %6391 = vmatprep.subr.bf16.mxu1 %v6934_v43  ;;  %v9111_v37 = vpop.eup %7769  ;;  %v1509_v33 = vld [vmem:[%s8264_s27 + $0x1550] sm:$0xff]  ;;  %v7581_v41 = vcombine.low %v1533_v28, %v1545_v29  ;;  %v7174_v43 = vcombine.high %v1125_v23, %v1137_v26  ;;  %v1018_v27 = vld [vmem:[%s8264_s27 + $0x5f8] sm:$0xff] }
 0x49b   : > { %6432 = vmatprep.subr.bf16.mxu0 %v7318_v44  ;;  %v1521_v34 = vld [vmem:[%s8264_s27 + $0x15b0] sm:$0xff]  ;;  %v1390_v28 = vld [vmem:[%s8264_s27 + $0x1198] sm:$0xff] }
 0x49c   : > { %v9115_v60 = vpop.eup %7771  ;;  %v7558_v44 = vcombine.high %v1509_v33, %v1521_v34  ;;  %v1101_v45 = vld [vmem:[%s8264_s27 + $0x890] sm:$0xff]  ;;  %v1402_v29 = vld [vmem:[%s8264_s27 + $0x11f8] sm:$0xff] }
 0x49d   : > { %v6644_v3 = vcombine.low %v9111_v37, %v9115_v60  ;;  %6392 = vmatpush1.bf16.msra.mxu1 %v6933_v51  ;;  %v1113_v47 = vld [vmem:[%s8264_s27 + $0x8f0] sm:$0xff]  ;;  %v7173_v51 = vcombine.low %v1125_v23, %v1137_v26  ;;  %v982_v23 = vld [vmem:[%s8264_s27 + $0x4d8] sm:$0xff] }
 0x49e   : > { %6433 = vmatpush1.bf16.msra.mxu0 %v7317_v52  ;;  %6393 = vmatprep.subr.bf16.mxu1 %v6910_v53  ;;  %v1485_v48 = vld [vmem:[%s8264_s27 + $0x1490] sm:$0xff]  ;;  %v7557_v52 = vcombine.low %v1509_v33, %v1521_v34  ;;  %v7150_v53 = vcombine.high %v1101_v45, %v1113_v47  ;;  %v994_v26 = vld [vmem:[%s8264_s27 + $0x538] sm:$0xff]  ;;  %v7794_v33 = vld [vmem:[%s8574_s22 + $0x8] sm:$0xff] }
 0x49f   : > { %6434 = vmatprep.subr.bf16.mxu0 %v7294_v54  ;;  %v1497_v49 = vld [vmem:[%s8264_s27 + $0x14f0] sm:$0xff]  ;;  %v1660_v34 = vrot.slane %v7794_v33, %v8838_v35 }
 0x4a0   : > { %v7534_v54 = vcombine.high %v1485_v48, %v1497_v49  ;;  %v1077_v58 = vld [vmem:[%s8264_s27 + $0x7d0] sm:$0xff] }
 0x4a1   : > { %6394 = vmatpush1.bf16.msra.mxu1 %v6909_v36  ;;  %v1089_v59 = vld [vmem:[%s8264_s27 + $0x830] sm:$0xff]  ;;  %v7149_v36 = vcombine.low %v1101_v45, %v1113_v47  ;;  %v1664_v45 = vrot.slane %v7794_v33, %v8841_v42  ;;  %v7032_v47 = vcombine.high %v982_v23, %v994_v26 }
 0x4a2   : > { %6435 = vmatpush1.bf16.msra.mxu0 %v7293_v4  ;;  %6395 = vmatprep.subr.bf16.mxu1 %v6886_v7  ;;  %v1461_v63 = vld [vmem:[%s8264_s27 + $0x13d0] sm:$0xff]  ;;  %v7533_v4 = vcombine.low %v1485_v48, %v1497_v49  ;;  %v7126_v7 = vcombine.high %v1077_v58, %v1089_v59  ;;  %v958_v48 = vld [vmem:[%s8264_s27 + $0x418] sm:$0xff] }
 0x4a3   : > { %6436 = vmatprep.subr.bf16.mxu0 %v7270_v6  ;;  %v1473_v0 = vld [vmem:[%s8264_s27 + $0x1430] sm:$0xff]  ;;  %v970_v49 = vld [vmem:[%s8264_s27 + $0x478] sm:$0xff] }
 0x4a4   : > { %v7510_v6 = vcombine.high %v1461_v63, %v1473_v0  ;;  %v1053_v9 = vld [vmem:[%s8264_s27 + $0x710] sm:$0xff] }
 0x4a5   : > { %6396 = vmatpush1.bf16.msra.mxu1 %v6885_v13  ;;  %v1065_v10 = vld [vmem:[%s8264_s27 + $0x770] sm:$0xff]  ;;  %v7125_v13 = vcombine.low %v1077_v58, %v1089_v59 }
 0x4a6   : > { %6437 = vmatpush1.bf16.msra.mxu0 %v7269_v18  ;;  %6397 = vmatprep.subr.bf16.mxu1 %v7246_v20  ;;  %v1437_v11 = vld [vmem:[%s8264_s27 + $0x1310] sm:$0xff]  ;;  %v7509_v18 = vcombine.low %v1461_v63, %v1473_v0  ;;  %v7102_v20 = vcombine.high %v1053_v9, %v1065_v10  ;;  %v7031_v63 = vcombine.low %v982_v23, %v994_v26  ;;  %v1282_v23 = vld [vmem:[%s8264_s27 + $0xe38] sm:$0xff] }
 0x4a7   : > { %6438 = vmatprep.subr.bf16.mxu0 %v7630_v21  ;;  %v1449_v12 = vld [vmem:[%s8264_s27 + $0x1370] sm:$0xff] }
 0x4a8   : > { %v7486_v21 = vcombine.high %v1437_v11, %v1449_v12  ;;  %v1029_v22 = vld [vmem:[%s8264_s27 + $0x650] sm:$0xff] }
 0x4a9   : > { %6398 = vmatpush2.bf16.msra.mxu1 %v7245_v56  ;;  %v1041_v24 = vld [vmem:[%s8264_s27 + $0x6b0] sm:$0xff]  ;;  %v7101_v56 = vcombine.low %v1053_v9, %v1065_v10 }
 0x4aa   : > { %6439 = vmatpush2.bf16.msra.mxu0 %v7629_v61  ;;  %6399 = vmatprep.subr.bf16.mxu1 %v7222_v1  ;;  %v1413_v25 = vld [vmem:[%s8264_s27 + $0x1250] sm:$0xff]  ;;  %v7485_v61 = vcombine.low %v1437_v11, %v1449_v12  ;;  %v7078_v1 = vcombine.high %v1029_v22, %v1041_v24  ;;  %v934_v11 = vld [vmem:[%s8264_s27 + $0x358] sm:$0xff] }
 0x4ab   : > { %6440 = vmatprep.subr.bf16.mxu0 %v7606_v2  ;;  %v1425_v62 = vld [vmem:[%s8264_s27 + $0x12b0] sm:$0xff]  ;;  %v946_v12 = vld [vmem:[%s8264_s27 + $0x3b8] sm:$0xff] }
 0x4ac   : > { %v7462_v2 = vcombine.high %v1413_v25, %v1425_v62 }
 0x4ad   : > { %6400 = vmatpush2.bf16.msra.mxu1 %v7221_v30  ;;  %v7077_v30 = vcombine.low %v1029_v22, %v1041_v24  ;;  %v7007_v22 = vcombine.low %v958_v48, %v970_v49 }
 0x4ae   : > { %6441 = vmatpush2.bf16.msra.mxu0 %v7605_v31  ;;  %6401 = vmatprep.subr.bf16.mxu1 %v7198_v32  ;;  %v7461_v31 = vcombine.low %v1413_v25, %v1425_v62  ;;  %v7056_v32 = vcombine.high %v1006_v5, %v1018_v27  ;;  %v6984_v25 = vcombine.high %v934_v11, %v946_v12 }
 0x4af   : > { %6442 = vmatprep.subr.bf16.mxu0 %v7582_v19  ;;  %v7440_v19 = vcombine.high %v1390_v28, %v1402_v29 }
 0x4b1   : > { %6402 = vmatpush2.bf16.msra.mxu1 %v7197_v39  ;;  %v7055_v39 = vcombine.low %v1006_v5, %v1018_v27  ;;  %v1306_v5 = vld [vmem:[%s8264_s27 + $0xef8] sm:$0xff]  ;;  %v6983_v27 = vcombine.low %v934_v11, %v946_v12 }
 0x4b2   : > { %6443 = vmatpush2.bf16.msra.mxu0 %v7581_v41  ;;  %6403 = vmatprep.subr.bf16.mxu1 %v7174_v43  ;;  %v1366_v41 = vld [vmem:[%s8264_s27 + $0x10d8] sm:$0xff] }
 0x4b3   : > { %6444 = vmatprep.subr.bf16.mxu0 %v7558_v44  ;;  %v1378_v43 = vld [vmem:[%s8264_s27 + $0x1138] sm:$0xff]  ;;  %v7439_v44 = vcombine.low %v1390_v28, %v1402_v29 }
 0x4b4   : > { %v1198_v11 = vld [vmem:[%s8264_s27 + $0xb98] sm:$0xff] }
 0x4b5   : > { %6404 = vmatpush2.bf16.msra.mxu1 %v7173_v51  ;;  %v1210_v12 = vld [vmem:[%s8264_s27 + $0xbf8] sm:$0xff] }
 0x4b6   : > { %6445 = vmatpush2.bf16.msra.mxu0 %v7557_v52  ;;  %6405 = vmatprep.subr.bf16.mxu1 %v7150_v53  ;;  %v7416_v52 = vcombine.high %v1366_v41, %v1378_v43  ;;  %v1342_v53 = vld [vmem:[%s8264_s27 + $0x1018] sm:$0xff]  ;;  %v7248_v60 = vcombine.high %v1198_v11, %v1210_v12 }
 0x4b7   : > { %6446 = vmatprep.subr.bf16.mxu0 %v7534_v54  ;;  %v1354_v54 = vld [vmem:[%s8264_s27 + $0x1078] sm:$0xff] }
 0x4b8   : > { %v7392_v10 = vcombine.high %v1342_v53, %v1354_v54  ;;  %v7391_v24 = vcombine.low %v1342_v53, %v1354_v54  ;;  %v838_v53 = vld [vmem:[%s8264_s27 + $0x58] sm:$0xff] }
 0x4b9   : > { %6406 = vmatpush2.bf16.msra.mxu1 %v7149_v36  ;;  %v7415_v36 = vcombine.low %v1366_v41, %v1378_v43  ;;  %v862_v41 = vld [vmem:[%s8264_s27 + $0x118] sm:$0xff] }
 0x4ba   : > { %6447 = vmatpush2.bf16.msra.mxu0 %v7533_v4  ;;  %6407 = vmatprep.subr.bf16.mxu1 %v7126_v7  ;;  %v7008_v4 = vcombine.high %v958_v48, %v970_v49  ;;  %v874_v43 = vld [vmem:[%s8264_s27 + $0x178] sm:$0xff] }
 0x4bb   : > { %6448 = vmatprep.subr.bf16.mxu0 %v7510_v6  ;;  %v6912_v49 = vcombine.high %v862_v41, %v874_v43  ;;  %v850_v54 = vld [vmem:[%s8264_s27 + $0xb8] sm:$0xff] }
 0x4bd   : > { %6408 = vmatpush2.bf16.msra.mxu1 %v7125_v13 }
 0x4be   : > { %6449 = vmatpush2.bf16.msra.mxu0 %v7509_v18  ;;  %6409 = vmatprep.subr.bf16.mxu1 %v7102_v20  ;;  %v1318_v18 = vld [vmem:[%s8264_s27 + $0xf58] sm:$0xff] }
 0x4bf   : > { %6450 = vmatprep.subr.bf16.mxu0 %v7486_v21  ;;  %v1330_v20 = vld [vmem:[%s8264_s27 + $0xfb8] sm:$0xff] }
 0x4c0   : > { %v7367_v28 = vcombine.low %v1318_v18, %v1330_v20 }
 0x4c1   : > { %6410 = vmatpush2.bf16.msra.mxu1 %v7101_v56  ;;  %v7368_v56 = vcombine.high %v1318_v18, %v1330_v20  ;;  %v1594_v18 = vld [vmem:[%s8264_s27 + $0x17f8] sm:$0xff] }
 0x4c2   : > { %6451 = vmatpush2.bf16.msra.mxu0 %v7485_v61  ;;  %6411 = vmatprep.subr.bf16.mxu1 %v7078_v1  ;;  %v910_v61 = vld [vmem:[%s8264_s27 + $0x298] sm:$0xff] }
 0x4c3   : > { %6452 = vmatprep.subr.bf16.mxu0 %v7462_v2  ;;  %v922_v1 = vld [vmem:[%s8264_s27 + $0x2f8] sm:$0xff] }
 0x4c4   : > { %v1294_v2 = vld [vmem:[%s8264_s27 + $0xe98] sm:$0xff]  ;;  %v6960_v29 = vcombine.high %v910_v61, %v922_v1  ;;  %v6959_v26 = vcombine.low %v910_v61, %v922_v1 }
 0x4c5   : > { %6412 = vmatpush2.bf16.msra.mxu1 %v7077_v30  ;;  %v7344_v30 = vcombine.high %v1294_v2, %v1306_v5  ;;  %v7343_v33 = vcombine.low %v1294_v2, %v1306_v5  ;;  %v1150_v1 = vld [vmem:[%s8264_s27 + $0xa18] sm:$0xff] }
 0x4c6   : > { %6453 = vmatpush2.bf16.msra.mxu0 %v7461_v31  ;;  %6463 = vmatprep.subr.bf16.mxu1 %v7056_v32  ;;  %v886_v31 = vld [vmem:[%s8264_s27 + $0x1d8] sm:$0xff] }
 0x4c7   : > { %6504 = vmatprep.subr.bf16.mxu0 %v7440_v19  ;;  %v898_v32 = vld [vmem:[%s8264_s27 + $0x238] sm:$0xff] }
 0x4c8   : > { %v6169_v51 = vpop.f32.mrf.mxu1  ;;  %6414 = vmatmul.mubr.bf16.vlgmr.msra.gmra.mxu1 %v8366_v16  ;;  %v1270_v19 = vld [vmem:[%s8264_s27 + $0xdd8] sm:$0xff] }
 0x4c9   : > { %v6170_v58 = vadd.f32 %v6169_v51, %v1660_v34  ;;  %v6210_v59 = vpop.f32.mrf.mxu0  ;;  %6455 = vmatmul.mubr.bf16.vlgmr.msra.gmra.mxu0 %v8368_v17  ;;  %6464 = vmatpush1.bf16.msra.mxu1 %v7055_v39  ;;  %v6936_v34 = vcombine.high %v886_v31, %v898_v32  ;;  %v7320_v39 = vcombine.high %v1270_v19, %v1282_v23  ;;  %v1162_v2 = vld [vmem:[%s8264_s27 + $0xa78] sm:$0xff] }
 0x4ca   : > { %6495 = vmatprep.mubr.bf16.mxu1 %v8362_v14  ;;  %6505 = vmatpush1.bf16.msra.mxu0 %v7439_v44  ;;  %v6171_v0 = vpop.f32.mrf.mxu1  ;;  %v1246_v44 = vld [vmem:[%s8264_s27 + $0xd18] sm:$0xff]  ;;  %v7319_v48 = vcombine.low %v1270_v19, %v1282_v23 }
 0x4cb   : > { %v6211_v7 = vadd.f32 %v6210_v59, %v6170_v58  ;;  %6536 = vmatprep.mubr.bf16.mxu0 %v8364_v15  ;;  %v6172_v6 = vadd.f32 %v6171_v0, %v1664_v45  ;;  %v6212_v9 = vpop.f32.mrf.mxu0  ;;  %6465 = vmatprep.subr.bf16.mxu1 %v7032_v47  ;;  %v1258_v45 = vld [vmem:[%s8264_s27 + $0xd78] sm:$0xff]  ;;  %v6935_v47 = vcombine.low %v886_v31, %v898_v32 }
 0x4cc   : > { %v6173_v13 = vpop.f32.mrf.mxu1  ;;  %6506 = vmatprep.subr.bf16.mxu0 %v7416_v52  ;;  %v7296_v52 = vcombine.high %v1246_v44, %v1258_v45  ;;  %v1222_v59 = vld [vmem:[%s8264_s27 + $0xc58] sm:$0xff] }
 0x4cd   : > { %v6213_v14 = vadd.f32 %v6212_v9, %v6172_v6  ;;  %v6214_v21 = vpop.f32.mrf.mxu0  ;;  %6466 = vmatpush1.bf16.msra.mxu1 %v7031_v63  ;;  %7773 = vtanh.f32 %v6211_v7  ;;  %v1234_v63 = vld [vmem:[%s8264_s27 + $0xcb8] sm:$0xff]  ;;  %v6888_v7 = vcombine.high %v838_v53, %v850_v54  ;;  %v6652_v6 = vrot.slane %v6644_v3, %v8699_v8 }
 0x4ce   : > { %6507 = vmatpush1.bf16.msra.mxu0 %v7415_v36  ;;  %v6174_v15 = vpop.f32.mrf.mxu1  ;;  %6467 = vmatprep.subr.bf16.mxu1 %v7008_v4  ;;  %v6911_v36 = vcombine.low %v862_v41, %v874_v43  ;;  %v7295_v4 = vcombine.low %v1246_v44, %v1258_v45  ;;  %v1582_v13 = vld [vmem:[%s8264_s27 + $0x1798] sm:$0xff]  ;;  %v7271_v37 = vcombine.low %v1222_v59, %v1234_v63 }
 0x4cf   : > { %7775 = vtanh.f32 %v6213_v14  ;;  %v6215_v62 = vpop.f32.mrf.mxu0  ;;  %6508 = vmatprep.subr.bf16.mxu0 %v7392_v10  ;;  %v7272_v10 = vcombine.high %v1222_v59, %v1234_v63  ;;  %v6887_v14 = vcombine.low %v838_v53, %v850_v54  ;;  %v7632_v3 = vcombine.high %v1582_v13, %v1594_v18  ;;  %v1174_v21 = vld [vmem:[%s8264_s27 + $0xad8] sm:$0xff] }
 0x4d0   : > { %v1558_v15 = vld [vmem:[%s8264_s27 + $0x16d8] sm:$0xff]  ;;  %v7631_v62 = vcombine.low %v1582_v13, %v1594_v18 }
 0x4d1   : > { %6468 = vmatpush1.bf16.msra.mxu1 %v7007_v22  ;;  %v1186_v22 = vld [vmem:[%s8264_s27 + $0xb38] sm:$0xff] }
 0x4d2   : > { %6509 = vmatpush1.bf16.msra.mxu0 %v7391_v24  ;;  %6469 = vmatprep.subr.bf16.mxu1 %v6984_v25  ;;  %v1570_v24 = vld [vmem:[%s8264_s27 + $0x1738] sm:$0xff]  ;;  %v7247_v25 = vcombine.low %v1198_v11, %v1210_v12 }
 0x4d3   : > { %6510 = vmatprep.subr.bf16.mxu0 %v7368_v56  ;;  %v7224_v56 = vcombine.high %v1174_v21, %v1186_v22  ;;  %v7608_v61 = vcombine.high %v1558_v15, %v1570_v24  ;;  %v1534_v5 = vld [vmem:[%s8264_s27 + $0x1618] sm:$0xff] }
 0x4d4   : > { %v1126_v32 = vld [vmem:[%s8264_s27 + $0x958] sm:$0xff] }
 0x4d5   : > { %6470 = vmatpush1.bf16.msra.mxu1 %v6983_v27  ;;  %v1546_v27 = vld [vmem:[%s8264_s27 + $0x1678] sm:$0xff] }
 0x4d6   : > { %6511 = vmatpush1.bf16.msra.mxu0 %v7367_v28  ;;  %6471 = vmatprep.subr.bf16.mxu1 %v6960_v29  ;;  %v7223_v28 = vcombine.low %v1174_v21, %v1186_v22  ;;  %v7607_v29 = vcombine.low %v1558_v15, %v1570_v24  ;;  %v7584_v31 = vcombine.high %v1534_v5, %v1546_v27  ;;  %v1138_v19 = vld [vmem:[%s8264_s27 + $0x9b8] sm:$0xff] }
 0x4d7   : > { %6512 = vmatprep.subr.bf16.mxu0 %v7344_v30  ;;  %v7200_v30 = vcombine.high %v1150_v1, %v1162_v2  ;;  %v1510_v23 = vld [vmem:[%s8264_s27 + $0x1558] sm:$0xff] }
 0x4d8   : > { %v1102_v43 = vld [vmem:[%s8264_s27 + $0x898] sm:$0xff] }
 0x4d9   : > { %6472 = vmatpush1.bf16.msra.mxu1 %v6959_v26  ;;  %v1522_v26 = vld [vmem:[%s8264_s27 + $0x15b8] sm:$0xff] }
 0x4da   : > { %6513 = vmatpush1.bf16.msra.mxu0 %v7343_v33  ;;  %6473 = vmatprep.subr.bf16.mxu1 %v6936_v34  ;;  %v7774_v51 = vpop.eup %7773  ;;  %v7199_v33 = vcombine.low %v1150_v1, %v1162_v2  ;;  %v7583_v34 = vcombine.low %v1534_v5, %v1546_v27  ;;  %v7560_v41 = vcombine.high %v1510_v23, %v1522_v26  ;;  %v1114_v44 = vld [vmem:[%s8264_s27 + $0x8f8] sm:$0xff] }
 0x4db   : > { %6514 = vmatprep.subr.bf16.mxu0 %v7320_v39  ;;  %v7176_v39 = vcombine.high %v1126_v32, %v1138_v19  ;;  %v1486_v45 = vld [vmem:[%s8264_s27 + $0x1498] sm:$0xff]  ;;  %v7151_v63 = vcombine.low %v1102_v43, %v1114_v44 }
 0x4dc   : > { %v7776_v58 = vpop.eup %7775  ;;  %v1078_v53 = vld [vmem:[%s8264_s27 + $0x7d8] sm:$0xff] }
 0x4dd   : > { %v6645_v0 = vcombine.low %v7774_v51, %v7776_v58  ;;  %6474 = vmatpush1.bf16.msra.mxu1 %v6935_v47  ;;  %v1498_v47 = vld [vmem:[%s8264_s27 + $0x14f8] sm:$0xff]  ;;  %v7152_v51 = vcombine.high %v1102_v43, %v1114_v44 }
 0x4de   : > { %6515 = vmatpush1.bf16.msra.mxu0 %v7319_v48  ;;  %6475 = vmatprep.subr.bf16.mxu1 %v6912_v49  ;;  %v7175_v48 = vcombine.low %v1126_v32, %v1138_v19  ;;  %v7559_v49 = vcombine.low %v1510_v23, %v1522_v26  ;;  %v1090_v54 = vld [vmem:[%s8264_s27 + $0x838] sm:$0xff] }
 0x4df   : > { %v6659_v9 = vrot.slane %v6645_v0, %v8699_v8  ;;  %6516 = vmatprep.subr.bf16.mxu0 %v7296_v52  ;;  %v7536_v52 = vcombine.high %v1486_v45, %v1498_v47  ;;  %v1462_v58 = vld [vmem:[%s8264_s27 + $0x13d8] sm:$0xff]  ;;  %v7535_v0 = vcombine.low %v1486_v45, %v1498_v47  ;;  %v7127_v11 = vcombine.low %v1078_v53, %v1090_v54 }
 0x4e0   : > { %v1474_v59 = vld [vmem:[%s8264_s27 + $0x1438] sm:$0xff] }
 0x4e1   : > { %v6660_v20 = vcombine.low %v6652_v6, %v6659_v9  ;;  %6476 = vmatpush1.bf16.msra.mxu1 %v6911_v36  ;;  %v7128_v36 = vcombine.high %v1078_v53, %v1090_v54  ;;  %v1066_v6 = vld [vmem:[%s8264_s27 + $0x778] sm:$0xff]  ;;  %v7511_v12 = vcombine.low %v1462_v58, %v1474_v59 }
 0x4e2   : > { %6517 = vmatpush1.bf16.msra.mxu0 %v7295_v4  ;;  %6477 = vmatprep.subr.bf16.mxu1 %v6888_v7  ;;  %v7512_v4 = vcombine.high %v1462_v58, %v1474_v59  ;;  %v1054_v7 = vld [vmem:[%s8264_s27 + $0x718] sm:$0xff] }
 0x4e3   : > { %6704 = vst [vmem:[%s8716_s10 + $0x18] sm:$0xff] %v6660_v20  ;;  %6518 = vmatprep.subr.bf16.mxu0 %v7272_v10  ;;  %v1438_v9 = vld [vmem:[%s8264_s27 + $0x1318] sm:$0xff]  ;;  %v7104_v13 = vcombine.high %v1054_v7, %v1066_v6 }
 0x4e4   : > { %v1450_v10 = vld [vmem:[%s8264_s27 + $0x1378] sm:$0xff] }
 0x4e5   : > { %6478 = vmatpush1.bf16.msra.mxu1 %v6887_v14  ;;  %v7488_v18 = vcombine.high %v1438_v9, %v1450_v10  ;;  %v1030_v20 = vld [vmem:[%s8264_s27 + $0x658] sm:$0xff]  ;;  %v7487_v21 = vcombine.low %v1438_v9, %v1450_v10 }
 0x4e6   : > { %6519 = vmatpush1.bf16.msra.mxu0 %v7271_v37  ;;  %6479 = vmatprep.subr.bf16.mxu1 %v7248_v60  ;;  %v1042_v14 = vld [vmem:[%s8264_s27 + $0x6b8] sm:$0xff] }
 0x4e7   : > { %6520 = vmatprep.subr.bf16.mxu0 %v7632_v3  ;;  %v1414_v37 = vld [vmem:[%s8264_s27 + $0x1258] sm:$0xff]  ;;  %v7103_v3 = vcombine.low %v1054_v7, %v1066_v6  ;;  %v7080_v22 = vcombine.high %v1030_v20, %v1042_v14  ;;  %v7079_v24 = vcombine.low %v1030_v20, %v1042_v14 }
 0x4e8   : > { %v1426_v60 = vld [vmem:[%s8264_s27 + $0x12b8] sm:$0xff] }
 0x4e9   : > { %6480 = vmatpush2.bf16.msra.mxu1 %v7247_v25  ;;  %v7464_v15 = vcombine.high %v1414_v37, %v1426_v60  ;;  %v7463_v25 = vcombine.low %v1414_v37, %v1426_v60 }
 0x4ea   : > { %6521 = vmatpush2.bf16.msra.mxu0 %v7631_v62  ;;  %6481 = vmatprep.subr.bf16.mxu1 %v7224_v56  ;;  %v9231_v62 = vld [vmem:[%s8574_s22 + $0x10] sm:$0xff] }
 0x4eb   : > { %6522 = vmatprep.subr.bf16.mxu0 %v7608_v61  ;;  %v1668_v56 = vrot.slane %v9231_v62, %v8277_v38  ;;  %v1672_v61 = vrot.slane %v9231_v62, %v8280_v40 }
 0x4ed   : > { %6482 = vmatpush2.bf16.msra.mxu1 %v7223_v28 }
 0x4ee   : > { %6523 = vmatpush2.bf16.msra.mxu0 %v7607_v29  ;;  %6483 = vmatprep.subr.bf16.mxu1 %v7200_v30 }
 0x4ef   : > { %6524 = vmatprep.subr.bf16.mxu0 %v7584_v31 }
 0x4f1   : > { %6484 = vmatpush2.bf16.msra.mxu1 %v7199_v33 }
 0x4f2   : > { %6525 = vmatpush2.bf16.msra.mxu0 %v7583_v34  ;;  %6485 = vmatprep.subr.bf16.mxu1 %v7176_v39 }
 0x4f3   : > { %6526 = vmatprep.subr.bf16.mxu0 %v7560_v41 }
 0x4f5   : > { %6486 = vmatpush2.bf16.msra.mxu1 %v7175_v48 }
 0x4f6   : > { %6527 = vmatpush2.bf16.msra.mxu0 %v7559_v49  ;;  %6487 = vmatprep.subr.bf16.mxu1 %v7152_v51 }
 0x4f7   : > { %6528 = vmatprep.subr.bf16.mxu0 %v7536_v52 }
 0x4f9   : > { %6488 = vmatpush2.bf16.msra.mxu1 %v7151_v63 }
 0x4fa   : > { %6529 = vmatpush2.bf16.msra.mxu0 %v7535_v0  ;;  %6489 = vmatprep.subr.bf16.mxu1 %v7128_v36  ;;  %v1684_v0 = vrot.slane %v9231_v62, %v8754_v46  ;;  %v1688_v36 = vrot.slane %v9231_v62, %v8757_v50  ;;  %v1692_v50 = vrot.slane %v9231_v62, %v8838_v35 }
 0x4fb   : > { %6530 = vmatprep.subr.bf16.mxu0 %v7512_v4 }
 0x4fd   : > { %6490 = vmatpush2.bf16.msra.mxu1 %v7127_v11 }
 0x4fe   : > { %6531 = vmatpush2.bf16.msra.mxu0 %v7511_v12  ;;  %6491 = vmatprep.subr.bf16.mxu1 %v7104_v13 }
 0x4ff   : > { %6532 = vmatprep.subr.bf16.mxu0 %v7488_v18 }
 0x501   : > { %6492 = vmatpush2.bf16.msra.mxu1 %v7103_v3 }
 0x502   : > { %6533 = vmatpush2.bf16.msra.mxu0 %v7487_v21  ;;  %6493 = vmatprep.subr.bf16.mxu1 %v7080_v22  ;;  %v1696_v21 = vrot.slane %v9231_v62, %v8841_v42 }
 0x503   : > { %6534 = vmatprep.subr.bf16.mxu0 %v7464_v15 }
 0x505   : > { %6494 = vmatpush2.bf16.msra.mxu1 %v7079_v24 }
 0x506   : > { %6535 = vmatpush2.bf16.msra.mxu0 %v7463_v25 }
 0x508   : > { %v6251_v1 = vpop.f32.mrf.mxu1  ;;  %6496 = vmatmul.mubr.bf16.vlgmr.msra.gmra.mxu1 %v8366_v16  ;;  %v1676_v16 = vrot.slane %v9231_v62, %v8349_v55 }
 0x509   : > { %v6252_v2 = vadd.f32 %v6251_v1, %v1668_v56  ;;  %v6292_v5 = vpop.f32.mrf.mxu0  ;;  %6537 = vmatmul.mubr.bf16.vlgmr.msra.gmra.mxu0 %v8368_v17  ;;  %v1680_v17 = vrot.slane %v9231_v62, %v8352_v57 }
 0x50a   : > { %v6253_v27 = vpop.f32.mrf.mxu1 }
 0x50b   : > { %v6293_v28 = vadd.f32 %v6292_v5, %v6252_v2  ;;  %v6254_v29 = vadd.f32 %v6253_v27, %v1672_v61  ;;  %v6294_v30 = vpop.f32.mrf.mxu0 }
 0x50c   : > { %v6255_v31 = vpop.f32.mrf.mxu1 }
 0x50d   : > { %v6295_v32 = vadd.f32 %v6294_v30, %v6254_v29  ;;  %v6296_v19 = vpop.f32.mrf.mxu0  ;;  %7777 = vtanh.f32 %v6293_v28 }
 0x50e   : > { %v6256_v38 = vpop.f32.mrf.mxu1 }
 0x50f   : > { %7779 = vtanh.f32 %v6295_v32  ;;  %v6297_v23 = vpop.f32.mrf.mxu0 }
 0x51a   : > { %v7778_v26 = vpop.eup %7777 }
 0x51c   : > { %v7780_v40 = vpop.eup %7779 }
 0x51d   : > { %v6661_v33 = vcombine.low %v7778_v26, %v7780_v40 }
 0x51f   : > { %v6669_v57 = vrot.slane %v6661_v33, %v8699_v8 }
 0x548   : > { %v6333_v34 = vpop.f32.mrf.mxu1 }
 0x549   : > { %v6334_v39 = vadd.f32 %v6333_v34, %v1676_v16  ;;  %v6374_v41 = vpop.f32.mrf.mxu0 }
 0x54a   : > { %v6335_v43 = vpop.f32.mrf.mxu1 }
 0x54b   : > { %v6375_v44 = vadd.f32 %v6374_v41, %v6334_v39  ;;  %v6336_v45 = vadd.f32 %v6335_v43, %v1680_v17  ;;  %v6376_v47 = vpop.f32.mrf.mxu0 }
 0x54c   : > { %v6337_v48 = vpop.f32.mrf.mxu1 }
 0x54d   : > { %v6377_v49 = vadd.f32 %v6376_v47, %v6336_v45  ;;  %v6378_v51 = vpop.f32.mrf.mxu0  ;;  %7781 = vtanh.f32 %v6375_v44 }
 0x54e   : > { %v6338_v52 = vpop.f32.mrf.mxu1 }
 0x54f   : > { %7783 = vtanh.f32 %v6377_v49  ;;  %v6379_v53 = vpop.f32.mrf.mxu0 }
 0x55a   : > { %v7782_v54 = vpop.eup %7781 }
 0x55c   : > { %v7784_v55 = vpop.eup %7783 }
 0x55d   : > { %v6662_v58 = vcombine.low %v7782_v54, %v7784_v55 }
 0x55f   : > { %v6676_v59 = vrot.slane %v6662_v58, %v8699_v8 }
 0x561   : > { %v6677_v63 = vcombine.low %v6669_v57, %v6676_v59 }
 0x563   : > { %6705 = vst [vmem:[%s8716_s10 + $0x20] sm:$0xff] %v6677_v63 }
 0x588   : > { %v6415_v4 = vpop.f32.mrf.mxu1 }
 0x589   : > { %v6416_v7 = vadd.f32 %v6415_v4, %v1684_v0  ;;  %v6456_v6 = vpop.f32.mrf.mxu0 }
 0x58a   : > { %v6417_v9 = vpop.f32.mrf.mxu1 }
 0x58b   : > { %v6457_v10 = vadd.f32 %v6456_v6, %v6416_v7  ;;  %v6418_v11 = vadd.f32 %v6417_v9, %v1688_v36  ;;  %v6458_v12 = vpop.f32.mrf.mxu0 }
 0x58c   : > { %v6419_v13 = vpop.f32.mrf.mxu1 }
 0x58d   : > { %v6459_v18 = vadd.f32 %v6458_v12, %v6418_v11  ;;  %v6460_v20 = vpop.f32.mrf.mxu0  ;;  %7785 = vtanh.f32 %v6457_v10 }
 0x58e   : > { %v6420_v14 = vpop.f32.mrf.mxu1 }
 0x58f   : > { %7787 = vtanh.f32 %v6459_v18  ;;  %v6461_v37 = vpop.f32.mrf.mxu0 }
 0x59a   : > { %v7786_v60 = vpop.eup %7785 }
 0x59c   : > { %v7788_v3 = vpop.eup %7787 }
 0x59d   : > { %v6678_v46 = vcombine.low %v7786_v60, %v7788_v3 }
 0x59f   : > { %v6686_v42 = vrot.slane %v6678_v46, %v8699_v8 }
 0x5c8   : > { %v6497_v22 = vpop.f32.mrf.mxu1 }
 0x5c9   : > { %v6498_v15 = vadd.f32 %v6497_v22, %v1692_v50  ;;  %v6538_v24 = vpop.f32.mrf.mxu0 }
 0x5ca   : > { %v6499_v25 = vpop.f32.mrf.mxu1 }
 0x5cb   : > { %v6539_v56 = vadd.f32 %v6538_v24, %v6498_v15  ;;  %v6500_v61 = vadd.f32 %v6499_v25, %v1696_v21  ;;  %v6540_v1 = vpop.f32.mrf.mxu0 }
 0x5cc   : > { %v6501_v2 = vpop.f32.mrf.mxu1 }
 0x5cd   : > { %v6541_v5 = vadd.f32 %v6540_v1, %v6500_v61  ;;  %v6542_v27 = vpop.f32.mrf.mxu0  ;;  %7789 = vtanh.f32 %v6539_v56 }
 0x5ce   : > { %v6502_v28 = vpop.f32.mrf.mxu1 }
 0x5cf   : > { %7791 = vtanh.f32 %v6541_v5  ;;  %v6543_v29 = vpop.f32.mrf.mxu0 }
 0x5da   : > { %v7790_v30 = vpop.eup %7789 }
 0x5dc   : > { %v7792_v35 = vpop.eup %7791 }
 0x5dd   : > { %v6679_v31 = vcombine.low %v7790_v30, %v7792_v35 }
 0x5df   : > { %v6693_v62 = vrot.slane %v6679_v31, %v8699_v8 }
 0x5e1   : > { %v6694_v32 = vcombine.low %v6686_v42, %v6693_v62 }
 0x5e3   : > { %6706 = vst [vmem:[%s8716_s10 + $0x28] sm:$0xff] %v6694_v32 }
 0x5e4 PF: > { %s9308_s12 = smov %s8149_s24  ;;  %p20_p11 = scmp.ge.s32.totalorder %s8149_s24, 6  }
 0x5e5   : > { %s9309_s24 = smov %s8019_s25  ;;  %s9310_s25 = smov %s8023_s26 }
 0x5e6   : > { %s9311_s26 = smov %s8158_s11  ;;  %s9312_s27 = smov %s9308_s12 }
 0x5e7   :  { %22 = sbr.rel (!%p20_p11) target bundleno = 8 (0x8), region = 120 }
 0x5ec   :  { %6729 = vsyncpa [#allocation3], 1 }
 0x5ed   :  { %6731 = vsyncpa [#allocation3 + $0x1], 1 }
 0x5ee   :  { %6732 = vsyncpa [#allocation5], 1 }
 0x5ef   :  { %6733 = vsyncpa [#allocation8], 1 }
 0x5f0   :  { %6734 = vsyncpa [#allocation11], 1 }
 0x5f1   :  { %6736 = vsyncpa [#allocation11 + $0x1], 1 }

</bundles_post_ra>
